<compile_context>
chip_gen: v5e
topology: v5e:2x2
jax: 0.10.0
libtpu: 0.0.40
codegen_flags: <defaults>
</compile_context>

<pallas_src>
import functools
import numpy as np

import jax
import jax.numpy as jnp
from jax import lax
from jax.experimental import pallas as pl
from jax.experimental.pallas import tpu as pltpu

FP16_MIN = -65504.0
FP16_MAX = 65504.0
LN_EPS = 1e-5


# ---------------------------------------------------------------------------
# In-kernel math helpers
# ---------------------------------------------------------------------------
def _erf(x):
    # Abramowitz & Stegun 7.1.26 (|err| <= 1.5e-7): keeps nn.GELU's exact (erf)
    # semantics without relying on an erf lowering inside Mosaic.
    a1, a2, a3, a4, a5 = 0.254829592, -0.284496736, 1.421413741, -1.453152027, 1.061405429
    p = 0.3275911
    s = jnp.where(x >= 0.0, 1.0, -1.0)
    ax = jnp.abs(x)
    t = 1.0 / (1.0 + p * ax)
    poly = ((((a5 * t + a4) * t + a3) * t + a2) * t + a1) * t
    return s * (1.0 - poly * jnp.exp(-ax * ax))


def _gelu_exact(x):
    return 0.5 * x * (1.0 + _erf(x * 0.7071067811865476))


def _layernorm(x, g, b):
    mean = jnp.mean(x, axis=-1, keepdims=True)
    var = jnp.mean((x - mean) ** 2, axis=-1, keepdims=True)
    return (x - mean) * lax.rsqrt(var + LN_EPS) * g + b


# ---------------------------------------------------------------------------
# Fused encoder kernel: one grid step = (layer, batch element)
#   layer axis is OUTERMOST -> each layer's weights are DMA'd once per layer.
# ---------------------------------------------------------------------------
def _encoder_kernel(x_ref, cos_ref, sin_ref,
                    g1_ref, be1_ref, wqkv_ref, bqkv_ref, wo_ref, bo_ref,
                    g2_ref, be2_ref, w1_ref, b1_ref, w2_ref, b2_ref,
                    *outs_and_scratch, heads, dh, emit_attn):
    if emit_attn:
        xo_ref, aw_ref, x_vmem = outs_and_scratch
    else:
        xo_ref, x_vmem = outs_and_scratch
        aw_ref = None

    l = pl.program_id(0)            # layer (outer, sequential carry via scratch)
    b = pl.program_id(1)            # batch element (inner, independent)
    D = heads * dh
    bf16 = jnp.bfloat16

    @pl.when(l == 0)
    def _():
        x_vmem[b] = x_ref[0]        # load residual stream once per batch element

    x = x_vmem[b]                   # (S, D) f32 residual, VMEM-resident across layers
    cos = cos_ref[...]              # (S, D) RoPE tables (tiled over heads)
    sin = sin_ref[...]

    # ----------------- PreNorm(Attention) -----------------
    # clamp kept: required for the raw layer-0 input (could exceed fp16 range);
    # it is a no-op for l > 0 since the residual stream is already clamped.
    h = _layernorm(jnp.clip(x, FP16_MIN, FP16_MAX), g1_ref[0], be1_ref[0])
    # Fused projection [Q | K | V | Q@R | K@R]; 1/sqrt(dh) folded into Wq/bq.
    qkvr = jnp.dot(h.astype(bf16), wqkv_ref[0],
                   preferred_element_type=jnp.float32) + bqkv_ref[0]
    q = qkvr[:, 0 * D:1 * D] * cos + qkvr[:, 3 * D:4 * D] * sin   # RoPE as 2 FMAs
    k = qkvr[:, 1 * D:2 * D] * cos + qkvr[:, 4 * D:5 * D] * sin
    v = qkvr[:, 2 * D:3 * D]
    q_b, k_b, v_b = q.astype(bf16), k.astype(bf16), v.astype(bf16)

    o_heads = []
    for hd in range(heads):                         # static unroll over heads
        sl = slice(hd * dh, (hd + 1) * dh)
        s = lax.dot_general(q_b[:, sl], k_b[:, sl], (((1,), (1,)), ((), ())),
                            preferred_element_type=jnp.float32)   # (S, S)
        m = jnp.max(s, axis=-1, keepdims=True)
        e = jnp.exp(s - m)
        den = jnp.sum(e, axis=-1, keepdims=True)
        r = pl.reciprocal(den, approx=True)
        r = r * (2.0 - den * r)                     # one Newton step (EUP slot)
        p = e * r
        p_b = p.astype(bf16)
        if emit_attn:
            aw_ref[0, 0, hd] = p_b                  # bf16 attention maps
        o_heads.append(jnp.dot(p_b, v_b[:, sl], preferred_element_type=jnp.float32))
    # merge heads in VMEM, then ONE output projection with contraction K = D
    o = jnp.concatenate(o_heads, axis=-1)           # (S, D) f32
    y = jnp.dot(o.astype(bf16), wo_ref[0], preferred_element_type=jnp.float32) + bo_ref[0]
    x = jnp.clip(y + x, FP16_MIN, FP16_MAX)         # attention residual + clamp

    # ----------------- PreNorm(FeedForward) -----------------
    # (pre-norm clamp dropped: x was clamped just above -> idempotent)
    h2 = _layernorm(x, g2_ref[0], be2_ref[0])
    z = _gelu_exact(jnp.dot(h2.astype(bf16), w1_ref[0],
                            preferred_element_type=jnp.float32) + b1_ref[0])
    y2 = jnp.dot(z.astype(bf16), w2_ref[0], preferred_element_type=jnp.float32) + b2_ref[0]
    x = jnp.clip(y2 + x, FP16_MIN, FP16_MAX)        # MLP residual + clamp

    x_vmem[b] = x                                   # carry to next layer (VMEM only)

    @pl.when(l == pl.num_programs(0) - 1)
    def _():
        xo_ref[0] = x.astype(xo_ref.dtype)          # store only on the last layer


# ---------------------------------------------------------------------------
# Wrapper: one pallas_call for the entire encoder
# ---------------------------------------------------------------------------
def transformer_encoder(x, packed, cos_head, sin_head, *, heads, return_attn=True):
    B, S, D = x.shape
    depth = packed["w_ext"].shape[0]
    mlp_dim = packed["w1"].shape[-1]
    dh = D // heads

    cos_full = jnp.tile(cos_head, (1, heads))       # (S, D) shared by all heads
    sin_full = jnp.tile(sin_head, (1, heads))

    kernel = functools.partial(_encoder_kernel, heads=heads, dh=dh,
                               emit_attn=return_attn)

    lyr = lambda l, b: (l, 0, 0)    # per-layer stacked weights (constant in b ->
                                    #   fetched from HBM once per layer)
    act = lambda l, b: (b, 0, 0)    # per-batch activation slab
    tbl = lambda l, b: (0, 0)       # shared RoPE tables (fetched once)

    in_specs = [
        pl.BlockSpec((1, S, D), act),              # x (only consumed at l == 0)
        pl.BlockSpec((S, D), tbl),                 # cos
        pl.BlockSpec((S, D), tbl),                 # sin
        pl.BlockSpec((1, 1, D), lyr),              # ln1 gamma
        pl.BlockSpec((1, 1, D), lyr),              # ln1 beta
        pl.BlockSpec((1, D, 5 * D), lyr),          # [Wq|Wk|Wv|WqR|WkR]  bf16
        pl.BlockSpec((1, 1, 5 * D), lyr),          # fused bias          f32
        pl.BlockSpec((1, D, D), lyr),              # Wo  bf16
        pl.BlockSpec((1, 1, D), lyr),              # bo
        pl.BlockSpec((1, 1, D), lyr),              # ln2 gamma
        pl.BlockSpec((1, 1, D), lyr),              # ln2 beta
        pl.BlockSpec((1, D, mlp_dim), lyr),        # W1  bf16
        pl.BlockSpec((1, 1, mlp_dim), lyr),        # b1
        pl.BlockSpec((1, mlp_dim, D), lyr),        # W2  bf16
        pl.BlockSpec((1, 1, D), lyr),              # b2
    ]

    xo_sds = jax.ShapeDtypeStruct((B, S, D), x.dtype)
    xo_spec = pl.BlockSpec((1, S, D), act)
    if return_attn:
        out_shape = (xo_sds,
                     jax.ShapeDtypeStruct((depth, B, heads, S, S), jnp.bfloat16))
        out_specs = (xo_spec,
                     pl.BlockSpec((1, 1, heads, S, S), lambda l, b: (l, b, 0, 0, 0)))
    else:
        out_shape = xo_sds
        out_specs = xo_spec

    result = pl.pallas_call(
        kernel,
        out_shape=out_shape,
        grid_spec=pltpu.PrefetchScalarGridSpec(
            num_scalar_prefetch=0,
            grid=(depth, B),                        # layer OUTERMOST
            in_specs=in_specs,
            out_specs=out_specs,
            scratch_shapes=[pltpu.VMEM((B, S, D), jnp.float32)],   # residual carry
        ),
        compiler_params=pltpu.CompilerParams(
            dimension_semantics=("arbitrary", "parallel"),
            vmem_limit_bytes=64 * 1024 * 1024,      # safe on v5e/v6e/v7x
        ),
    )(x, cos_full, sin_full,
      packed["g1"], packed["be1"], packed["w_ext"], packed["b_ext"],
      packed["wo"], packed["bo"], packed["g2"], packed["be2"],
      packed["w1"], packed["b1"], packed["w2"], packed["b2"])

    if return_attn:
        x_out, attn_w = result
        l_attn = [attn_w[i] for i in range(depth)]   # bf16 per-layer attention maps
    else:
        x_out, l_attn = result, []
    return x_out, l_attn


# ---------------------------------------------------------------------------
# RoPE tables + rotation matrix (host-side setup)
# ---------------------------------------------------------------------------
def build_rope_tables(grid_shape, head_dim, base):
    gh, gw = grid_shape
    half = head_dim // 2
    nfreq = half // 2
    freqs = base ** (-jnp.arange(nfreq, dtype=jnp.float32) * 2.0 / half)
    rows = jnp.repeat(jnp.arange(gh, dtype=jnp.float32), gw)
    cols = jnp.tile(jnp.arange(gw, dtype=jnp.float32), gh)
    ang_r = rows[:, None] * freqs[None, :]
    ang_c = cols[:, None] * freqs[None, :]
    ang = jnp.concatenate([ang_r, ang_r, ang_c, ang_c], axis=-1)  # (S, head_dim)
    return jnp.cos(ang), jnp.sin(ang)


def build_rotation_matrix(head_dim):
    # Signed permutation R such that  x @ R == concat([-b, a, -d, c])
    # for x = concat([a, b, c, d]) split into 4 equal chunks (per spatial axis).
    R = np.zeros((head_dim, head_dim), dtype=np.float32)
    half = head_dim // 2
    nf = half // 2
    for off in (0, half):
        for j in range(nf):
            R[off + j + nf, off + j] = -1.0
            R[off + j, off + j + nf] = 1.0
    return jnp.asarray(R)


def pack_params(params, dim, heads):
    """Stack per-layer params, fuse QKV, fold RoPE rotation and the 1/sqrt(dh)
    softmax scale into the weights, and store the big matrices in bf16."""
    dh = dim // heads
    scale = 1.0 / float(np.sqrt(dh))
    R = np.asarray(build_rotation_matrix(dh))
    Rb = np.zeros((dim, dim), np.float32)
    for h in range(heads):
        Rb[h * dh:(h + 1) * dh, h * dh:(h + 1) * dh] = R
    Rb = jnp.asarray(Rb)

    def stack(fn, dtype=jnp.float32):
        return jnp.stack([fn(p) for p in params], axis=0).astype(dtype)

    def w_ext(p):
        wq_s = p["wq"] * scale                       # softmax scale folded into Wq
        return jnp.concatenate([wq_s, p["wk"], p["wv"], wq_s @ Rb, p["wk"] @ Rb], axis=1)

    def b_ext(p):
        bq_s = p["bq"] * scale
        return jnp.concatenate([bq_s, p["bk"], p["bv"], bq_s @ Rb, p["bk"] @ Rb],
                               axis=0).reshape(1, -1)

    return dict(
        g1=stack(lambda p: p["g1"].reshape(1, -1)),
        be1=stack(lambda p: p["be1"].reshape(1, -1)),
        w_ext=stack(w_ext, jnp.bfloat16),
        b_ext=stack(b_ext),
        wo=stack(lambda p: p["wo"], jnp.bfloat16),
        bo=stack(lambda p: p["bo"].reshape(1, -1)),
        g2=stack(lambda p: p["g2"].reshape(1, -1)),
        be2=stack(lambda p: p["be2"].reshape(1, -1)),
        w1=stack(lambda p: p["w1"], jnp.bfloat16),
        b1=stack(lambda p: p["b1"].reshape(1, -1)),
        w2=stack(lambda p: p["w2"], jnp.bfloat16),
        b2=stack(lambda p: p["b2"].reshape(1, -1)),
    )


# ---------------------------------------------------------------------------
# Deterministic parameter init (shapes follow the PyTorch module __init__)
# ---------------------------------------------------------------------------
def init_params(key, depth, dim, mlp_dim):
    params = []
    for _ in range(depth):
        key, *ks = jax.random.split(key, 7)
        w = lambda k, shape: 0.02 * jax.random.normal(k, shape, jnp.float32)
        params.append(dict(
            g1=jnp.ones((dim,), jnp.float32), be1=jnp.zeros((dim,), jnp.float32),
            wq=w(ks[0], (dim, dim)), bq=jnp.zeros((dim,), jnp.float32),
            wk=w(ks[1], (dim, dim)), bk=jnp.zeros((dim,), jnp.float32),
            wv=w(ks[2], (dim, dim)), bv=jnp.zeros((dim,), jnp.float32),
            wo=w(ks[3], (dim, dim)), bo=jnp.zeros((dim,), jnp.float32),
            g2=jnp.ones((dim,), jnp.float32), be2=jnp.zeros((dim,), jnp.float32),
            w1=w(ks[4], (dim, mlp_dim)), b1=jnp.zeros((mlp_dim,), jnp.float32),
            w2=w(ks[5], (mlp_dim, dim)), b2=jnp.zeros((dim,), jnp.float32),
        ))
    return params


# ---------------------------------------------------------------------------
# Pure-JAX reference (f32) for a numerical sanity check
# ---------------------------------------------------------------------------
def reference_encoder(x, params, cos, sin, rot, *, heads):
    B, S, D = x.shape
    dh = D // heads
    scale = 1.0 / np.sqrt(dh)
    l_attn = []
    for p in params:
        xc = jnp.clip(x, FP16_MIN, FP16_MAX)
        h = _layernorm(xc, p["g1"], p["be1"])
        q = h @ p["wq"] + p["bq"]
        k = h @ p["wk"] + p["bk"]
        v = h @ p["wv"] + p["bv"]
        split = lambda t: t.reshape(B, S, heads, dh).transpose(0, 2, 1, 3)
        qh, kh, vh = split(q), split(k), split(v)
        qh = qh * cos + (qh @ rot) * sin
        kh = kh * cos + (kh @ rot) * sin
        s = jnp.einsum("bhqd,bhkd->bhqk", qh, kh) * scale
        w = jax.nn.softmax(s, axis=-1)
        o = jnp.einsum("bhqk,bhkd->bhqd", w, vh).transpose(0, 2, 1, 3).reshape(B, S, D)
        x = jnp.clip(o @ p["wo"] + p["bo"] + x, FP16_MIN, FP16_MAX)
        xc = jnp.clip(x, FP16_MIN, FP16_MAX)
        h2 = _layernorm(xc, p["g2"], p["be2"])
        z = jax.nn.gelu(h2 @ p["w1"] + p["b1"], approximate=False)
        x = jnp.clip(z @ p["w2"] + p["b2"] + x, FP16_MIN, FP16_MAX)
        l_attn.append(w)
    return x, l_attn


if __name__ == "__main__":
    B, dim, heads, depth, mlp_dim = 2, 32, 4, 2, 64
    grid_shape = (7, 7)                 # RoPE grid of the custom MHA
    S = grid_shape[0] * grid_shape[1]   # 49 tokens
    dh = dim // heads

    key = jax.random.PRNGKey(0)
    kx, kp = jax.random.split(key)
    x = jax.random.normal(kx, (B, S, dim), jnp.float32)
    params = init_params(kp, depth, dim, mlp_dim)

    cos_h, sin_h = build_rope_tables(grid_shape, dh, 100.0)      # (S, dh)
    packed = pack_params(params, dim, heads)

    fwd = jax.jit(functools.partial(transformer_encoder, heads=heads, return_attn=True))
    out, l_attn = fwd(x, packed, cos_h, sin_h)
    jax.block_until_ready(out)
    jax.block_until_ready(l_attn)

    assert out.shape == (B, S, dim)
    assert len(l_attn) == depth and l_attn[0].shape == (B, heads, S, S)

    # numerical sanity check against a pure-JAX f32 reference
    # (kernel runs bf16 weights/operands with f32 accumulation -> loose tolerance)
    rot = build_rotation_matrix(dh)
    ref_out, ref_attn = reference_encoder(x, params, cos_h, sin_h, rot, heads=heads)
    np.testing.assert_allclose(np.asarray(out), np.asarray(ref_out),
                               rtol=1e-2, atol=1e-2)
    np.testing.assert_allclose(np.asarray(l_attn[0].astype(jnp.float32)),
                               np.asarray(ref_attn[0]), rtol=2e-2, atol=1e-3)

    print("KERNEL_OK")
</pallas_src>

<mosaic_0001>
module attributes {stable_mosaic.version = 11 : i64} {
  func.func @_encoder_kernel(%arg0: i32, %arg1: i32, %arg2: memref<1x49x32xf32, #tpu.memory_space<vmem>>, %arg3: memref<49x32xf32, #tpu.memory_space<vmem>>, %arg4: memref<49x32xf32, #tpu.memory_space<vmem>>, %arg5: memref<1x1x32xf32, #tpu.memory_space<vmem>>, %arg6: memref<1x1x32xf32, #tpu.memory_space<vmem>>, %arg7: memref<1x32x160xbf16, #tpu.memory_space<vmem>>, %arg8: memref<1x1x160xf32, #tpu.memory_space<vmem>>, %arg9: memref<1x32x32xbf16, #tpu.memory_space<vmem>>, %arg10: memref<1x1x32xf32, #tpu.memory_space<vmem>>, %arg11: memref<1x1x32xf32, #tpu.memory_space<vmem>>, %arg12: memref<1x1x32xf32, #tpu.memory_space<vmem>>, %arg13: memref<1x32x64xbf16, #tpu.memory_space<vmem>>, %arg14: memref<1x1x64xf32, #tpu.memory_space<vmem>>, %arg15: memref<1x64x32xbf16, #tpu.memory_space<vmem>>, %arg16: memref<1x1x32xf32, #tpu.memory_space<vmem>>, %arg17: memref<1x49x32xf32, #tpu.memory_space<vmem>>, %arg18: memref<1x1x4x49x49xbf16, #tpu.memory_space<vmem>>, %arg19: memref<2x49x32xf32, #tpu.memory_space<vmem>>) attributes {dimension_semantics = [#tpu.dimension_semantics<arbitrary>, #tpu.dimension_semantics<parallel>], iteration_bounds = array<i64: 2, 2>, scalar_prefetch = 0 : i64, scratch_operands = 1 : i64, tpu.core_type = #tpu.core_type<tc>, window_params = [{transform_indices = @transform_0, window_bounds = array<i64: 1, 49, 32>}, {pipeline_mode = #tpu.pipeline_mode<synchronous>, transform_indices = @transform_1, window_bounds = array<i64: 49, 32>}, {pipeline_mode = #tpu.pipeline_mode<synchronous>, transform_indices = @transform_2, window_bounds = array<i64: 49, 32>}, {transform_indices = @transform_3, window_bounds = array<i64: 1, 1, 32>}, {transform_indices = @transform_4, window_bounds = array<i64: 1, 1, 32>}, {transform_indices = @transform_5, window_bounds = array<i64: 1, 32, 160>}, {transform_indices = @transform_6, window_bounds = array<i64: 1, 1, 160>}, {transform_indices = @transform_7, window_bounds = array<i64: 1, 32, 32>}, {transform_indices = @transform_8, window_bounds = array<i64: 1, 1, 32>}, {transform_indices = @transform_9, window_bounds = array<i64: 1, 1, 32>}, {transform_indices = @transform_10, window_bounds = array<i64: 1, 1, 32>}, {transform_indices = @transform_11, window_bounds = array<i64: 1, 32, 64>}, {transform_indices = @transform_12, window_bounds = array<i64: 1, 1, 64>}, {transform_indices = @transform_13, window_bounds = array<i64: 1, 64, 32>}, {transform_indices = @transform_14, window_bounds = array<i64: 1, 1, 32>}, {transform_indices = @transform_15, window_bounds = array<i64: 1, 49, 32>}, {transform_indices = @transform_16, window_bounds = array<i64: 1, 1, 4, 49, 49>}]} {
    %c0_i32 = arith.constant 0 : i32
    %0 = arith.cmpi eq, %arg0, %c0_i32 : i32
    %1 = arith.extui %0 : i1 to i32
    %c0_i32_0 = arith.constant 0 : i32
    %2 = arith.cmpi ne, %1, %c0_i32_0 : i32
    scf.if %2 {
      %c0_117 = arith.constant 0 : index
      %c0_118 = arith.constant 0 : index
      %c0_119 = arith.constant 0 : index
      %261 = vector.load %arg2[%c0_117, %c0_118, %c0_119] : memref<1x49x32xf32, #tpu.memory_space<vmem>>, vector<1x49x32xf32>
      %262 = vector.shape_cast %261 : vector<1x49x32xf32> to vector<49x32xf32>
      %263 = arith.index_cast %arg1 : i32 to index
      %c0_120 = arith.constant 0 : index
      %c0_121 = arith.constant 0 : index
      %264 = vector.load %arg19[%263, %c0_120, %c0_121] : memref<2x49x32xf32, #tpu.memory_space<vmem>>, vector<1x49x32xf32>
      %265 = vector.shape_cast %264 : vector<1x49x32xf32> to vector<49x32xf32>
      %266 = vector.shape_cast %262 : vector<49x32xf32> to vector<1x49x32xf32>
      tpu.vector_store %arg19[%263, %c0_120, %c0_121], %266 {strides = array<i32>} : memref<2x49x32xf32, #tpu.memory_space<vmem>>, vector<1x49x32xf32>,
    } else {
    }
    %3 = arith.index_cast %arg1 : i32 to index
    %c0 = arith.constant 0 : index
    %c0_1 = arith.constant 0 : index
    %4 = vector.load %arg19[%3, %c0, %c0_1] : memref<2x49x32xf32, #tpu.memory_space<vmem>>, vector<1x49x32xf32>
    %5 = vector.shape_cast %4 : vector<1x49x32xf32> to vector<49x32xf32>
    %c0_2 = arith.constant 0 : index
    %c0_3 = arith.constant 0 : index
    %6 = vector.load %arg3[%c0_2, %c0_3] : memref<49x32xf32, #tpu.memory_space<vmem>>, vector<49x32xf32>
    %c0_4 = arith.constant 0 : index
    %c0_5 = arith.constant 0 : index
    %7 = vector.load %arg4[%c0_4, %c0_5] : memref<49x32xf32, #tpu.memory_space<vmem>>, vector<49x32xf32>
    %cst = arith.constant -6.550400e+04 : f32
    %cst_6 = arith.constant 6.550400e+04 : f32
    %8 = vector.broadcast %cst : f32 to vector<49x32xf32>
    %9 = arith.maximumf %8, %5 : vector<49x32xf32>
    %10 = vector.broadcast %cst_6 : f32 to vector<49x32xf32>
    %11 = arith.minimumf %10, %9 : vector<49x32xf32>
    %c0_7 = arith.constant 0 : index
    %c0_8 = arith.constant 0 : index
    %c0_9 = arith.constant 0 : index
    %12 = vector.load %arg5[%c0_7, %c0_8, %c0_9] : memref<1x1x32xf32, #tpu.memory_space<vmem>>, vector<1x1x32xf32>
    %13 = vector.shape_cast %12 : vector<1x1x32xf32> to vector<1x32xf32>
    %c0_10 = arith.constant 0 : index
    %c0_11 = arith.constant 0 : index
    %c0_12 = arith.constant 0 : index
    %14 = vector.load %arg6[%c0_10, %c0_11, %c0_12] : memref<1x1x32xf32, #tpu.memory_space<vmem>>, vector<1x1x32xf32>
    %15 = vector.shape_cast %14 : vector<1x1x32xf32> to vector<1x32xf32>
    %cst_13 = arith.constant dense<0.000000e+00> : vector<49xf32>
    %16 = vector.multi_reduction <add>, %11, %cst_13 [1] : vector<49x32xf32> to vector<49xf32>
    %17 = vector.shape_cast %16 : vector<49xf32> to vector<49x1xf32>
    %cst_14 = arith.constant 3.200000e+01 : f32
    %18 = vector.broadcast %cst_14 : f32 to vector<49x1xf32>
    %19 = arith.divf %17, %18 : vector<49x1xf32>
    %20 = vector.broadcast %19 : vector<49x1xf32> to vector<49x32xf32>
    %21 = arith.subf %11, %20 : vector<49x32xf32>
    %22 = arith.mulf %21, %21 : vector<49x32xf32>
    %cst_15 = arith.constant dense<0.000000e+00> : vector<49xf32>
    %23 = vector.multi_reduction <add>, %22, %cst_15 [1] : vector<49x32xf32> to vector<49xf32>
    %24 = vector.shape_cast %23 : vector<49xf32> to vector<49x1xf32>
    %cst_16 = arith.constant 3.200000e+01 : f32
    %25 = vector.broadcast %cst_16 : f32 to vector<49x1xf32>
    %26 = arith.divf %24, %25 : vector<49x1xf32>
    %27 = vector.broadcast %19 : vector<49x1xf32> to vector<49x32xf32>
    %28 = arith.subf %11, %27 : vector<49x32xf32>
    %cst_17 = arith.constant 9.99999974E-6 : f32
    %29 = vector.broadcast %cst_17 : f32 to vector<49x1xf32>
    %30 = arith.addf %26, %29 : vector<49x1xf32>
    %31 = math.rsqrt %30 : vector<49x1xf32>
    %32 = vector.broadcast %31 : vector<49x1xf32> to vector<49x32xf32>
    %33 = arith.mulf %28, %32 : vector<49x32xf32>
    %34 = vector.broadcast %13 : vector<1x32xf32> to vector<49x32xf32>
    %35 = arith.mulf %33, %34 : vector<49x32xf32>
    %36 = vector.broadcast %15 : vector<1x32xf32> to vector<49x32xf32>
    %37 = arith.addf %35, %36 : vector<49x32xf32>
    %38 = arith.truncf %37 : vector<49x32xf32> to vector<49x32xbf16>
    %c0_18 = arith.constant 0 : index
    %c0_19 = arith.constant 0 : index
    %c0_20 = arith.constant 0 : index
    %39 = vector.load %arg7[%c0_18, %c0_19, %c0_20] : memref<1x32x160xbf16, #tpu.memory_space<vmem>>, vector<1x32x160xbf16>
    %40 = vector.shape_cast %39 : vector<1x32x160xbf16> to vector<32x160xbf16>
    %cst_21 = arith.constant dense<0.000000e+00> : vector<49x160xf32>
    %41 = tpu.matmul %38, %40, %cst_21 {dimension_numbers = #tpu.dot_dimension_numbers<[1], [0], [0], [1], [0, 0, 1, 1], [], []>} : vector<49x32xbf16>, vector<32x160xbf16>, vector<49x160xf32> -> vector<49x160xf32>
    %c0_22 = arith.constant 0 : index
    %c0_23 = arith.constant 0 : index
    %c0_24 = arith.constant 0 : index
    %42 = vector.load %arg8[%c0_22, %c0_23, %c0_24] : memref<1x1x160xf32, #tpu.memory_space<vmem>>, vector<1x1x160xf32>
    %43 = vector.shape_cast %42 : vector<1x1x160xf32> to vector<1x160xf32>
    %44 = vector.broadcast %43 : vector<1x160xf32> to vector<49x160xf32>
    %45 = arith.addf %41, %44 : vector<49x160xf32>
    %46 = vector.extract_strided_slice %45 {offsets = [0, 0], sizes = [49, 32], strides = [1, 1]} : vector<49x160xf32> to vector<49x32xf32>
    %47 = arith.mulf %46, %6 : vector<49x32xf32>
    %48 = vector.extract_strided_slice %45 {offsets = [0, 96], sizes = [49, 32], strides = [1, 1]} : vector<49x160xf32> to vector<49x32xf32>
    %49 = arith.mulf %48, %7 : vector<49x32xf32>
    %50 = arith.addf %47, %49 : vector<49x32xf32>
    %51 = vector.extract_strided_slice %45 {offsets = [0, 32], sizes = [49, 32], strides = [1, 1]} : vector<49x160xf32> to vector<49x32xf32>
    %52 = arith.mulf %51, %6 : vector<49x32xf32>
    %53 = vector.extract_strided_slice %45 {offsets = [0, 128], sizes = [49, 32], strides = [1, 1]} : vector<49x160xf32> to vector<49x32xf32>
    %54 = arith.mulf %53, %7 : vector<49x32xf32>
    %55 = arith.addf %52, %54 : vector<49x32xf32>
    %56 = vector.extract_strided_slice %45 {offsets = [0, 64], sizes = [49, 32], strides = [1, 1]} : vector<49x160xf32> to vector<49x32xf32>
    %57 = arith.truncf %50 : vector<49x32xf32> to vector<49x32xbf16>
    %58 = arith.truncf %55 : vector<49x32xf32> to vector<49x32xbf16>
    %59 = arith.truncf %56 : vector<49x32xf32> to vector<49x32xbf16>
    %60 = vector.extract_strided_slice %57 {offsets = [0, 0], sizes = [49, 8], strides = [1, 1]} : vector<49x32xbf16> to vector<49x8xbf16>
    %61 = vector.extract_strided_slice %58 {offsets = [0, 0], sizes = [49, 8], strides = [1, 1]} : vector<49x32xbf16> to vector<49x8xbf16>
    %cst_25 = arith.constant dense<0.000000e+00> : vector<49x49xf32>
    %62 = tpu.matmul %60, %61, %cst_25 {dimension_numbers = #tpu.dot_dimension_numbers<[1], [1], [0], [0], [0, 0, 1, 0], [], []>} : vector<49x8xbf16>, vector<49x8xbf16>, vector<49x49xf32> -> vector<49x49xf32>
    %cst_26 = arith.constant dense<0xFF800000> : vector<49xf32>
    %63 = vector.multi_reduction <maximumf>, %62, %cst_26 [1] : vector<49x49xf32> to vector<49xf32>
    %64 = vector.shape_cast %63 : vector<49xf32> to vector<49x1xf32>
    %65 = vector.broadcast %64 : vector<49x1xf32> to vector<49x49xf32>
    %66 = arith.subf %62, %65 : vector<49x49xf32>
    %67 = math.exp %66 : vector<49x49xf32>
    %cst_27 = arith.constant dense<0.000000e+00> : vector<49xf32>
    %68 = vector.multi_reduction <add>, %67, %cst_27 [1] : vector<49x49xf32> to vector<49xf32>
    %69 = vector.shape_cast %68 : vector<49xf32> to vector<49x1xf32>
    %70 = tpu.reciprocal %69 {approx = true} : vector<49x1xf32> -> vector<49x1xf32>
    %71 = arith.mulf %69, %70 : vector<49x1xf32>
    %cst_28 = arith.constant 2.000000e+00 : f32
    %72 = vector.broadcast %cst_28 : f32 to vector<49x1xf32>
    %73 = arith.subf %72, %71 : vector<49x1xf32>
    %74 = arith.mulf %70, %73 : vector<49x1xf32>
    %75 = vector.broadcast %74 : vector<49x1xf32> to vector<49x49xf32>
    %76 = arith.mulf %67, %75 : vector<49x49xf32>
    %77 = arith.truncf %76 : vector<49x49xf32> to vector<49x49xbf16>
    %c0_29 = arith.constant 0 : index
    %c0_30 = arith.constant 0 : index
    %c0_31 = arith.constant 0 : index
    %c0_32 = arith.constant 0 : index
    %c0_33 = arith.constant 0 : index
    %78 = vector.load %arg18[%c0_29, %c0_30, %c0_31, %c0_32, %c0_33] : memref<1x1x4x49x49xbf16, #tpu.memory_space<vmem>>, vector<1x1x1x49x49xbf16>
    %79 = vector.shape_cast %78 : vector<1x1x1x49x49xbf16> to vector<49x49xbf16>
    %80 = vector.shape_cast %77 : vector<49x49xbf16> to vector<1x1x1x49x49xbf16>
    tpu.vector_store %arg18[%c0_29, %c0_30, %c0_31, %c0_32, %c0_33], %80 {strides = array<i32>} : memref<1x1x4x49x49xbf16, #tpu.memory_space<vmem>>, vector<1x1x1x49x49xbf16>,
    %81 = vector.extract_strided_slice %59 {offsets = [0, 0], sizes = [49, 8], strides = [1, 1]} : vector<49x32xbf16> to vector<49x8xbf16>
    %cst_34 = arith.constant dense<0.000000e+00> : vector<49x8xf32>
    %82 = tpu.matmul %77, %81, %cst_34 {dimension_numbers = #tpu.dot_dimension_numbers<[1], [0], [0], [1], [0, 0, 1, 1], [], []>} : vector<49x49xbf16>, vector<49x8xbf16>, vector<49x8xf32> -> vector<49x8xf32>
    %83 = vector.extract_strided_slice %57 {offsets = [0, 8], sizes = [49, 8], strides = [1, 1]} : vector<49x32xbf16> to vector<49x8xbf16>
    %84 = vector.extract_strided_slice %58 {offsets = [0, 8], sizes = [49, 8], strides = [1, 1]} : vector<49x32xbf16> to vector<49x8xbf16>
    %cst_35 = arith.constant dense<0.000000e+00> : vector<49x49xf32>
    %85 = tpu.matmul %83, %84, %cst_35 {dimension_numbers = #tpu.dot_dimension_numbers<[1], [1], [0], [0], [0, 0, 1, 0], [], []>} : vector<49x8xbf16>, vector<49x8xbf16>, vector<49x49xf32> -> vector<49x49xf32>
    %cst_36 = arith.constant dense<0xFF800000> : vector<49xf32>
    %86 = vector.multi_reduction <maximumf>, %85, %cst_36 [1] : vector<49x49xf32> to vector<49xf32>
    %87 = vector.shape_cast %86 : vector<49xf32> to vector<49x1xf32>
    %88 = vector.broadcast %87 : vector<49x1xf32> to vector<49x49xf32>
    %89 = arith.subf %85, %88 : vector<49x49xf32>
    %90 = math.exp %89 : vector<49x49xf32>
    %cst_37 = arith.constant dense<0.000000e+00> : vector<49xf32>
    %91 = vector.multi_reduction <add>, %90, %cst_37 [1] : vector<49x49xf32> to vector<49xf32>
    %92 = vector.shape_cast %91 : vector<49xf32> to vector<49x1xf32>
    %93 = tpu.reciprocal %92 {approx = true} : vector<49x1xf32> -> vector<49x1xf32>
    %94 = arith.mulf %92, %93 : vector<49x1xf32>
    %cst_38 = arith.constant 2.000000e+00 : f32
    %95 = vector.broadcast %cst_38 : f32 to vector<49x1xf32>
    %96 = arith.subf %95, %94 : vector<49x1xf32>
    %97 = arith.mulf %93, %96 : vector<49x1xf32>
    %98 = vector.broadcast %97 : vector<49x1xf32> to vector<49x49xf32>
    %99 = arith.mulf %90, %98 : vector<49x49xf32>
    %100 = arith.truncf %99 : vector<49x49xf32> to vector<49x49xbf16>
    %c0_39 = arith.constant 0 : index
    %c0_40 = arith.constant 0 : index
    %c1 = arith.constant 1 : index
    %c0_41 = arith.constant 0 : index
    %c0_42 = arith.constant 0 : index
    %101 = vector.load %arg18[%c0_39, %c0_40, %c1, %c0_41, %c0_42] : memref<1x1x4x49x49xbf16, #tpu.memory_space<vmem>>, vector<1x1x1x49x49xbf16>
    %102 = vector.shape_cast %101 : vector<1x1x1x49x49xbf16> to vector<49x49xbf16>
    %103 = vector.shape_cast %100 : vector<49x49xbf16> to vector<1x1x1x49x49xbf16>
    tpu.vector_store %arg18[%c0_39, %c0_40, %c1, %c0_41, %c0_42], %103 {strides = array<i32>} : memref<1x1x4x49x49xbf16, #tpu.memory_space<vmem>>, vector<1x1x1x49x49xbf16>,
    %104 = vector.extract_strided_slice %59 {offsets = [0, 8], sizes = [49, 8], strides = [1, 1]} : vector<49x32xbf16> to vector<49x8xbf16>
    %cst_43 = arith.constant dense<0.000000e+00> : vector<49x8xf32>
    %105 = tpu.matmul %100, %104, %cst_43 {dimension_numbers = #tpu.dot_dimension_numbers<[1], [0], [0], [1], [0, 0, 1, 1], [], []>} : vector<49x49xbf16>, vector<49x8xbf16>, vector<49x8xf32> -> vector<49x8xf32>
    %106 = vector.extract_strided_slice %57 {offsets = [0, 16], sizes = [49, 8], strides = [1, 1]} : vector<49x32xbf16> to vector<49x8xbf16>
    %107 = vector.extract_strided_slice %58 {offsets = [0, 16], sizes = [49, 8], strides = [1, 1]} : vector<49x32xbf16> to vector<49x8xbf16>
    %cst_44 = arith.constant dense<0.000000e+00> : vector<49x49xf32>
    %108 = tpu.matmul %106, %107, %cst_44 {dimension_numbers = #tpu.dot_dimension_numbers<[1], [1], [0], [0], [0, 0, 1, 0], [], []>} : vector<49x8xbf16>, vector<49x8xbf16>, vector<49x49xf32> -> vector<49x49xf32>
    %cst_45 = arith.constant dense<0xFF800000> : vector<49xf32>
    %109 = vector.multi_reduction <maximumf>, %108, %cst_45 [1] : vector<49x49xf32> to vector<49xf32>
    %110 = vector.shape_cast %109 : vector<49xf32> to vector<49x1xf32>
    %111 = vector.broadcast %110 : vector<49x1xf32> to vector<49x49xf32>
    %112 = arith.subf %108, %111 : vector<49x49xf32>
    %113 = math.exp %112 : vector<49x49xf32>
    %cst_46 = arith.constant dense<0.000000e+00> : vector<49xf32>
    %114 = vector.multi_reduction <add>, %113, %cst_46 [1] : vector<49x49xf32> to vector<49xf32>
    %115 = vector.shape_cast %114 : vector<49xf32> to vector<49x1xf32>
    %116 = tpu.reciprocal %115 {approx = true} : vector<49x1xf32> -> vector<49x1xf32>
    %117 = arith.mulf %115, %116 : vector<49x1xf32>
    %cst_47 = arith.constant 2.000000e+00 : f32
    %118 = vector.broadcast %cst_47 : f32 to vector<49x1xf32>
    %119 = arith.subf %118, %117 : vector<49x1xf32>
    %120 = arith.mulf %116, %119 : vector<49x1xf32>
    %121 = vector.broadcast %120 : vector<49x1xf32> to vector<49x49xf32>
    %122 = arith.mulf %113, %121 : vector<49x49xf32>
    %123 = arith.truncf %122 : vector<49x49xf32> to vector<49x49xbf16>
    %c0_48 = arith.constant 0 : index
    %c0_49 = arith.constant 0 : index
    %c2 = arith.constant 2 : index
    %c0_50 = arith.constant 0 : index
    %c0_51 = arith.constant 0 : index
    %124 = vector.load %arg18[%c0_48, %c0_49, %c2, %c0_50, %c0_51] : memref<1x1x4x49x49xbf16, #tpu.memory_space<vmem>>, vector<1x1x1x49x49xbf16>
    %125 = vector.shape_cast %124 : vector<1x1x1x49x49xbf16> to vector<49x49xbf16>
    %126 = vector.shape_cast %123 : vector<49x49xbf16> to vector<1x1x1x49x49xbf16>
    tpu.vector_store %arg18[%c0_48, %c0_49, %c2, %c0_50, %c0_51], %126 {strides = array<i32>} : memref<1x1x4x49x49xbf16, #tpu.memory_space<vmem>>, vector<1x1x1x49x49xbf16>,
    %127 = vector.extract_strided_slice %59 {offsets = [0, 16], sizes = [49, 8], strides = [1, 1]} : vector<49x32xbf16> to vector<49x8xbf16>
    %cst_52 = arith.constant dense<0.000000e+00> : vector<49x8xf32>
    %128 = tpu.matmul %123, %127, %cst_52 {dimension_numbers = #tpu.dot_dimension_numbers<[1], [0], [0], [1], [0, 0, 1, 1], [], []>} : vector<49x49xbf16>, vector<49x8xbf16>, vector<49x8xf32> -> vector<49x8xf32>
    %129 = vector.extract_strided_slice %57 {offsets = [0, 24], sizes = [49, 8], strides = [1, 1]} : vector<49x32xbf16> to vector<49x8xbf16>
    %130 = vector.extract_strided_slice %58 {offsets = [0, 24], sizes = [49, 8], strides = [1, 1]} : vector<49x32xbf16> to vector<49x8xbf16>
    %cst_53 = arith.constant dense<0.000000e+00> : vector<49x49xf32>
    %131 = tpu.matmul %129, %130, %cst_53 {dimension_numbers = #tpu.dot_dimension_numbers<[1], [1], [0], [0], [0, 0, 1, 0], [], []>} : vector<49x8xbf16>, vector<49x8xbf16>, vector<49x49xf32> -> vector<49x49xf32>
    %cst_54 = arith.constant dense<0xFF800000> : vector<49xf32>
    %132 = vector.multi_reduction <maximumf>, %131, %cst_54 [1] : vector<49x49xf32> to vector<49xf32>
    %133 = vector.shape_cast %132 : vector<49xf32> to vector<49x1xf32>
    %134 = vector.broadcast %133 : vector<49x1xf32> to vector<49x49xf32>
    %135 = arith.subf %131, %134 : vector<49x49xf32>
    %136 = math.exp %135 : vector<49x49xf32>
    %cst_55 = arith.constant dense<0.000000e+00> : vector<49xf32>
    %137 = vector.multi_reduction <add>, %136, %cst_55 [1] : vector<49x49xf32> to vector<49xf32>
    %138 = vector.shape_cast %137 : vector<49xf32> to vector<49x1xf32>
    %139 = tpu.reciprocal %138 {approx = true} : vector<49x1xf32> -> vector<49x1xf32>
    %140 = arith.mulf %138, %139 : vector<49x1xf32>
    %cst_56 = arith.constant 2.000000e+00 : f32
    %141 = vector.broadcast %cst_56 : f32 to vector<49x1xf32>
    %142 = arith.subf %141, %140 : vector<49x1xf32>
    %143 = arith.mulf %139, %142 : vector<49x1xf32>
    %144 = vector.broadcast %143 : vector<49x1xf32> to vector<49x49xf32>
    %145 = arith.mulf %136, %144 : vector<49x49xf32>
    %146 = arith.truncf %145 : vector<49x49xf32> to vector<49x49xbf16>
    %c0_57 = arith.constant 0 : index
    %c0_58 = arith.constant 0 : index
    %c3 = arith.constant 3 : index
    %c0_59 = arith.constant 0 : index
    %c0_60 = arith.constant 0 : index
    %147 = vector.load %arg18[%c0_57, %c0_58, %c3, %c0_59, %c0_60] : memref<1x1x4x49x49xbf16, #tpu.memory_space<vmem>>, vector<1x1x1x49x49xbf16>
    %148 = vector.shape_cast %147 : vector<1x1x1x49x49xbf16> to vector<49x49xbf16>
    %149 = vector.shape_cast %146 : vector<49x49xbf16> to vector<1x1x1x49x49xbf16>
    tpu.vector_store %arg18[%c0_57, %c0_58, %c3, %c0_59, %c0_60], %149 {strides = array<i32>} : memref<1x1x4x49x49xbf16, #tpu.memory_space<vmem>>, vector<1x1x1x49x49xbf16>,
    %150 = vector.extract_strided_slice %59 {offsets = [0, 24], sizes = [49, 8], strides = [1, 1]} : vector<49x32xbf16> to vector<49x8xbf16>
    %cst_61 = arith.constant dense<0.000000e+00> : vector<49x8xf32>
    %151 = tpu.matmul %146, %150, %cst_61 {dimension_numbers = #tpu.dot_dimension_numbers<[1], [0], [0], [1], [0, 0, 1, 1], [], []>} : vector<49x49xbf16>, vector<49x8xbf16>, vector<49x8xf32> -> vector<49x8xf32>
    %152 = tpu.concatenate %82, %105, %128, %151 in 1 : vector<49x8xf32>, vector<49x8xf32>, vector<49x8xf32>, vector<49x8xf32> -> vector<49x32xf32>
    %153 = arith.truncf %152 : vector<49x32xf32> to vector<49x32xbf16>
    %c0_62 = arith.constant 0 : index
    %c0_63 = arith.constant 0 : index
    %c0_64 = arith.constant 0 : index
    %154 = vector.load %arg9[%c0_62, %c0_63, %c0_64] : memref<1x32x32xbf16, #tpu.memory_space<vmem>>, vector<1x32x32xbf16>
    %155 = vector.shape_cast %154 : vector<1x32x32xbf16> to vector<32x32xbf16>
    %cst_65 = arith.constant dense<0.000000e+00> : vector<49x32xf32>
    %156 = tpu.matmul %153, %155, %cst_65 {dimension_numbers = #tpu.dot_dimension_numbers<[1], [0], [0], [1], [0, 0, 1, 1], [], []>} : vector<49x32xbf16>, vector<32x32xbf16>, vector<49x32xf32> -> vector<49x32xf32>
    %c0_66 = arith.constant 0 : index
    %c0_67 = arith.constant 0 : index
    %c0_68 = arith.constant 0 : index
    %157 = vector.load %arg10[%c0_66, %c0_67, %c0_68] : memref<1x1x32xf32, #tpu.memory_space<vmem>>, vector<1x1x32xf32>
    %158 = vector.shape_cast %157 : vector<1x1x32xf32> to vector<1x32xf32>
    %159 = vector.broadcast %158 : vector<1x32xf32> to vector<49x32xf32>
    %160 = arith.addf %156, %159 : vector<49x32xf32>
    %161 = arith.addf %160, %5 : vector<49x32xf32>
    %cst_69 = arith.constant -6.550400e+04 : f32
    %cst_70 = arith.constant 6.550400e+04 : f32
    %162 = vector.broadcast %cst_69 : f32 to vector<49x32xf32>
    %163 = arith.maximumf %162, %161 : vector<49x32xf32>
    %164 = vector.broadcast %cst_70 : f32 to vector<49x32xf32>
    %165 = arith.minimumf %164, %163 : vector<49x32xf32>
    %c0_71 = arith.constant 0 : index
    %c0_72 = arith.constant 0 : index
    %c0_73 = arith.constant 0 : index
    %166 = vector.load %arg11[%c0_71, %c0_72, %c0_73] : memref<1x1x32xf32, #tpu.memory_space<vmem>>, vector<1x1x32xf32>
    %167 = vector.shape_cast %166 : vector<1x1x32xf32> to vector<1x32xf32>
    %c0_74 = arith.constant 0 : index
    %c0_75 = arith.constant 0 : index
    %c0_76 = arith.constant 0 : index
    %168 = vector.load %arg12[%c0_74, %c0_75, %c0_76] : memref<1x1x32xf32, #tpu.memory_space<vmem>>, vector<1x1x32xf32>
    %169 = vector.shape_cast %168 : vector<1x1x32xf32> to vector<1x32xf32>
    %cst_77 = arith.constant dense<0.000000e+00> : vector<49xf32>
    %170 = vector.multi_reduction <add>, %165, %cst_77 [1] : vector<49x32xf32> to vector<49xf32>
    %171 = vector.shape_cast %170 : vector<49xf32> to vector<49x1xf32>
    %cst_78 = arith.constant 3.200000e+01 : f32
    %172 = vector.broadcast %cst_78 : f32 to vector<49x1xf32>
    %173 = arith.divf %171, %172 : vector<49x1xf32>
    %174 = vector.broadcast %173 : vector<49x1xf32> to vector<49x32xf32>
    %175 = arith.subf %165, %174 : vector<49x32xf32>
    %176 = arith.mulf %175, %175 : vector<49x32xf32>
    %cst_79 = arith.constant dense<0.000000e+00> : vector<49xf32>
    %177 = vector.multi_reduction <add>, %176, %cst_79 [1] : vector<49x32xf32> to vector<49xf32>
    %178 = vector.shape_cast %177 : vector<49xf32> to vector<49x1xf32>
    %cst_80 = arith.constant 3.200000e+01 : f32
    %179 = vector.broadcast %cst_80 : f32 to vector<49x1xf32>
    %180 = arith.divf %178, %179 : vector<49x1xf32>
    %181 = vector.broadcast %173 : vector<49x1xf32> to vector<49x32xf32>
    %182 = arith.subf %165, %181 : vector<49x32xf32>
    %cst_81 = arith.constant 9.99999974E-6 : f32
    %183 = vector.broadcast %cst_81 : f32 to vector<49x1xf32>
    %184 = arith.addf %180, %183 : vector<49x1xf32>
    %185 = math.rsqrt %184 : vector<49x1xf32>
    %186 = vector.broadcast %185 : vector<49x1xf32> to vector<49x32xf32>
    %187 = arith.mulf %182, %186 : vector<49x32xf32>
    %188 = vector.broadcast %167 : vector<1x32xf32> to vector<49x32xf32>
    %189 = arith.mulf %187, %188 : vector<49x32xf32>
    %190 = vector.broadcast %169 : vector<1x32xf32> to vector<49x32xf32>
    %191 = arith.addf %189, %190 : vector<49x32xf32>
    %192 = arith.truncf %191 : vector<49x32xf32> to vector<49x32xbf16>
    %c0_82 = arith.constant 0 : index
    %c0_83 = arith.constant 0 : index
    %c0_84 = arith.constant 0 : index
    %193 = vector.load %arg13[%c0_82, %c0_83, %c0_84] : memref<1x32x64xbf16, #tpu.memory_space<vmem>>, vector<1x32x64xbf16>
    %194 = vector.shape_cast %193 : vector<1x32x64xbf16> to vector<32x64xbf16>
    %cst_85 = arith.constant dense<0.000000e+00> : vector<49x64xf32>
    %195 = tpu.matmul %192, %194, %cst_85 {dimension_numbers = #tpu.dot_dimension_numbers<[1], [0], [0], [1], [0, 0, 1, 1], [], []>} : vector<49x32xbf16>, vector<32x64xbf16>, vector<49x64xf32> -> vector<49x64xf32>
    %c0_86 = arith.constant 0 : index
    %c0_87 = arith.constant 0 : index
    %c0_88 = arith.constant 0 : index
    %196 = vector.load %arg14[%c0_86, %c0_87, %c0_88] : memref<1x1x64xf32, #tpu.memory_space<vmem>>, vector<1x1x64xf32>
    %197 = vector.shape_cast %196 : vector<1x1x64xf32> to vector<1x64xf32>
    %198 = vector.broadcast %197 : vector<1x64xf32> to vector<49x64xf32>
    %199 = arith.addf %195, %198 : vector<49x64xf32>
    %cst_89 = arith.constant 5.000000e-01 : f32
    %200 = vector.broadcast %cst_89 : f32 to vector<49x64xf32>
    %201 = arith.mulf %200, %199 : vector<49x64xf32>
    %cst_90 = arith.constant 0.707106769 : f32
    %202 = vector.broadcast %cst_90 : f32 to vector<49x64xf32>
    %203 = arith.mulf %199, %202 : vector<49x64xf32>
    %cst_91 = arith.constant 0.000000e+00 : f32
    %204 = vector.broadcast %cst_91 : f32 to vector<49x64xf32>
    %205 = arith.cmpf oge, %203, %204 : vector<49x64xf32>
    %cst_92 = arith.constant 1.000000e+00 : f32
    %cst_93 = arith.constant -1.000000e+00 : f32
    %206 = vector.broadcast %cst_92 : f32 to vector<49x64xf32>
    %207 = vector.broadcast %cst_93 : f32 to vector<49x64xf32>
    %208 = arith.select %205, %206, %207 : vector<49x64xi1>, vector<49x64xf32>
    %209 = math.absf %203 : vector<49x64xf32>
    %cst_94 = arith.constant 0.327591091 : f32
    %210 = vector.broadcast %cst_94 : f32 to vector<49x64xf32>
    %211 = arith.mulf %210, %209 : vector<49x64xf32>
    %cst_95 = arith.constant 1.000000e+00 : f32
    %212 = vector.broadcast %cst_95 : f32 to vector<49x64xf32>
    %213 = arith.addf %212, %211 : vector<49x64xf32>
    %cst_96 = arith.constant 1.000000e+00 : f32
    %214 = vector.broadcast %cst_96 : f32 to vector<49x64xf32>
    %215 = arith.divf %214, %213 : vector<49x64xf32>
    %cst_97 = arith.constant 1.06140542 : f32
    %216 = vector.broadcast %cst_97 : f32 to vector<49x64xf32>
    %217 = arith.mulf %216, %215 : vector<49x64xf32>
    %cst_98 = arith.constant -1.45315206 : f32
    %218 = vector.broadcast %cst_98 : f32 to vector<49x64xf32>
    %219 = arith.addf %217, %218 : vector<49x64xf32>
    %220 = arith.mulf %219, %215 : vector<49x64xf32>
    %cst_99 = arith.constant 1.42141378 : f32
    %221 = vector.broadcast %cst_99 : f32 to vector<49x64xf32>
    %222 = arith.addf %220, %221 : vector<49x64xf32>
    %223 = arith.mulf %222, %215 : vector<49x64xf32>
    %cst_100 = arith.constant -0.284496725 : f32
    %224 = vector.broadcast %cst_100 : f32 to vector<49x64xf32>
    %225 = arith.addf %223, %224 : vector<49x64xf32>
    %226 = arith.mulf %225, %215 : vector<49x64xf32>
    %cst_101 = arith.constant 0.254829586 : f32
    %227 = vector.broadcast %cst_101 : f32 to vector<49x64xf32>
    %228 = arith.addf %226, %227 : vector<49x64xf32>
    %229 = arith.mulf %228, %215 : vector<49x64xf32>
    %cst_102 = arith.constant 0.000000e+00 : f32
    %230 = vector.broadcast %cst_102 : f32 to vector<49x64xf32>
    %231 = arith.subf %230, %209 : vector<49x64xf32>
    %232 = arith.mulf %231, %209 : vector<49x64xf32>
    %233 = math.exp %232 : vector<49x64xf32>
    %234 = arith.mulf %229, %233 : vector<49x64xf32>
    %cst_103 = arith.constant 1.000000e+00 : f32
    %235 = vector.broadcast %cst_103 : f32 to vector<49x64xf32>
    %236 = arith.subf %235, %234 : vector<49x64xf32>
    %237 = arith.mulf %208, %236 : vector<49x64xf32>
    %cst_104 = arith.constant 1.000000e+00 : f32
    %238 = vector.broadcast %cst_104 : f32 to vector<49x64xf32>
    %239 = arith.addf %238, %237 : vector<49x64xf32>
    %240 = arith.mulf %201, %239 : vector<49x64xf32>
    %241 = arith.truncf %240 : vector<49x64xf32> to vector<49x64xbf16>
    %c0_105 = arith.constant 0 : index
    %c0_106 = arith.constant 0 : index
    %c0_107 = arith.constant 0 : index
    %242 = vector.load %arg15[%c0_105, %c0_106, %c0_107] : memref<1x64x32xbf16, #tpu.memory_space<vmem>>, vector<1x64x32xbf16>
    %243 = vector.shape_cast %242 : vector<1x64x32xbf16> to vector<64x32xbf16>
    %cst_108 = arith.constant dense<0.000000e+00> : vector<49x32xf32>
    %244 = tpu.matmul %241, %243, %cst_108 {dimension_numbers = #tpu.dot_dimension_numbers<[1], [0], [0], [1], [0, 0, 1, 1], [], []>} : vector<49x64xbf16>, vector<64x32xbf16>, vector<49x32xf32> -> vector<49x32xf32>
    %c0_109 = arith.constant 0 : index
    %c0_110 = arith.constant 0 : index
    %c0_111 = arith.constant 0 : index
    %245 = vector.load %arg16[%c0_109, %c0_110, %c0_111] : memref<1x1x32xf32, #tpu.memory_space<vmem>>, vector<1x1x32xf32>
    %246 = vector.shape_cast %245 : vector<1x1x32xf32> to vector<1x32xf32>
    %247 = vector.broadcast %246 : vector<1x32xf32> to vector<49x32xf32>
    %248 = arith.addf %244, %247 : vector<49x32xf32>
    %249 = arith.addf %248, %165 : vector<49x32xf32>
    %cst_112 = arith.constant -6.550400e+04 : f32
    %cst_113 = arith.constant 6.550400e+04 : f32
    %250 = vector.broadcast %cst_112 : f32 to vector<49x32xf32>
    %251 = arith.maximumf %250, %249 : vector<49x32xf32>
    %252 = vector.broadcast %cst_113 : f32 to vector<49x32xf32>
    %253 = arith.minimumf %252, %251 : vector<49x32xf32>
    %254 = arith.index_cast %arg1 : i32 to index
    %c0_114 = arith.constant 0 : index
    %c0_115 = arith.constant 0 : index
    %255 = vector.load %arg19[%254, %c0_114, %c0_115] : memref<2x49x32xf32, #tpu.memory_space<vmem>>, vector<1x49x32xf32>
    %256 = vector.shape_cast %255 : vector<1x49x32xf32> to vector<49x32xf32>
    %257 = vector.shape_cast %253 : vector<49x32xf32> to vector<1x49x32xf32>
    tpu.vector_store %arg19[%254, %c0_114, %c0_115], %257 {strides = array<i32>} : memref<2x49x32xf32, #tpu.memory_space<vmem>>, vector<1x49x32xf32>,
    %c1_i32 = arith.constant 1 : i32
    %258 = arith.cmpi eq, %arg0, %c1_i32 : i32
    %259 = arith.extui %258 : i1 to i32
    %c0_i32_116 = arith.constant 0 : i32
    %260 = arith.cmpi ne, %259, %c0_i32_116 : i32
    scf.if %260 {
      %c0_117 = arith.constant 0 : index
      %c0_118 = arith.constant 0 : index
      %c0_119 = arith.constant 0 : index
      %261 = vector.load %arg17[%c0_117, %c0_118, %c0_119] : memref<1x49x32xf32, #tpu.memory_space<vmem>>, vector<1x49x32xf32>
      %262 = vector.shape_cast %261 : vector<1x49x32xf32> to vector<49x32xf32>
      %263 = vector.shape_cast %253 : vector<49x32xf32> to vector<1x49x32xf32>
      tpu.vector_store %arg17[%c0_117, %c0_118, %c0_119], %263 {strides = array<i32>} : memref<1x49x32xf32, #tpu.memory_space<vmem>>, vector<1x49x32xf32>,
    } else {
    }
    return
  }
  func.func @transform_0(%arg0: i32, %arg1: i32) -> (i32, i32, i32) {
    %c0_i32 = arith.constant 0 : i32
    %c0_i32_0 = arith.constant 0 : i32
    %c0_i32_1 = arith.constant 0 : i32
    return %arg1, %c0_i32, %c0_i32_0 : i32, i32, i32
  }
  func.func @transform_1(%arg0: i32, %arg1: i32) -> (i32, i32) {
    %c0_i32 = arith.constant 0 : i32
    %c0_i32_0 = arith.constant 0 : i32
    %c0_i32_1 = arith.constant 0 : i32
    return %c0_i32, %c0_i32_0 : i32, i32
  }
  func.func @transform_2(%arg0: i32, %arg1: i32) -> (i32, i32) {
    %c0_i32 = arith.constant 0 : i32
    %c0_i32_0 = arith.constant 0 : i32
    %c0_i32_1 = arith.constant 0 : i32
    return %c0_i32, %c0_i32_0 : i32, i32
  }
  func.func @transform_3(%arg0: i32, %arg1: i32) -> (i32, i32, i32) {
    %c0_i32 = arith.constant 0 : i32
    %c0_i32_0 = arith.constant 0 : i32
    %c0_i32_1 = arith.constant 0 : i32
    return %arg0, %c0_i32, %c0_i32_0 : i32, i32, i32
  }
  func.func @transform_4(%arg0: i32, %arg1: i32) -> (i32, i32, i32) {
    %c0_i32 = arith.constant 0 : i32
    %c0_i32_0 = arith.constant 0 : i32
    %c0_i32_1 = arith.constant 0 : i32
    return %arg0, %c0_i32, %c0_i32_0 : i32, i32, i32
  }
  func.func @transform_5(%arg0: i32, %arg1: i32) -> (i32, i32, i32) {
    %c0_i32 = arith.constant 0 : i32
    %c0_i32_0 = arith.constant 0 : i32
    %c0_i32_1 = arith.constant 0 : i32
    return %arg0, %c0_i32, %c0_i32_0 : i32, i32, i32
  }
  func.func @transform_6(%arg0: i32, %arg1: i32) -> (i32, i32, i32) {
    %c0_i32 = arith.constant 0 : i32
    %c0_i32_0 = arith.constant 0 : i32
    %c0_i32_1 = arith.constant 0 : i32
    return %arg0, %c0_i32, %c0_i32_0 : i32, i32, i32
  }
  func.func @transform_7(%arg0: i32, %arg1: i32) -> (i32, i32, i32) {
    %c0_i32 = arith.constant 0 : i32
    %c0_i32_0 = arith.constant 0 : i32
    %c0_i32_1 = arith.constant 0 : i32
    return %arg0, %c0_i32, %c0_i32_0 : i32, i32, i32
  }
  func.func @transform_8(%arg0: i32, %arg1: i32) -> (i32, i32, i32) {
    %c0_i32 = arith.constant 0 : i32
    %c0_i32_0 = arith.constant 0 : i32
    %c0_i32_1 = arith.constant 0 : i32
    return %arg0, %c0_i32, %c0_i32_0 : i32, i32, i32
  }
  func.func @transform_9(%arg0: i32, %arg1: i32) -> (i32, i32, i32) {
    %c0_i32 = arith.constant 0 : i32
    %c0_i32_0 = arith.constant 0 : i32
    %c0_i32_1 = arith.constant 0 : i32
    return %arg0, %c0_i32, %c0_i32_0 : i32, i32, i32
  }
  func.func @transform_10(%arg0: i32, %arg1: i32) -> (i32, i32, i32) {
    %c0_i32 = arith.constant 0 : i32
    %c0_i32_0 = arith.constant 0 : i32
    %c0_i32_1 = arith.constant 0 : i32
    return %arg0, %c0_i32, %c0_i32_0 : i32, i32, i32
  }
  func.func @transform_11(%arg0: i32, %arg1: i32) -> (i32, i32, i32) {
    %c0_i32 = arith.constant 0 : i32
    %c0_i32_0 = arith.constant 0 : i32
    %c0_i32_1 = arith.constant 0 : i32
    return %arg0, %c0_i32, %c0_i32_0 : i32, i32, i32
  }
  func.func @transform_12(%arg0: i32, %arg1: i32) -> (i32, i32, i32) {
    %c0_i32 = arith.constant 0 : i32
    %c0_i32_0 = arith.constant 0 : i32
    %c0_i32_1 = arith.constant 0 : i32
    return %arg0, %c0_i32, %c0_i32_0 : i32, i32, i32
  }
  func.func @transform_13(%arg0: i32, %arg1: i32) -> (i32, i32, i32) {
    %c0_i32 = arith.constant 0 : i32
    %c0_i32_0 = arith.constant 0 : i32
    %c0_i32_1 = arith.constant 0 : i32
    return %arg0, %c0_i32, %c0_i32_0 : i32, i32, i32
  }
  func.func @transform_14(%arg0: i32, %arg1: i32) -> (i32, i32, i32) {
    %c0_i32 = arith.constant 0 : i32
    %c0_i32_0 = arith.constant 0 : i32
    %c0_i32_1 = arith.constant 0 : i32
    return %arg0, %c0_i32, %c0_i32_0 : i32, i32, i32
  }
  func.func @transform_15(%arg0: i32, %arg1: i32) -> (i32, i32, i32) {
    %c0_i32 = arith.constant 0 : i32
    %c0_i32_0 = arith.constant 0 : i32
    %c0_i32_1 = arith.constant 0 : i32
    return %arg1, %c0_i32, %c0_i32_0 : i32, i32, i32
  }
  func.func @transform_16(%arg0: i32, %arg1: i32) -> (i32, i32, i32, i32, i32) {
    %c0_i32 = arith.constant 0 : i32
    %c0_i32_0 = arith.constant 0 : i32
    %c0_i32_1 = arith.constant 0 : i32
    %c0_i32_2 = arith.constant 0 : i32
    return %arg0, %arg1, %c0_i32, %c0_i32_0, %c0_i32_1 : i32, i32, i32, i32, i32
  }
}

</mosaic_0001>

<bundles_post_ra>
// kernel: transformer_encoder.1
= control target key start
LH: loop header
LB: loop body
LE: loop exit
PB: predicated region body
PF: predicated region fallthrough
CT: control target
= control target key end

     0   :  { %s4044_s21 = smov 0   ;;  %s4046_s22 = smov 0   ;;  %s5360_s0 = inlined_call_operand.vmem [shape: f32[2,49,32], index: 0, kind: input, shape index: {}]   ;;  %s5361_s1 = inlined_call_operand.vmem [shape: f32[49,32], index: 1, kind: input, shape index: {}]   ;;  %s5362_s2 = inlined_call_operand.vmem [shape: f32[49,32], index: 2, kind: input, shape index: {}]   ;;  %s5363_s3 = inlined_call_operand.vmem [shape: f32[2,1,32], index: 3, kind: input, shape index: {}]   ;;  %s5364_s4 = inlined_call_operand.vmem [shape: f32[2,1,32], index: 4, kind: input, shape index: {}]   ;;  %s5365_s5 = inlined_call_operand.vmem [shape: bf16[2,32,160], index: 5, kind: input, shape index: {}]   ;;  %s5366_s6 = inlined_call_operand.vmem [shape: f32[2,1,160], index: 6, kind: input, shape index: {}]   ;;  %s5367_s7 = inlined_call_operand.vmem [shape: bf16[2,32,32], index: 7, kind: input, shape index: {}]   ;;  %s5368_s8 = inlined_call_operand.vmem [shape: f32[2,1,32], index: 8, kind: input, shape index: {}]   ;;  %s5369_s9 = inlined_call_operand.vmem [shape: f32[2,1,32], index: 9, kind: input, shape index: {}]   ;;  %s5370_s10 = inlined_call_operand.vmem [shape: f32[2,1,32], index: 10, kind: input, shape index: {}]   ;;  %s5371_s11 = inlined_call_operand.vmem [shape: bf16[2,32,64], index: 11, kind: input, shape index: {}]   ;;  %s5372_s12 = inlined_call_operand.vmem [shape: f32[2,1,64], index: 12, kind: input, shape index: {}]   ;;  %s5373_s13 = inlined_call_operand.vmem [shape: bf16[2,64,32], index: 13, kind: input, shape index: {}]   ;;  %s5374_s14 = inlined_call_operand.vmem [shape: f32[2,1,32], index: 14, kind: input, shape index: {}]   ;;  %s5375_s15 = inlined_call_operand.vmem [shape: f32[2,49,32], index: 15, kind: output, shape index: {0}]   ;;  %s5376_s16 = inlined_call_operand.vmem [shape: bf16[2,2,4,49,49], index: 16, kind: output, shape index: {1}]  }
   0x1   :  { %5386 = sst [smem:[#allocation12_spill]] %s5360_s0  ;;  %s4048_s23 = smov 0  }
   0x2   :  { %5387 = sst [smem:[#allocation13_spill]] %s5361_s1  ;;  %s4050_s24 = smov 0  }
   0x3   :  { %5388 = sst [smem:[#allocation14_spill]] %s5362_s2  ;;  %s4052_s25 = smov 0  }
   0x4   :  { %5389 = sst [smem:[#allocation15_spill]] %s5363_s3 }
   0x5   :  { %5390 = sst [smem:[#allocation16_spill]] %s5364_s4 }
   0x6   :  { %5391 = sst [smem:[#allocation17_spill]] %s5365_s5 }
   0x7   :  { %5392 = sst [smem:[#allocation18_spill]] %s5366_s6 }
   0x8   :  { %5393 = sst [smem:[#allocation19_spill]] %s5367_s7 }
   0x9   :  { %5394 = sst [smem:[#allocation20_spill]] %s5371_s11 }
   0xa   :  { %5395 = sst [smem:[#allocation21_spill]] %s5376_s16 }
   0xb LB: > { %5396 = sst [smem:[#allocation3_spill]] %s3923_s21  ;;  %s36_s26 = sadd.s32 1, %s3931_s23  ;;  %s3939_s25 = sphi %s4052_s25, %s27_s25   ;;  %s3935_s24 = sphi %s4050_s24, %s5442_s24   ;;  %s3931_s23 = sphi %s4048_s23, %s5441_s23   ;;  %s3927_s22 = sphi %s4046_s22, %s5440_s22   ;;  %s3923_s21 = sphi %s4044_s21, %s5439_s21  }
   0xc   : > { %5397 = sst [smem:[#allocation4_spill]] %s3927_s22  ;;  %s39_s27 = sadd.s32 1, %s3935_s24 }
   0xd   : > { %5398 = sst [smem:[#allocation5_spill]] %s3931_s23  ;;  %p37_p0 = scmp.ge.s32.totalorder %s36_s26, 2 }
   0xe   : > { %5399 = sst [smem:[#allocation6_spill]] %s3935_s24  ;;  %p3431_p1 = scmp.ge.s32.totalorder %s3939_s25, 1 }
   0xf   : > { %5400 = sst [smem:[#allocation7_spill]] %s3939_s25  ;;  %p584_p2 = scmp.lt.s32.totalorder %s3939_s25, 5 }
  0x10   : > { %s5444_s26 = smov (%p37_p0, %s36_s26), 0  ;;  %s5446_s27 = smov (!%p37_p0, %s39_s27), %s3935_s24 }
  0x11   : > { %5401 = sst [smem:[#allocation8_spill]] %s5444_s26  ;;  %p585_p3 = pnand %p3431_p1, %p584_p2 }
  0x12   : > { %p41_p4 = scmp.ge.s32.totalorder %s5446_s27, 2 }
  0x13   : > { %588 = sbr.rel (%p585_p3) target bundleno = 3229 (0xc9d), region = 80 }
  0x14   : > { %s5448_s27 = smov (%p41_p4, %s5446_s27), 0 }
  0x15   : > { %5402 = sst [smem:[#allocation9_spill]] %s5448_s27 }
  0x18   : > { %p688_p5 = scmp.lt.s32.totalorder %s3923_s21, 1  ;;  %p693_p6 = scmp.lt.s32.totalorder %s3927_s22, 1 }
  0x19   : > { %s5405_s23 = sld [smem:[#allocation12_spill]] }
  0x1a   : > { %s689_s28 = scalar_select %p688_p5, %s3923_s21, 1 }
  0x1b   : > { %s4082_s29 = scalar_select %p693_p6, %s3927_s22, 1 }
  0x1c   : > { %s3611_s30 = smul.u32 56, %s689_s28  ;;  %s5406_s5 = sld [smem:[#allocation17_spill]] }
  0x1d   : > { %s3593_s2 = sshll.u32 %s4082_s29, 5  ;;  %s3435_s16 = sshll.u32 %s4082_s29, 1 }
  0x1e   : > { %s5408_s6 = sld [smem:[#allocation18_spill]]  ;;  %s3594_s19 = sshll.u32 %s4082_s29, 4 }
  0x1f   : > { %s4095_s25 = scalar_lea.vmem %s5405_s23, %s3611_s30  ;;  %s5409_s7 = sld [smem:[#allocation19_spill]] }
  0x20   : > { %s5411_s11 = sld [smem:[#allocation20_spill]]  ;;  %s4139_s26 = scalar_lea.vmem %s5373_s13, %s3593_s2 }
  0x21   : > { %s737_s21 = scalar_lea.vmem %s5374_s14, %s4082_s29  ;;  %s4148_s0 = scalar_lea.vmem %s5375_s15, %s3611_s30 }
  0x22   : > { %s4101_s22 = scalar_lea.vmem %s5406_s5, %s3593_s2  ;;  %s5413_s2 = sld [smem:[#allocation4_spill]] }
  0x23   : > { %5407 = sst [smem:[#allocation10_spill]] %s4101_s22 }
  0x24   : > { %s4107_s18 = scalar_lea.vmem %s5408_s6, %s3435_s16  ;;  %s3613_s16 = smul.u32 56, %s4082_s29 }
  0x25   : > { %s4113_s24 = scalar_lea.vmem %s5409_s7, %s3594_s19  ;;  %s5412_s7 = sld [smem:[#allocation21_spill]] }
  0x26   : > { %5410 = sst [smem:[#allocation11_spill]] %s4113_s24  ;;  %s4130_s6 = scalar_lea.vmem %s5411_s11, %s3594_s19 }
  0x27   : > { %s3612_s19 = smul.u32 28, %s689_s28 }
  0x28   : > { %p3444_p7 = scmp.ne.s32.totalorder %s5413_s2, 0 }
  0x29   : > { %s749_s17 = sadd.s32 %s3613_s16, %s3612_s19  ;;  %s5414_s24 = sld [smem:[#allocation3_spill]] (!%p3444_p7) }
  0x2a   : > { %s3443_s4 = sshll.u32 %s749_s17, 2  ;;  %756 = sbr.rel (%p3444_p7) target bundleno = 57 (0x39), region = 84 }
  0x2b   : > { %s4154_s11 = scalar_lea.vmem %s5412_s7, %s3443_s4 }
  0x2f   : > { %v757_v0 = vld [vmem:[%s4095_s25] sm:$0xff]  ;;  %s764_s28 = smul.u32 56, %s5414_s24  ;;  %vm766_vm0 = vcmask 261120   ;;  %v758_v1 = vld [vmem:[%s4095_s25 + $0x8] sm:$0xff]  ;;  %v759_v2 = vld [vmem:[%s4095_s25 + $0x10] sm:$0xff]  ;;  %vm773_vm1 = vcmask 253952  }
  0x30   : > { %v760_v3 = vld [vmem:[%s4095_s25 + $0x18] sm:$0xff]  ;;  %v761_v4 = vld [vmem:[%s4095_s25 + $0x20] sm:$0xff]  ;;  %v762_v5 = vld [vmem:[%s4095_s25 + $0x28] sm:$0xff] }
  0x31   : > { %s765_s30 = scalar_lea.vmem [#allocation2], %s764_s28  ;;  %v763_v6 = vld [vmem:[%s4095_s25 + $0x30] sm:$0x1] }
  0x32   : > { %767 = vst.msk [vmem:[%s765_s30] sm:$0xff] %vm766_vm0, %v757_v0 }
  0x33   : > { %768 = vst.msk [vmem:[%s765_s30 + $0x8] sm:$0xff] %vm766_vm0, %v758_v1 }
  0x34   : > { %769 = vst.msk [vmem:[%s765_s30 + $0x10] sm:$0xff] %vm766_vm0, %v759_v2 }
  0x35   : > { %770 = vst.msk [vmem:[%s765_s30 + $0x18] sm:$0xff] %vm766_vm0, %v760_v3 }
  0x36   : > { %771 = vst.msk [vmem:[%s765_s30 + $0x20] sm:$0xff] %vm766_vm0, %v761_v4 }
  0x37   : > { %772 = vst.msk [vmem:[%s765_s30 + $0x28] sm:$0xff] %vm766_vm0, %v762_v5 }
  0x38   : > { %774 = vst.msk [vmem:[%s765_s30 + $0x30] sm:$0x1] %vm773_vm1, %v763_v6 }
  0x39 PF: > { %s5415_s4 = sld [smem:[#allocation3_spill]]  ;;  %vm833_vm2 = vcmask 253952   ;;  %vm814_vm3 = vcmask 261120   ;;  %v3941_v25 = vmov 32.0   ;;  %s3945_s30 = smov 64  }
  0x3a   : > { %3724 = vrcp.f32 %v3941_v25  ;;  %s5416_s25 = sld [smem:[#allocation10_spill]]  ;;  %s3950_s3 = smov 112  }
  0x3b   : > { %s5419_s5 = sld [smem:[#allocation15_spill]]  ;;  %s3951_s1 = smov 104  }
  0x3c   : > { %s5423_s17 = sld [smem:[#allocation16_spill]]  ;;  %s3955_s16 = smov 8  }
  0x3d   : > { %s5427_s24 = sld [smem:[#allocation13_spill]] }
  0x3e   : > { %s5429_s19 = sld [smem:[#allocation14_spill]] }
  0x3f   : > { %s775_s7 = smul.u32 56, %s5415_s4  ;;  %s3947_s4 = smov 120  }
  0x40   : > { %v3725_v26 = vpop.eup %3724  ;;  %v3462_v1 = vld [vmem:[%s5416_s25 + $0x10] sm:$0xf]  ;;  %v3600_v2 = vld [vmem:[%s5416_s25 + $0x14] sm:$0xf0]  ;;  %v3454_v6 = vld [vmem:[%s5416_s25] sm:$0xf] }
  0x41   : > { %s4166_s23 = scalar_lea.vmem [#allocation2], %s775_s7  ;;  %v838_v27 = vmul.f32 32.0, %v3725_v26  ;;  %vm842_vm4 = vweird.f32 %v3725_v26  ;;  %v3463_v3 = vor.u32 %v3600_v2, %v3462_v1  ;;  %s5420_s22 = scalar_lea.vmem %s5419_s5, %s4082_s29 }
  0x42   : > { %v783_v7 = vld [vmem:[%s4166_s23 + $0x30] sm:$0x1]  ;;  %v781_v8 = vld [vmem:[%s4166_s23 + $0x20] sm:$0xff]  ;;  %v778_v11 = vld [vmem:[%s4166_s23 + $0x8] sm:$0xff]  ;;  %s5424_s27 = scalar_lea.vmem %s5423_s17, %s4082_s29  ;;  %s3942_s7 = smov 32  }
  0x43   : > { %v3451_v9 = vclamps-f32 %v783_v7, 65504.0  ;;  %v3449_v10 = vclamps-f32 %v781_v8, 65504.0  ;;  %v782_v12 = vld [vmem:[%s4166_s23 + $0x28] sm:$0xff]  ;;  %v777_v13 = vld [vmem:[%s4166_s23] sm:$0xff]  ;;  %v3446_v14 = vclamps-f32 %v778_v11, 65504.0  ;;  %v779_v22 = vld [vmem:[%s4166_s23 + $0x10] sm:$0xff]  ;;  %3609 = vmatpush.bf16.msra.mxu1 %v3463_v3  ;;  %1049 = vmatpush.bf16.msra.mxu0 %v3463_v3  ;;  %s5428_s28 = smov %s5427_s24 }
  0x44   : > { %v3450_v18 = vclamps-f32 %v782_v12, 65504.0  ;;  %v3445_v19 = vclamps-f32 %v777_v13, 65504.0  ;;  %v3447_v23 = vclamps-f32 %v779_v22, 65504.0  ;;  %v839_v28 = vsub.f32 1.0, %v838_v27  ;;  %v780_v37 = vld [vmem:[%s4166_s23 + $0x18] sm:$0xff]  ;;  %s3952_s5 = smov 56  }
  0x45   : > { %v834_v15 = vsel %vm833_vm2, %v3451_v9, 0.0  ;;  %v827_v16 = vsel %vm814_vm3, %v3449_v10, 0.0  ;;  %v818_v17 = vsel %vm814_vm3, %v3446_v14, 0.0  ;;  %v3448_v42 = vclamps-f32 %v780_v37, 65504.0  ;;  %v3598_v7 = vld [vmem:[%s5416_s25 + $0x4] sm:$0xf0] }
  0x46   : > { %835 = vadd.xlane.f32.xlu1 %v834_v15  ;;  %828 = vadd.xlane.f32.xlu0 %v827_v16  ;;  %v830_v20 = vsel %vm814_vm3, %v3450_v18, 0.0  ;;  %v815_v21 = vsel %vm814_vm3, %v3445_v19, 0.0  ;;  %v821_v24 = vsel %vm814_vm3, %v3447_v23, 0.0  ;;  %v840_v29 = vmul.f32 %v3725_v26, %v839_v28  ;;  %s3956_s17 = smov 16   ;;  %s5432_s20 = sld [smem:[#allocation11_spill]] }
  0x47   : > { %819 = vadd.xlane.f32.xlu2 %v818_v17  ;;  %v824_v49 = vsel %vm814_vm3, %v3448_v42, 0.0 }
  0x48   : > { %v841_v30 = vadd.f32 %v3725_v26, %v840_v29 }
  0x4a   : > { %v4180_v31 = vsel %vm842_vm4, %v3725_v26, %v841_v30 }
  0x4e   : > { %831 = vadd.xlane.f32.xlu0 %v830_v20  ;;  %816 = vadd.xlane.f32.xlu1 %v815_v21 }
  0x56   : > { %822 = vadd.xlane.f32.xlu1 %v821_v24 }
  0xb9   : > { %v836_v32 = vpop.xlane.xlu1 %835  ;;  %v829_v33 = vpop.xlane.xlu0 %828 }
  0xba   : > { %v848_v34 = vmul.f32 %v4180_v31, %v829_v33  ;;  %v820_v38 = vpop.xlane.xlu2 %819  ;;  %v850_v43 = vmul.f32 %v4180_v31, %v836_v32 }
  0xbb   : > { %v845_v46 = vmul.f32 %v4180_v31, %v820_v38 }
  0xbc   : > { %v4183_v35 = vsub.f32 %v3449_v10, %v848_v34  ;;  %v4198_v50 = vsub.f32 %v3451_v9, %v850_v43  ;;  %v3455_v9 = vor.u32 %v3598_v7, %v3454_v6  ;;  %v3464_v43 = vld [vmem:[%s5416_s25 + $0x18] sm:$0xf0]  ;;  %v4265_v7 = vld [vmem:[%s5424_s27] ss:$0 sm:$0xff]  ;;  %s3957_s27 = smov 24  }
  0xbd   : > { %v4202_v52 = vsub.f32 %v3446_v14, %v845_v46 }
  0xbe   : > { %v862_v36 = vmul.f32 %v4183_v35, %v4183_v35  ;;  %v864_v57 = vmul.f32 %v4198_v50, %v4198_v50  ;;  %3610 = vmatpush.bf16.msra.mxu1 %v3455_v9  ;;  %1050 = vmatpush.bf16.msra.mxu0 %v3455_v9 }
  0xbf   : > { %v859_v58 = vmul.f32 %v4202_v52, %v4202_v52 }
  0xc0   : > { %v877_v39 = vsel %vm814_vm3, %v862_v36, 0.0  ;;  %v883_v60 = vsel %vm833_vm2, %v864_v57, 0.0 }
  0xc1   : > { %v832_v40 = vpop.xlane.xlu0 %831  ;;  %878 = vadd.xlane.f32.xlu2 %v877_v39  ;;  %v817_v41 = vpop.xlane.xlu1 %816  ;;  %v868_v61 = vsel %vm814_vm3, %v859_v58, 0.0 }
  0xc2   : > { %v849_v44 = vmul.f32 %v4180_v31, %v832_v40  ;;  %v844_v45 = vmul.f32 %v4180_v31, %v817_v41 }
  0xc4   : > { %v4193_v47 = vsub.f32 %v3450_v18, %v849_v44  ;;  %v4195_v48 = vsub.f32 %v3445_v19, %v844_v45  ;;  %v3597_v44 = vld [vmem:[%s5416_s25 + $0x4] sm:$0xf] }
  0xc6   : > { %v863_v51 = vmul.f32 %v4193_v47, %v4193_v47  ;;  %v858_v53 = vmul.f32 %v4195_v48, %v4195_v48 }
  0xc8   : > { %v880_v54 = vsel %vm814_vm3, %v863_v51, 0.0  ;;  %v865_v55 = vsel %vm814_vm3, %v858_v53, 0.0  ;;  %v3456_v51 = vld [vmem:[%s5416_s25 + $0x8] sm:$0xf0] }
  0xc9   : > { %881 = vadd.xlane.f32.xlu0 %v880_v54  ;;  %825 = vadd.xlane.f32.xlu2 %v824_v49  ;;  %v823_v56 = vpop.xlane.xlu1 %822 }
  0xca   : > { %866 = vadd.xlane.f32.xlu1 %v865_v55  ;;  %v846_v59 = vmul.f32 %v4180_v31, %v823_v56  ;;  %v3459_v55 = vor.u32 %v3597_v44, %v3456_v51 }
  0xcc   : > { %v4215_v62 = vsub.f32 %v3447_v23, %v846_v59  ;;  %v4252_v59 = vld [vmem:[%s5420_s22] ss:$0 sm:$0xff]  ;;  %s3954_s22 = smov 40  }
  0xce   : > { %v860_v63 = vmul.f32 %v4215_v62, %v4215_v62 }
  0xd0   : > { %v871_v0 = vsel %vm814_vm3, %v860_v63, 0.0 }
  0xd1   : > { %884 = vadd.xlane.f32.xlu0 %v883_v60  ;;  %869 = vadd.xlane.f32.xlu2 %v868_v61 }
  0xd9   : > { %872 = vadd.xlane.f32.xlu0 %v871_v0 }
 0x134   : > { %v879_v4 = vpop.xlane.xlu2 %878 }
 0x135   : > { %v890_v5 = vmul.f32 %v879_v4, %v4180_v31 }
 0x137   : > { %v897_v8 = vadd.f32 1e-05, %v890_v5 }
 0x139   : > { %3726 = vrsqrt.f32 %v897_v8  ;;  %vm946_vm6 = vweird.f32 %v897_v8 }
 0x13c   : > { %v882_v10 = vpop.xlane.xlu0 %881  ;;  %v826_v11 = vpop.xlane.xlu2 %825 }
 0x13d   : > { %v891_v12 = vmul.f32 %v882_v10, %v4180_v31  ;;  %v847_v13 = vmul.f32 %v4180_v31, %v826_v11  ;;  %v867_v14 = vpop.xlane.xlu1 %866 }
 0x13e   : > { %v886_v15 = vmul.f32 %v867_v14, %v4180_v31 }
 0x13f   : > { %v3727_v16 = vpop.eup %3726  ;;  %v898_v17 = vadd.f32 1e-05, %v891_v12  ;;  %v4228_v18 = vsub.f32 %v3448_v42, %v847_v13  ;;  %v3599_v42 = vld [vmem:[%s5416_s25 + $0x14] sm:$0xf]  ;;  %v794_v12 = vld [vmem:[%s5429_s19 + $0x18] sm:$0xff]  ;;  %s3943_s25 = smov 96  }
 0x140   : > { %v941_v19 = vmul.f32 %v3727_v16, %v897_v8  ;;  %v893_v20 = vadd.f32 1e-05, %v886_v15  ;;  %vm947_vm5 = vweird.f32 %v3727_v16  ;;  %v3467_v49 = vor.u32 %v3599_v42, %v3464_v43 }
 0x141   : > { %3728 = vrsqrt.f32 %v898_v17  ;;  %v861_v21 = vmul.f32 %v4228_v18, %v4228_v18  ;;  %vm4235_vm7 = vmor %vm946_vm6, %vm947_vm5  ;;  %vm956_vm8 = vweird.f32 %v898_v17 }
 0x142   : > { %v942_v22 = vmul.f32 %v3727_v16, %v941_v19  ;;  %3730 = vrsqrt.f32 %v893_v20  ;;  %1077 = vmatpush.bf16.msrb.mxu1 %v3467_v49  ;;  %vm906_vm11 = vweird.f32 %v893_v20 }
 0x143   : > { %v874_v23 = vsel %vm814_vm3, %v861_v21, 0.0 }
 0x144   : > { %v943_v24 = vmul.f32 0.5, %v942_v22  ;;  %v885_v25 = vpop.xlane.xlu0 %884  ;;  %v870_v26 = vpop.xlane.xlu2 %869  ;;  %875 = vadd.xlane.f32.xlu1 %v874_v23  ;;  %v4284_v22 = vld [vmem:[%s5427_s24 + $0x20] sm:$0xff]  ;;  %s3944_s24 = smov 88  }
 0x145   : > { %v892_v27 = vmul.f32 %v885_v25, %v4180_v31  ;;  %v887_v28 = vmul.f32 %v870_v26, %v4180_v31 }
 0x146   : > { %v944_v29 = vsub.f32 1.5, %v943_v24  ;;  %1078 = vmatpush.bf16.msrb.mxu1 %v3459_v55  ;;  %v4291_v24 = vld [vmem:[%s5428_s28 + $0x30] sm:$0x1] }
 0x147   : > { %v3729_v30 = vpop.eup %3728  ;;  %v899_v32 = vadd.f32 1e-05, %v892_v27  ;;  %v894_v33 = vadd.f32 1e-05, %v887_v28  ;;  %1195 = vrot.lane.b32.xlu2 %v4291_v24, %s3942_s7 }
 0x148   : > { %v3731_v34 = vpop.eup %3730  ;;  %v945_v36 = vmul.f32 %v3727_v16, %v944_v29  ;;  %v951_v37 = vmul.f32 %v3729_v30, %v898_v17  ;;  %vm957_vm9 = vweird.f32 %v3729_v30 }
 0x149   : > { %v901_v38 = vmul.f32 %v3731_v34, %v893_v20  ;;  %3732 = vrsqrt.f32 %v899_v32  ;;  %vm958_vm10 = vmor %vm956_vm8, %vm957_vm9  ;;  %vm907_vm12 = vweird.f32 %v3731_v34  ;;  %vm966_vm14 = vweird.f32 %v899_v32 }
 0x14a   : > { %v952_v40 = vmul.f32 %v3729_v30, %v951_v37  ;;  %3734 = vrsqrt.f32 %v894_v33  ;;  %v949_v45 = vsel %vm4235_vm7, %v3727_v16, %v945_v36  ;;  %vm4254_vm13 = vmor %vm906_vm11, %vm907_vm12  ;;  %vm916_vm0 = vweird.f32 %v894_v33 }
 0x14b   : > { %v902_v41 = vmul.f32 %v3731_v34, %v901_v38  ;;  %v974_v58 = vmul.f32 %v949_v45, %v4183_v35  ;;  %vm1318_vm12 = vcmask 64512  }
 0x14c   : > { %v953_v46 = vmul.f32 0.5, %v952_v40 }
 0x14d   : > { %v903_v53 = vmul.f32 0.5, %v902_v41  ;;  %v984_v6 = vmul.f32 %v4252_v59, %v974_v58 }
 0x14e   : > { %v954_v54 = vsub.f32 1.5, %v953_v46 }
 0x14f   : > { %v3733_v56 = vpop.eup %3732  ;;  %v904_v57 = vsub.f32 1.5, %v903_v53  ;;  %v994_v14 = vadd.f32 %v4265_v7, %v984_v6  ;;  %v4320_v53 = vld [vmem:[%s5428_s28 + $0x10] sm:$0xff] }
 0x150   : > { %v3735_v60 = vpop.eup %3734  ;;  %v955_v61 = vmul.f32 %v3729_v30, %v954_v54  ;;  %v961_v63 = vmul.f32 %v3733_v56, %v899_v32  ;;  %vm967_vm15 = vweird.f32 %v3733_v56 }
 0x151   : > { %v905_v0 = vmul.f32 %v3731_v34, %v904_v57  ;;  %v911_v1 = vmul.f32 %v3735_v60, %v894_v33  ;;  %vm917_vm1 = vweird.f32 %v3735_v60  ;;  %vm4270_vm4 = vmor %vm966_vm14, %vm967_vm15  ;;  %vm1371_vm14 = vcmask 400384  }
 0x152   : > { %v959_v2 = vsel %vm958_vm10, %v3729_v30, %v955_v61  ;;  %v962_v4 = vmul.f32 %v3733_v56, %v961_v63  ;;  %vm918_vm5 = vmor %vm916_vm0, %vm917_vm1  ;;  %vm1390_vm15 = vcmask 393216   ;;  %vm1478_vm0 = vcmask 396288  }
 0x153   : > { %v975_v35 = vmul.f32 %v959_v2, %v4193_v47  ;;  %v912_v5 = vmul.f32 %v3735_v60, %v911_v1  ;;  %v909_v9 = vsel %vm4254_vm13, %v3731_v34, %v905_v0  ;;  %v873_v34 = vpop.xlane.xlu0 %872  ;;  %vm1550_vm13 = vcmask 1040384  }
 0x154   : > { %v963_v8 = vmul.f32 0.5, %v962_v4  ;;  %v970_v17 = vmul.f32 %v909_v9, %v4195_v48  ;;  %v888_v36 = vmul.f32 %v873_v34, %v4180_v31  ;;  %v1005_v4 = vld [vmem:[%s4107_s18] sm:$0x3]  ;;  %s3953_s18 = smov 48   ;;  %vm1486_vm1 = vsmask.f32 256 }
 0x155   : > { %v913_v10 = vmul.f32 0.5, %v912_v5  ;;  %v985_v47 = vmul.f32 %v4252_v59, %v975_v35  ;;  %v4331_v5 = vperm.slane %v1005_v4, 0 }
 0x156   : > { %v964_v11 = vsub.f32 1.5, %v963_v8  ;;  %v980_v25 = vmul.f32 %v4252_v59, %v970_v17  ;;  %v895_v37 = vadd.f32 1e-05, %v888_v36  ;;  %v791_v17 = vld [vmem:[%s5429_s19] sm:$0xff] }
 0x157   : > { %v914_v13 = vsub.f32 1.5, %v913_v10  ;;  %v995_v15 = vadd.f32 %v4265_v7, %v985_v47 }
 0x158   : > { %v965_v16 = vmul.f32 %v3733_v56, %v964_v11  ;;  %v990_v28 = vadd.f32 %v4265_v7, %v980_v25  ;;  %3736 = vrsqrt.f32 %v895_v37  ;;  %vm926_vm6 = vweird.f32 %v895_v37  ;;  %v4359_v25 = vld [vmem:[%s5429_s19 + $0x28] sm:$0xff] }
 0x159   : > { %v915_v19 = vmul.f32 %v3735_v60, %v914_v13  ;;  %v4277_v20 = vpack.c.bf16 %v995_v15, %v994_v14  ;;  %v1008_v11 = vperm.slane %v1005_v4, 1 }
 0x15a   : > { %v969_v21 = vsel %vm4270_vm4, %v3733_v56, %v965_v16  ;;  %vm4770_vm4 = vmand %vm1390_vm15, %vm1486_vm1 }
 0x15b   : > { %v919_v23 = vsel %vm918_vm5, %v3735_v60, %v915_v19  ;;  %3470 = vmatmul.msk.bf16.vlgmr.msra.gmra.mxu1 %vm814_vm3, %v4277_v20  ;;  %v976_v26 = vmul.f32 %v969_v21, %v4198_v50  ;;  %v795_v19 = vld [vmem:[%s5429_s19 + $0x20] sm:$0xff]  ;;  %vm2440_vm5 = vcmask 130048  }
 0x15c   : > { %v971_v48 = vmul.f32 %v919_v23, %v4202_v52  ;;  %v4307_v52 = vld [vmem:[%s5428_s28 + $0x28] sm:$0xff] }
 0x15d   : > { %1191 = vrot.lane.b32.xlu1 %v4284_v22, %s3942_s7  ;;  %v986_v30 = vmul.f32 %v4252_v59, %v976_v26  ;;  %1193 = vrot.lane.b32.xlu2 %v4307_v52, %s3942_s7 }
 0x15e   : > { %v981_v27 = vmul.f32 %v4252_v59, %v971_v48  ;;  %v3737_v38 = vpop.eup %3736 }
 0x15f   : > { %v996_v50 = vadd.f32 %v4265_v7, %v986_v30  ;;  %v921_v39 = vmul.f32 %v3737_v38, %v895_v37  ;;  %vm927_vm7 = vweird.f32 %v3737_v38 }
 0x160   : > { %v991_v29 = vadd.f32 %v4265_v7, %v981_v27  ;;  %vm928_vm8 = vmor %vm926_vm6, %vm927_vm7  ;;  %vm2448_vm6 = vcmask 195584  }
 0x161   : > { %v1000_v33 = vpack.c.bf16 %v996_v50, %v996_v50  ;;  %v922_v40 = vmul.f32 %v3737_v38, %v921_v39  ;;  %v797_v50 = vld [vmem:[%s5429_s19 + $0x30] sm:$0x1]  ;;  %v4378_v39 = vld [vmem:[%s5428_s28 + $0x18] sm:$0xff] }
 0x162   : > { %v997_v32 = vpack.c.bf16 %v991_v29, %v990_v28  ;;  %v792_v29 = vld [vmem:[%s5429_s19 + $0x8] sm:$0xff] }
 0x163   : > { %v923_v44 = vmul.f32 0.5, %v922_v40  ;;  %v4383_v40 = vld [vmem:[%s5428_s28 + $0x8] sm:$0xff] }
 0x164   : > { %3468 = vmatmul.msk.bf16.vlgmr.msra.gmra.mxu0 %vm814_vm3, %v997_v32 }
 0x165   : > { %v924_v45 = vsub.f32 1.5, %v923_v44  ;;  %1187 = vrot.lane.b32.xlu1 %v4320_v53, %s3942_s7 }
 0x167   : > { %v925_v49 = vmul.f32 %v3737_v38, %v924_v45 }
 0x169   : > { %v929_v55 = vsel %vm928_vm8, %v3737_v38, %v925_v49 }
 0x16a   : > { %v972_v58 = vmul.f32 %v929_v55, %v4215_v62 }
 0x16b   : > { %3471 = vmatmul.msk.bf16.gmra.mxu1 %vm814_vm3, %v1000_v33 }
 0x16c   : > { %v982_v0 = vmul.f32 %v4252_v59, %v972_v58 }
 0x16e   : > { %v992_v2 = vadd.f32 %v4265_v7, %v982_v0 }
 0x17b   : > { %3472 = vmatmul.msk.bf16.vlgmr.msrb.gmra.mxu1 %vm814_vm3, %v997_v32  ;;  %v793_v32 = vld [vmem:[%s5429_s19 + $0x10] sm:$0xff] }
 0x1a1   : > { %v1196_v44 = vpop.permute.xlu2 %1195 }
 0x1b7   : > { %v876_v41 = vpop.xlane.xlu1 %875  ;;  %v1194_v45 = vpop.permute.xlu2 %1193 }
 0x1b8   : > { %v889_v42 = vmul.f32 %v876_v41, %v4180_v31  ;;  %v4392_v41 = vld [vmem:[%s5428_s28] sm:$0xff] }
 0x1ba   : > { %v896_v43 = vadd.f32 1e-05, %v889_v42 }
 0x1bc   : > { %3738 = vrsqrt.f32 %v896_v43  ;;  %vm936_vm10 = vweird.f32 %v896_v43 }
 0x1c2   : > { %v3739_v46 = vpop.eup %3738 }
 0x1c3   : > { %v931_v51 = vmul.f32 %v3739_v46, %v896_v43  ;;  %vm937_vm9 = vweird.f32 %v3739_v46 }
 0x1c4   : > { %vm938_vm11 = vmor %vm936_vm10, %vm937_vm9 }
 0x1c5   : > { %v932_v54 = vmul.f32 %v3739_v46, %v931_v51 }
 0x1c7   : > { %v933_v56 = vmul.f32 0.5, %v932_v54 }
 0x1c9   : > { %v934_v57 = vsub.f32 1.5, %v933_v56 }
 0x1cb   : > { %v935_v60 = vmul.f32 %v3739_v46, %v934_v57 }
 0x1cd   : > { %v939_v61 = vsel %vm938_vm11, %v3739_v46, %v935_v60 }
 0x1ce   : > { %v973_v63 = vmul.f32 %v939_v61, %v4228_v18 }
 0x1cf   : > { %v1192_v56 = vpop.permute.xlu1 %1191 }
 0x1d0   : > { %v983_v1 = vmul.f32 %v4252_v59, %v973_v63 }
 0x1d2   : > { %v993_v3 = vadd.f32 %v4265_v7, %v983_v1 }
 0x1d4   : > { %v998_v35 = vpack.c.bf16 %v993_v3, %v992_v2 }
 0x1d6   : > { %3469 = vmatmul.msk.bf16.gmra.mxu0 %vm814_vm3, %v998_v35  ;;  %3473 = vmatmul.msk.bf16.gmra.mxu1 %vm814_vm3, %v998_v35 }
 0x1d8   : > { %v1062_v62 = vpop.f32.mrf.mxu1 }
 0x1d9   : > { %v4336_v6 = vadd.f32 %v1062_v62, %v4331_v5  ;;  %v1188_v62 = vpop.permute.xlu1 %1187 }
 0x1db   : > { %v1208_v58 = vmul.f32 %v1192_v56, %v4336_v6 }
 0x1e0   : > { %v1064_v18 = vpop.f32.mrf.mxu1 }
 0x1e1   : > { %v4402_v49 = vadd.f32 %v1064_v18, %v4331_v5  ;;  %v1052_v51 = vpop.f32.mrf.mxu0 }
 0x1e2   : > { %v4407_v35 = vadd.f32 %v1052_v51, %v4331_v5 }
 0x1e3   : > { %v1209_v55 = vmul.f32 %v1194_v45, %v4402_v49 }
 0x1e6   : > { %3474 = vmatmul.msk.bf16.gmra.mxu1 %vm814_vm3, %v4277_v20 }
 0x1e8   : > { %v1067_v59 = vpop.f32.mrf.mxu1 }
 0x1e9   : > { %v4341_v8 = vadd.f32 %v1067_v59, %v4331_v5  ;;  %v1054_v1 = vpop.f32.mrf.mxu0 }
 0x1f0   : > { %v1069_v7 = vpop.f32.mrf.mxu1 }
 0x1f6   : > { %3475 = vmatmul.msk.bf16.gmra.mxu1 %vm814_vm3, %v1000_v33 }
 0x1f8   : > { %v1080_v9 = vpop.f32.mrf.mxu1 }
 0x1f9   : > { %v1081_v16 = vadd.f32 %v1080_v9, %v1008_v11 }
 0x1fb   : > { %v1211_v23 = vmul.f32 %v1081_v16, %v791_v17 }
 0x200   : > { %v1082_v10 = vpop.f32.mrf.mxu1 }
 0x201   : > { %v1083_v42 = vadd.f32 %v1082_v10, %v1008_v11 }
 0x203   : > { %v1212_v43 = vmul.f32 %v1083_v42, %v792_v29 }
 0x253   : > { %v1085_v47 = vpop.f32.mrf.mxu1  ;;  %v1057_v9 = vpop.f32.mrf.mxu0 }
 0x254   : > { %v1086_v30 = vadd.f32 %v1085_v47, %v1008_v11  ;;  %v1210_v47 = vmul.f32 %v1196_v44, %v4341_v8 }
 0x256   : > { %v1213_v36 = vmul.f32 %v1086_v30, %v793_v32 }
 0x25b   : > { %v1087_v13 = vpop.f32.mrf.mxu1  ;;  %v1059_v16 = vpop.f32.mrf.mxu0 }
 0x25c   : > { %v1088_v14 = vadd.f32 %v1087_v13, %v1008_v11  ;;  %v4417_v13 = vadd.f32 %v1057_v9, %v4331_v5 }
 0x25e   : > { %v1214_v15 = vmul.f32 %v1088_v14, %v794_v12  ;;  %v1269_v9 = vpack.c.bf16 %v4417_v13, %v4417_v13 }
 0x260   : > { %1231 = vrot.lane.b32.xlu1 %v1214_v15, %s3942_s7 }
 0x263   : > { %v1090_v20 = vpop.f32.mrf.mxu1 }
 0x264   : > { %v1091_v21 = vadd.f32 %v1090_v20, %v1008_v11  ;;  %v4422_v20 = vadd.f32 %v1059_v16, %v4331_v5 }
 0x266   : > { %v1215_v48 = vmul.f32 %v1091_v21, %v795_v19 }
 0x268   : > { %1233 = vrot.lane.b32.xlu0 %v1215_v48, %s3942_s7  ;;  %1225 = vrot.lane.b32.xlu1 %v1211_v23, %s3942_s7 }
 0x26b   : > { %v1092_v26 = vpop.f32.mrf.mxu1 }
 0x26c   : > { %v1093_v27 = vadd.f32 %v1092_v26, %v1008_v11 }
 0x26e   : > { %v1216_v28 = vmul.f32 %v1093_v27, %v4359_v25 }
 0x270   : > { %1235 = vrot.lane.b32.xlu2 %v1216_v28, %s3942_s7  ;;  %1115 = vrot.lane.b32.xlu1 %v792_v29, %s3943_s25 }
 0x273   : > { %v1095_v33 = vpop.f32.mrf.mxu1 }
 0x274   : > { %v1096_v34 = vadd.f32 %v1095_v33, %v1008_v11 }
 0x276   : > { %v1217_v37 = vmul.f32 %v1096_v34, %v797_v50 }
 0x278   : > { %1237 = vrot.lane.b32.xlu0 %v1217_v37, %s3942_s7  ;;  %1229 = vrot.lane.b32.xlu2 %v1213_v36, %s3942_s7 }
 0x27b   : > { %v1097_v38 = vpop.f32.mrf.mxu1 }
 0x280   : > { %1189 = vrot.lane.b32.xlu0 %v4378_v39, %s3942_s7  ;;  %1185 = vrot.lane.b32.xlu2 %v4383_v40, %s3942_s7 }
 0x288   : > { %1183 = vrot.lane.b32.xlu0 %v4392_v41, %s3942_s7  ;;  %1113 = vrot.lane.b32.xlu2 %v791_v17, %s3943_s25  ;;  %v1206_v17 = vmul.f32 %v1188_v62, %v4417_v13 }
 0x290   : > { %1227 = vrot.lane.b32.xlu0 %v1212_v43, %s3942_s7  ;;  %1119 = vrot.lane.b32.xlu2 %v794_v12, %s3943_s25  ;;  %v1055_v43 = vadd.f32 %v1054_v1, %v4331_v5  ;;  %v1272_v1 = vpack.c.bf16 %v4402_v49, %v4402_v49 }
 0x298   : > { %1117 = vrot.lane.b32.xlu0 %v793_v32, %s3943_s25  ;;  %1121 = vrot.lane.b32.xlu2 %v795_v19, %s3943_s25 }
 0x2ca   : > { %v1236_v46 = vpop.permute.xlu2 %1235 }
 0x2cb   : > { %v1251_v57 = vadd.f32 %v1236_v46, %v1209_v55 }
 0x2cd   : > { %v1265_v63 = vpack.c.bf16 %v1251_v57, %v1251_v57 }
 0x2cf   : > { %v1304_v3 = vunpack.c.l.b16 %v1265_v63 }
 0x2d2   : > { %v1230_v54 = vpop.permute.xlu2 %1229  ;;  %v1232_v10 = vpop.permute.xlu1 %1231 }
 0x2d3   : > { %v1248_v21 = vadd.f32 %v1230_v54, %v1206_v17 }
 0x2d5   : > { %v1262_v30 = vpack.c.bf16 %v1248_v21, %v1248_v21 }
 0x2d7   : > { %v1301_v33 = vunpack.c.l.b16 %v1262_v30  ;;  %v1099_v30 = vmul.f32 %v4407_v35, %v4392_v41 }
 0x2da   : > { %v1234_v60 = vpop.permute.xlu0 %1233  ;;  %v1186_v61 = vpop.permute.xlu2 %1185 }
 0x2db   : > { %v1250_v0 = vadd.f32 %v1234_v60, %v1208_v58  ;;  %v1226_v29 = vpop.permute.xlu1 %1225  ;;  %v1205_v45 = vmul.f32 %v1186_v61, %v1055_v43 }
 0x2dd   : > { %v1264_v2 = vpack.c.bf16 %v1250_v0, %v1250_v0 }
 0x2df   : > { %v1303_v4 = vunpack.c.l.b16 %v1264_v2 }
 0x2e1   : > { %v4409_v18 = vpack.c.b16 %v1304_v3, %v1303_v4  ;;  %v1271_v3 = vpack.c.bf16 %v4336_v6, %v4336_v6  ;;  %v1521_v4 = vunpack.c.l.b16 %v1272_v1 }
 0x2e2   : > { %v1114_v59 = vpop.permute.xlu2 %1113 }
 0x2e3   : > { %v1134_v7 = vmul.f32 %v1114_v59, %v4407_v35  ;;  %1314 = vrot.lane.b32.xlu0 %v4409_v18, %s3943_s25  ;;  %v1116_v42 = vpop.permute.xlu1 %1115  ;;  %v1520_v62 = vunpack.c.l.b16 %v1271_v3  ;;  %v1270_v59 = vpack.c.bf16 %v4422_v20, %v4422_v20 }
 0x2e4   : > { %v1135_v46 = vmul.f32 %v1116_v42, %v1055_v43 }
 0x2e5   : > { %1148 = vrot.lane.b32.xlu2 %v1134_v7, %s3942_s7  ;;  %v4458_v7 = vpack.c.b16 %v1521_v4, %v1520_v62 }
 0x2ea   : > { %v1238_v11 = vpop.permute.xlu0 %1237  ;;  %v1120_v12 = vpop.permute.xlu2 %1119 }
 0x2eb   : > { %v1252_v14 = vadd.f32 %v1238_v11, %v1210_v47  ;;  %v1137_v5 = vmul.f32 %v1120_v12, %v4422_v20  ;;  %v1518_v47 = vunpack.c.l.b16 %v1269_v9  ;;  %v1268_v11 = vpack.c.bf16 %v1055_v43, %v1055_v43 }
 0x2ed   : > { %v1266_v15 = vpack.c.bf16 %v1252_v14, %v1252_v14  ;;  %1125 = vrot.lane.b32.xlu2 %v797_v50, %s3943_s25  ;;  %v1267_v14 = vpack.c.bf16 %v4407_v35, %v4407_v35 }
 0x2ef   : > { %v1305_v19 = vunpack.c.l.b16 %v1266_v15  ;;  %v1517_v15 = vunpack.c.l.b16 %v1268_v11  ;;  %v1516_v16 = vunpack.c.l.b16 %v1267_v14  ;;  %v3949_v11 = vmov 0  }
 0x2f0   : > { %v4517_v14 = vsel %vm1550_vm13, 65535, %v3949_v11 }
 0x2f1   : > { %v4424_v23 = vpack.c.b16 %v1305_v19, %v1305_v19  ;;  %v4470_v17 = vpack.c.b16 %v1517_v15, %v1516_v16 }
 0x2f2   : > { %v1190_v48 = vpop.permute.xlu0 %1189  ;;  %v1122_v26 = vpop.permute.xlu2 %1121 }
 0x2f3   : > { %v1207_v27 = vmul.f32 %v1190_v48, %v4422_v20  ;;  %v1138_v28 = vmul.f32 %v1122_v26, %v4336_v6  ;;  %1316 = vrot.lane.b32.xlu1 %v4424_v23, %s3943_s25 }
 0x2f5   : > { %v1249_v32 = vadd.f32 %v1232_v10, %v1207_v27  ;;  %1156 = vrot.lane.b32.xlu2 %v1138_v28, %s3942_s7  ;;  %v1519_v10 = vunpack.c.l.b16 %v1270_v59 }
 0x2f7   : > { %v1263_v50 = vpack.c.bf16 %v1249_v32, %v1249_v32  ;;  %v4464_v12 = vpack.c.b16 %v1519_v10, %v1518_v47 }
 0x2f9   : > { %v1302_v34 = vunpack.c.l.b16 %v1263_v50 }
 0x2fa   : > { %v1184_v36 = vpop.permute.xlu0 %1183 }
 0x2fb   : > { %v4431_v37 = vpack.c.b16 %v1302_v34, %v1301_v33  ;;  %v1204_v38 = vmul.f32 %v1184_v36, %v4407_v35  ;;  %1123 = vrot.lane.b32.xlu1 %v4359_v25, %s3943_s25  ;;  %v1100_v34 = vmul.f32 %v1055_v43, %v4383_v40 }
 0x2fd   : > { %1596 = vrot.lane.b32.xlu2 %v4409_v18, %s3944_s24  ;;  %1312 = vrot.lane.b32.xlu0 %v4431_v37, %s3943_s25  ;;  %v1246_v44 = vadd.f32 %v1226_v29, %v1204_v38  ;;  %v1273_v29 = vpack.c.bf16 %v4341_v8, %v4341_v8 }
 0x2ff   : > { %v1260_v54 = vpack.c.bf16 %v1246_v44, %v1246_v44  ;;  %v1522_v50 = vunpack.c.l.b16 %v1273_v29 }
 0x301   : > { %v1299_v25 = vunpack.c.l.b16 %v1260_v54 }
 0x302   : > { %v1228_v51 = vpop.permute.xlu0 %1227 }
 0x303   : > { %v1247_v55 = vadd.f32 %v1228_v51, %v1205_v45  ;;  %1150 = vrot.lane.b32.xlu1 %v1135_v46, %s3942_s7  ;;  %v4488_v45 = vpack.c.b16 %v1522_v50, %v1522_v50 }
 0x305   : > { %v1261_v56 = vpack.c.bf16 %v1247_v55, %v1247_v55  ;;  %v1101_v55 = vmul.f32 %v4417_v13, %v4320_v53 }
 0x307   : > { %v1300_v57 = vunpack.c.l.b16 %v1261_v56 }
 0x309   : > { %v4442_v58 = vpack.c.b16 %v1300_v57, %v1299_v25  ;;  %v1102_v25 = vmul.f32 %v4422_v20, %v4378_v39 }
 0x30a   : > { %v1118_v60 = vpop.permute.xlu0 %1117 }
 0x30b   : > { %v1136_v63 = vmul.f32 %v1118_v60, %v4417_v13  ;;  %1310 = vrot.lane.b32.xlu0 %v4442_v58, %s3943_s25  ;;  %s3948_s25 = smov 72   ;;  %v1103_v13 = vmul.f32 %v4336_v6, %v4284_v22  ;;  %v1105_v22 = vmul.f32 %v4341_v8, %v4291_v24 }
 0x30d   : > { %1152 = vrot.lane.b32.xlu1 %v1136_v63, %s3942_s7 }
 0x313   : > { %1154 = vrot.lane.b32.xlu0 %v1137_v5, %s3942_s7 }
 0x33f   : > { %v1149_v61 = vpop.permute.xlu2 %1148 }
 0x340   : > { %v1169_v32 = vadd.f32 %v1149_v61, %v1099_v30 }
 0x342   : > { %v1253_v38 = vpack.c.bf16 %v1169_v32, %v1169_v32 }
 0x344   : > { %v1281_v41 = vunpack.c.l.b16 %v1253_v38 }
 0x347   : > { %v1126_v0 = vpop.permute.xlu2 %1125 }
 0x348   : > { %v1140_v2 = vmul.f32 %v1126_v0, %v4341_v8 }
 0x34a   : > { %1160 = vrot.lane.b32.xlu0 %v1140_v2, %s3942_s7  ;;  %v1104_v2 = vmul.f32 %v4402_v49, %v4307_v52 }
 0x34f   : > { %v1157_v39 = vpop.permute.xlu2 %1156 }
 0x350   : > { %v1173_v20 = vadd.f32 %v1157_v39, %v1103_v13 }
 0x352   : > { %1531 = vrot.lane.b32.xlu0 %v4458_v7, %s3945_s30  ;;  %v1257_v4 = vpack.c.bf16 %v1173_v20, %v1173_v20 }
 0x354   : > { %v1285_v10 = vunpack.c.l.b16 %v1257_v4 }
 0x355   : > { %v1315_v48 = vpop.permute.xlu0 %1314 }
 0x356   : > { %v1338_v28 = vsel %vm1318_vm12, %v1315_v48, 0 }
 0x35a   : > { %1529 = vrot.lane.b32.xlu0 %v4464_v12, %s3945_s30 }
 0x362   : > { %1527 = vrot.lane.b32.xlu0 %v4470_v17, %s3945_s30 }
 0x365   : > { %v1317_v19 = vpop.permute.xlu1 %1316 }
 0x366   : > { %v1341_v21 = vsel %vm1318_vm12, %v1317_v19, 0 }
 0x367   : > { %1347 = vmatpush.bf16.xpose.msra.mxu2 %v1341_v21 }
 0x36a   : > { %1594 = vrot.lane.b32.xlu0 %v4431_v37, %s3944_s24 }
 0x36d   : > { %v1124_v26 = vpop.permute.xlu1 %1123 }
 0x36e   : > { %v1139_v27 = vmul.f32 %v1124_v26, %v4402_v49 }
 0x36f   : > { %1348 = vmatpush.bf16.xpose.msra.mxu2 %v1338_v28  ;;  %v1313_v33 = vpop.permute.xlu0 %1312 }
 0x370   : > { %1158 = vrot.lane.b32.xlu1 %v1139_v27, %s3942_s7  ;;  %v1335_v44 = vsel %vm1318_vm12, %v1313_v33, 0  ;;  %s3946_s7 = smov 80  }
 0x372   : > { %1592 = vrot.lane.b32.xlu0 %v4442_v58, %s3944_s24 }
 0x375   : > { %v1151_v36 = vpop.permute.xlu1 %1150 }
 0x376   : > { %v1170_v42 = vadd.f32 %v1151_v36, %v1100_v34 }
 0x377   : > { %1349 = vmatpush.bf16.xpose.msra.mxu2 %v1335_v44 }
 0x378   : > { %v1254_v46 = vpack.c.bf16 %v1170_v42, %v1170_v42  ;;  %1533 = vrot.lane.b32.xlu1 %v4488_v45, %s3945_s30 }
 0x37a   : > { %v1282_v35 = vunpack.c.l.b16 %v1254_v46  ;;  %1851 = vrot.lane.b32.xlu0 %v4409_v18, %s3946_s7 }
 0x37c   : > { %v4494_v51 = vpack.c.b16 %v1282_v35, %v1281_v41 }
 0x37d   : > { %v1311_v40 = vpop.permute.xlu0 %1310 }
 0x37e   : > { %1584 = vrot.lane.b32.xlu2 %v4494_v51, %s3947_s4  ;;  %v1332_v43 = vsel %vm1318_vm12, %v1311_v40, 0 }
 0x37f   : > { %1350 = vmatpush.bf16.xpose.msra.mxu2 %v1332_v43  ;;  %v1153_v54 = vpop.permute.xlu1 %1152 }
 0x380   : > { %v1171_v56 = vadd.f32 %v1153_v54, %v1101_v55 }
 0x382   : > { %v1255_v60 = vpack.c.bf16 %v1171_v56, %v1171_v56 }
 0x384   : > { %v1283_v61 = vunpack.c.l.b16 %v1255_v60 }
 0x385   : > { %v1155_v57 = vpop.permute.xlu0 %1154 }
 0x386   : > { %v1172_v63 = vadd.f32 %v1155_v57, %v1102_v25  ;;  %3476 = vmatmul.msk.bf16.vlgmr.msra.gmra.mxu2 %vm1318_vm12, %v4494_v51 }
 0x388   : > { %v1256_v5 = vpack.c.bf16 %v1172_v63, %v1172_v63 }
 0x38a   : > { %v1284_v0 = vunpack.c.l.b16 %v1256_v5 }
 0x38c   : > { %v4505_v1 = vpack.c.b16 %v1284_v0, %v1283_v61 }
 0x38e   : > { %1586 = vrot.lane.b32.xlu1 %v4505_v1, %s3947_s4 }
 0x396   : > { %2108 = vrot.lane.b32.xlu1 %v4424_v23, %s3948_s25  ;;  %3477 = vmatmul.msk.bf16.gmra.mxu2 %vm1318_vm12, %v4505_v1 }
 0x3bc   : > { %v1161_v53 = vpop.permute.xlu0 %1160 }
 0x3bd   : > { %v1175_v6 = vadd.f32 %v1161_v53, %v1105_v22 }
 0x3bf   : > { %v1259_v19 = vpack.c.bf16 %v1175_v6, %v1175_v6 }
 0x3c1   : > { %v1287_v21 = vunpack.c.l.b16 %v1259_v19 }
 0x3c3   : > { %v4530_v24 = vpack.c.b16 %v1287_v21, %v1287_v21 }
 0x3c4   : > { %v1532_v59 = vpop.permute.xlu0 %1531 }
 0x3cc   : > { %v1530_v49 = vpop.permute.xlu0 %1529 }
 0x3d4   : > { %v1528_v48 = vpop.permute.xlu0 %1527 }
 0x3dc   : > { %v1595_v36 = vpop.permute.xlu0 %1594 }
 0x3dd   : > { %v1616_v54 = vsel %vm1318_vm12, %v1595_v36, 0 }
 0x3e2   : > { %v1159_v3 = vpop.permute.xlu1 %1158 }
 0x3e3   : > { %v1174_v62 = vadd.f32 %v1159_v3, %v1104_v2 }
 0x3e4   : > { %v1593_v44 = vpop.permute.xlu0 %1592 }
 0x3e5   : > { %v1258_v9 = vpack.c.bf16 %v1174_v62, %v1174_v62  ;;  %v1613_v25 = vsel %vm1318_vm12, %v1593_v44, 0 }
 0x3e7   : > { %v1286_v47 = vunpack.c.l.b16 %v1258_v9 }
 0x3e9   : > { %v4519_v15 = vpack.c.b16 %v1286_v47, %v1285_v10 }
 0x3ea   : > { %v1534_v16 = vpop.permute.xlu1 %1533 }
 0x3eb   : > { %1588 = vrot.lane.b32.xlu2 %v4519_v15, %s3947_s4  ;;  %3478 = vmatmul.msk.bf16.gmra.mxu2 %vm1318_vm12, %v4519_v15  ;;  %v1554_v52 = vand.u32 %v4517_v14, %v1534_v16 }
 0x3ec   : > { %v1852_v43 = vpop.permute.xlu0 %1851 }
 0x3ed   : > { %1560 = vmatpush.bf16.msra.mxu3 %v1554_v52  ;;  %v1874_v55 = vsel %vm1318_vm12, %v1852_v43, 0 }
 0x3f1   : > { %1561 = vmatpush.bf16.msra.mxu3 %v1532_v59 }
 0x3f3   : > { %1598 = vrot.lane.b32.xlu2 %v4424_v23, %s3944_s24  ;;  %s5433_s24 = scalar_lea.vmem %s5368_s8, %s4082_s29 }
 0x3f5   : > { %1562 = vmatpush.bf16.msra.mxu3 %v1530_v49 }
 0x3f9   : > { %1563 = vmatpush.bf16.msra.mxu3 %v1528_v48 }
 0x3fb   : > { %1853 = vrot.lane.b32.xlu2 %v4424_v23, %s3946_s7  ;;  %3479 = vmatmul.msk.bf16.gmra.mxu2 %vm1318_vm12, %v4530_v24  ;;  %v1597_v23 = vpop.permute.xlu2 %1596 }
 0x3fc   : > { %v1619_v41 = vsel %vm1318_vm12, %v1597_v23, 0 }
 0x400   : > { %v1587_v40 = vpop.permute.xlu1 %1586 }
 0x403   : > { %v1585_v33 = vpop.permute.xlu2 %1584 }
 0x408   : > { %v2109_v56 = vpop.permute.xlu1 %2108 }
 0x409   : > { %v1352_v8 = vpop.f32.mrf.mxu2  ;;  %v2132_v57 = vsel %vm1318_vm12, %v2109_v56, 0 }
 0x40a   : > { %v1372_v30 = vsel %vm1371_vm14, %v1352_v8, -inf }
 0x411   : > { %v1354_v26 = vpop.f32.mrf.mxu2 }
 0x412   : > { %v1375_v27 = vsel %vm1371_vm14, %v1354_v26, -inf }
 0x413   : > { %1376 = vmax.xlane.f32.xlu1 %v1375_v27 }
 0x419   : > { %v1357_v28 = vpop.f32.mrf.mxu2 }
 0x41a   : > { %v1378_v29 = vsel %vm1371_vm14, %v1357_v28, -inf }
 0x41b   : > { %1379 = vmax.xlane.f32.xlu0 %v1378_v29 }
 0x421   : > { %v1359_v32 = vpop.f32.mrf.mxu2 }
 0x422   : > { %v1381_v50 = vsel %vm1371_vm14, %v1359_v32, -inf }
 0x424   : > { %1373 = vmax.xlane.f32.xlu2 %v1372_v30 }
 0x42c   : > { %1382 = vmax.xlane.f32.xlu2 %v1381_v50 }
 0x445   : > { %v1589_v34 = vpop.permute.xlu2 %1588 }
 0x44d   : > { %v1599_v38 = vpop.permute.xlu2 %1598 }
 0x44e   : > { %v1622_v42 = vsel %vm1318_vm12, %v1599_v38, 0 }
 0x44f   : > { %1628 = vmatpush.bf16.xpose.msrb.mxu0 %v1622_v42 }
 0x455   : > { %v1854_v46 = vpop.permute.xlu2 %1853 }
 0x456   : > { %v1877_v35 = vsel %vm1318_vm12, %v1854_v46, 0 }
 0x457   : > { %1629 = vmatpush.bf16.xpose.msrb.mxu0 %v1619_v41  ;;  %1883 = vmatpush.bf16.xpose.msrb.mxu3 %v1877_v35 }
 0x45f   : > { %1630 = vmatpush.bf16.xpose.msrb.mxu0 %v1616_v54  ;;  %1884 = vmatpush.bf16.xpose.msrb.mxu3 %v1874_v55 }
 0x467   : > { %1631 = vmatpush.bf16.xpose.msrb.mxu0 %v1613_v25 }
 0x46e   : > { %v1362_v60 = vpop.f32.mrf.mxu2  ;;  %3484 = vmatmul.msk.bf16.vlgmr.msrb.gmra.mxu0 %vm1318_vm12, %v1585_v33 }
 0x46f   : > { %2138 = vmatpush.bf16.xpose.msra.mxu0 %v2132_v57  ;;  %v1384_v63 = vsel %vm1371_vm14, %v1362_v60, -inf }
 0x470   : > { %1385 = vmax.xlane.f32.xlu1 %v1384_v63 }
 0x476   : > { %v4549_v5 = vpop.f32.mrf.mxu2 }
 0x477   : > { %v1387_v61 = vsel %vm1371_vm14, %v4549_v5, -inf }
 0x478   : > { %1388 = vmax.xlane.f32.xlu0 %v1387_v61 }
 0x47e   : > { %v4553_v0 = vpop.f32.mrf.mxu2  ;;  %3485 = vmatmul.msk.bf16.gmra.mxu0 %vm1318_vm12, %v1587_v40 }
 0x47f   : > { %v1391_v53 = vsel %vm1390_vm15, %v4553_v0, -inf }
 0x480   : > { %1392 = vmax.xlane.f32.xlu2 %v1391_v53 }
 0x486   : > { %v1369_v39 = vpop.f32.mrf.mxu2  ;;  %v1377_v20 = vpop.xlane.xlu1 %1376 }
 0x487   : > { %v1395_v3 = vsub.f32 %v1354_v26, %v1377_v20 }
 0x489   : > { %2106 = vrot.lane.b32.xlu1 %v4409_v18, %s3948_s25  ;;  %v1403_v59 = vmul.f32 1.442695, %v1395_v3 }
 0x48c   : > { %1847 = vrot.lane.b32.xlu0 %v4442_v58, %s3946_s7 }
 0x48e   : > { %3486 = vmatmul.msk.bf16.gmra.mxu0 %vm1318_vm12, %v1589_v34  ;;  %v1380_v62 = vpop.xlane.xlu0 %1379 }
 0x48f   : > { %v1396_v9 = vsub.f32 %v1357_v28, %v1380_v62 }
 0x491   : > { %v1405_v18 = vmul.f32 1.442695, %v1396_v9 }
 0x497   : > { %v1374_v13 = vpop.xlane.xlu2 %1373 }
 0x498   : > { %1849 = vrot.lane.b32.xlu2 %v4431_v37, %s3946_s7  ;;  %v1394_v2 = vsub.f32 %v1352_v8, %v1374_v13  ;;  %s5434_s7 = scalar_lea.vmem %s5369_s9, %s4082_s29 }
 0x49a   : > { %v1401_v4 = vmul.f32 1.442695, %v1394_v2 }
 0x49c   : > { %3740 = vpow2.f32 %v1401_v4 }
 0x49d   : > { %3742 = vpow2.f32 %v1403_v59 }
 0x49e   : > { %3744 = vpow2.f32 %v1405_v18 }
 0x49f   : > { %v1383_v10 = vpop.xlane.xlu2 %1382 }
 0x4a0   : > { %v1397_v11 = vsub.f32 %v1359_v32, %v1383_v10 }
 0x4a2   : > { %v4565_v47 = vpop.eup %3740  ;;  %v1407_v52 = vmul.f32 1.442695, %v1397_v11 }
 0x4a3   : > { %v4567_v16 = vpop.eup %3742  ;;  %v1415_v22 = vsel %vm1371_vm14, %v4565_v47, 0.0 }
 0x4a4   : > { %v1418_v6 = vsel %vm1371_vm14, %v4567_v16, 0.0  ;;  %v4573_v49 = vpop.eup %3744  ;;  %3746 = vpow2.f32 %v1407_v52 }
 0x4a5   : > { %v1421_v19 = vsel %vm1371_vm14, %v4573_v49, 0.0 }
 0x4aa   : > { %v4577_v21 = vpop.eup %3746 }
 0x4ab   : > { %v1424_v48 = vsel %vm1371_vm14, %v4577_v21, 0.0 }
 0x4b3   : > { %1416 = vadd.xlane.f32.xlu1 %v1415_v22 }
 0x4b6   : > { %1419 = vadd.xlane.f32.xlu0 %v1418_v6 }
 0x4bb   : > { %1422 = vadd.xlane.f32.xlu1 %v1421_v19 }
 0x4c1   : > { %1425 = vadd.xlane.f32.xlu2 %v1424_v48 }
 0x4ca   : > { %1839 = vrot.lane.b32.xlu0 %v4494_v51, %s3950_s3 }
 0x4d2   : > { %1841 = vrot.lane.b32.xlu0 %v4505_v1, %s3950_s3 }
 0x4d4   : > { %2104 = vrot.lane.b32.xlu1 %v4431_v37, %s3948_s25 }
 0x4d9   : > { %1590 = vrot.lane.b32.xlu2 %v4530_v24, %s3947_s4 }
 0x4dc   : > { %2094 = vrot.lane.b32.xlu1 %v4494_v51, %s3951_s1 }
 0x4e1   : > { %2102 = vrot.lane.b32.xlu2 %v4442_v58, %s3948_s25 }
 0x4e3   : > { %v1386_v8 = vpop.xlane.xlu1 %1385 }
 0x4e4   : > { %1843 = vrot.lane.b32.xlu1 %v4519_v15, %s3950_s3  ;;  %v1398_v26 = vsub.f32 %v1362_v60, %v1386_v8 }
 0x4e6   : > { %v1409_v37 = vmul.f32 1.442695, %v1398_v26 }
 0x4e8   : > { %3748 = vpow2.f32 %v1409_v37 }
 0x4e9   : > { %2096 = vrot.lane.b32.xlu2 %v4505_v1, %s3951_s1 }
 0x4eb   : > { %v4592_v27 = vpop.f32.mrf.mxu0  ;;  %v4602_v58 = vpop.xlane.xlu0 %1388 }
 0x4ec   : > { %2100 = vrot.lane.b32.xlu1 %v4530_v24, %s3951_s1  ;;  %v1652_v59 = vsel %vm1371_vm14, %v4592_v27, -inf }
 0x4ee   : > { %v4600_v29 = vpop.eup %3748 }
 0x4ef   : > { %v1427_v1 = vsel %vm1371_vm14, %v4600_v29, 0.0 }
 0x4f1   : > { %1845 = vrot.lane.b32.xlu2 %v4530_v24, %s3950_s3  ;;  %s5435_s3 = scalar_lea.vmem %s5370_s10, %s4082_s29 }
 0x4f3   : > { %v4596_v28 = vpop.f32.mrf.mxu0  ;;  %v4598_v51 = vpop.xlane.xlu2 %1392 }
 0x4f4   : > { %v1655_v44 = vsel %vm1371_vm14, %v4596_v28, -inf }
 0x4fb   : > { %v1850_v30 = vpop.permute.xlu2 %1849  ;;  %v4606_v32 = vpop.f32.mrf.mxu0 }
 0x4fc   : > { %v2107_v50 = vpop.permute.xlu1 %2106  ;;  %1428 = vadd.xlane.f32.xlu0 %v1427_v1  ;;  %v1871_v23 = vsel %vm1318_vm12, %v1850_v30, 0  ;;  %v1658_v42 = vsel %vm1371_vm14, %v4606_v32, -inf }
 0x4fd   : > { %v2129_v24 = vsel %vm1318_vm12, %v2107_v50, 0  ;;  %1885 = vmatpush.bf16.xpose.msrb.mxu3 %v1871_v23 }
 0x4fe   : > { %2139 = vmatpush.bf16.xpose.msra.mxu0 %v2129_v24  ;;  %v1848_v33 = vpop.permute.xlu0 %1847 }
 0x4ff   : > { %v1868_v34 = vsel %vm1318_vm12, %v1848_v33, 0 }
 0x503   : > { %v4611_v36 = vpop.f32.mrf.mxu0 }
 0x504   : > { %v1661_v8 = vsel %vm1371_vm14, %v4611_v36, -inf }
 0x505   : > { %1886 = vmatpush.bf16.xpose.msrb.mxu3 %v1868_v34 }
 0x50b   : > { %v4613_v38 = vpop.f32.mrf.mxu0 }
 0x50c   : > { %v1664_v35 = vsel %vm1371_vm14, %v4613_v38, -inf }
 0x510   : > { %2098 = vrot.lane.b32.xlu0 %v4519_v15, %s3951_s1 }
 0x513   : > { %v4620_v46 = vpop.f32.mrf.mxu0 }
 0x514   : > { %v1667_v41 = vsel %vm1371_vm14, %v4620_v46, -inf }
 0x516   : > { %1659 = vmax.xlane.f32.xlu1 %v1658_v42 }
 0x51a   : > { %1656 = vmax.xlane.f32.xlu2 %v1655_v44 }
 0x51e   : > { %1668 = vmax.xlane.f32.xlu1 %v1667_v41 }
 0x522   : > { %1665 = vmax.xlane.f32.xlu2 %v1664_v35 }
 0x526   : > { %v1417_v40 = vpop.xlane.xlu1 %1416 }
 0x527   : > { %3750 = vrcp.f32 %v1417_v40 }
 0x529   : > { %v1420_v15 = vpop.xlane.xlu0 %1419 }
 0x52a   : > { %3752 = vrcp.f32 %v1420_v15 }
 0x52d   : > { %v3751_v43 = vpop.eup %3750 }
 0x52e   : > { %v1443_v54 = vmul.f32 %v3751_v43, %v1417_v40  ;;  %v1423_v55 = vpop.xlane.xlu1 %1422 }
 0x52f   : > { %3754 = vrcp.f32 %v1423_v55 }
 0x530   : > { %v3753_v56 = vpop.eup %3752  ;;  %v1450_v25 = vsub.f32 2.0, %v1443_v54 }
 0x531   : > { %v1444_v57 = vmul.f32 %v3753_v56, %v1420_v15 }
 0x532   : > { %v1457_v60 = vmul.f32 %v3751_v43, %v1450_v25 }
 0x533   : > { %v1451_v63 = vsub.f32 2.0, %v1444_v57 }
 0x534   : > { %v1464_v61 = vmul.f32 %v4565_v47, %v1457_v60  ;;  %v1426_v53 = vpop.xlane.xlu2 %1425 }
 0x535   : > { %v3755_v39 = vpop.eup %3754  ;;  %v1458_v13 = vmul.f32 %v3753_v56, %v1451_v63  ;;  %3756 = vrcp.f32 %v1426_v53 }
 0x536   : > { %v1471_v20 = vpack.c.bf16 %v1464_v61, %v1464_v61  ;;  %v1445_v2 = vmul.f32 %v3755_v39, %v1423_v55 }
 0x537   : > { %v1465_v3 = vmul.f32 %v4567_v16, %v1458_v13 }
 0x538   : > { %1479 = vst.msk [vmem:[%s4154_s11] sm:$0xf] %vm1478_vm0, %v1471_v20  ;;  %v1452_v4 = vsub.f32 2.0, %v1445_v2  ;;  %v1498_v18 = vunpack.c.l.b16 %v1471_v20 }
 0x539   : > { %v1472_v62 = vpack.c.bf16 %v1465_v3, %v1465_v3 }
 0x53a   : > { %v1459_v9 = vmul.f32 %v3755_v39, %v1452_v4  ;;  %1653 = vmax.xlane.f32.xlu0 %v1652_v59 }
 0x53b   : > { %v3757_v10 = vpop.eup %3756  ;;  %1480 = vst.msk [vmem:[%s4154_s11 + $0x4] sm:$0xf] %vm1478_vm0, %v1472_v62  ;;  %v1499_v47 = vunpack.c.l.b16 %v1472_v62 }
 0x53c   : > { %v1466_v11 = vmul.f32 %v4573_v49, %v1459_v9  ;;  %v1446_v22 = vmul.f32 %v3757_v10, %v1426_v53  ;;  %v1591_v16 = vpop.permute.xlu2 %1590  ;;  %v1399_v9 = vsub.f32 %v4549_v5, %v4602_v58 }
 0x53d   : > { %3487 = vmatmul.msk.bf16.gmra.mxu0 %vm1318_vm12, %v1591_v16  ;;  %v1505_v52 = vpack.c.b16 %v1499_v47, %v1498_v18 }
 0x53e   : > { %v1473_v6 = vpack.c.bf16 %v1466_v11, %v1466_v11  ;;  %v1453_v19 = vsub.f32 2.0, %v1446_v22 }
 0x53f   : > { %3480 = vmatmul.msk.bf16.vlgmr.msra.gmra.mxu3 %vm1371_vm14, %v1505_v52 }
 0x540   : > { %1481 = vst.msk [vmem:[%s4154_s11 + $0x8] sm:$0xf] %vm1478_vm0, %v1473_v6  ;;  %v1460_v48 = vmul.f32 %v3757_v10, %v1453_v19  ;;  %v1500_v50 = vunpack.c.l.b16 %v1473_v6  ;;  %v1411_v10 = vmul.f32 1.442695, %v1399_v9 }
 0x542   : > { %v1467_v26 = vmul.f32 %v4577_v21, %v1460_v48  ;;  %1662 = vmax.xlane.f32.xlu0 %v1661_v8  ;;  %v4648_v21 = vpop.permute.xlu0 %1839 }
 0x544   : > { %v1474_v37 = vpack.c.bf16 %v1467_v26, %v1467_v26  ;;  %v2103_v23 = vpop.permute.xlu2 %2102 }
 0x545   : > { %v2123_v33 = vsel %vm1318_vm12, %v2103_v23, 0 }
 0x546   : > { %1482 = vst.msk [vmem:[%s4154_s11 + $0xc] sm:$0xf] %vm1478_vm0, %v1474_v37  ;;  %v2105_v49 = vpop.permute.xlu1 %2104  ;;  %v1501_v1 = vunpack.c.l.b16 %v1474_v37 }
 0x547   : > { %v2126_v30 = vsel %vm1318_vm12, %v2105_v49, 0 }
 0x548   : > { %2140 = vmatpush.bf16.xpose.msra.mxu0 %v2126_v30  ;;  %v1506_v24 = vpack.c.b16 %v1501_v1, %v1500_v50 }
 0x54a   : > { %v4650_v44 = vpop.permute.xlu0 %1841 }
 0x54c   : > { %v2097_v42 = vpop.permute.xlu2 %2096 }
 0x54e   : > { %v2095_v34 = vpop.permute.xlu1 %2094 }
 0x54f   : > { %3481 = vmatmul.msk.bf16.gmra.mxu3 %vm1371_vm14, %v1506_v24 }
 0x550   : > { %2141 = vmatpush.bf16.xpose.msra.mxu0 %v2123_v33 }
 0x554   : > { %v4660_v25 = vpop.permute.xlu2 %1845 }
 0x556   : > { %v4662_v57 = vpop.permute.xlu1 %1843 }
 0x557   : > { %3516 = vmatmul.msk.bf16.vlgmr.msra.gmra.mxu0 %vm1318_vm12, %v2095_v34 }
 0x55e   : > { %v2101_v53 = vpop.permute.xlu1 %2100 }
 0x567   : > { %3517 = vmatmul.msk.bf16.gmra.mxu0 %vm1318_vm12, %v2097_v42 }
 0x56f   : > { %v1429_v41 = vpop.xlane.xlu0 %1428 }
 0x570   : > { %3758 = vrcp.f32 %v1429_v41 }
 0x576   : > { %v3759_v35 = vpop.eup %3758 }
 0x577   : > { %v1447_v40 = vmul.f32 %v3759_v35, %v1429_v41 }
 0x579   : > { %v1454_v15 = vsub.f32 2.0, %v1447_v40 }
 0x57b   : > { %v1461_v43 = vmul.f32 %v3759_v35, %v1454_v15 }
 0x57d   : > { %v1468_v54 = vmul.f32 %v4600_v29, %v1461_v43 }
 0x57f   : > { %v4654_v55 = vpack.c.bf16 %v1468_v54, %v1468_v54 }
 0x581   : > { %1483 = vst.msk [vmem:[%s4154_s11 + $0x10] sm:$0xf] %vm1478_vm0, %v4654_v55 }
 0x582   : > { %v2099_v56 = vpop.permute.xlu0 %2098 }
 0x583   : > { %3518 = vmatmul.msk.bf16.gmra.mxu0 %vm1318_vm12, %v2099_v56 }
 0x58d   : > { %v1657_v60 = vpop.xlane.xlu2 %1656 }
 0x58e   : > { %v1674_v63 = vsub.f32 %v4596_v28, %v1657_v60 }
 0x590   : > { %v1682_v61 = vmul.f32 1.442695, %v1674_v63 }
 0x592   : > { %3760 = vpow2.f32 %v1682_v61 }
 0x593   : > { %3519 = vmatmul.msk.bf16.gmra.mxu0 %vm1318_vm12, %v2101_v53 }
 0x595   : > { %v1666_v48 = vpop.xlane.xlu2 %1665 }
 0x596   : > { %v1677_v37 = vsub.f32 %v4613_v38, %v1666_v48 }
 0x598   : > { %v4666_v29 = vpop.eup %3760 }
 0x599   : > { %v1697_v39 = vsel %vm1371_vm14, %v4666_v29, 0.0 }
 0x59a   : > { %1698 = vadd.xlane.f32.xlu1 %v1697_v39 }
 0x5ad   : > { %v1654_v13 = vpop.xlane.xlu0 %1653 }
 0x5ae   : > { %v1673_v20 = vsub.f32 %v4592_v27, %v1654_v13  ;;  %v1400_v27 = vsub.f32 %v4553_v0, %v4598_v51  ;;  %v1660_v51 = vpop.xlane.xlu1 %1659 }
 0x5af   : > { %v1675_v52 = vsub.f32 %v4606_v32, %v1660_v51  ;;  %v1688_v32 = vmul.f32 1.442695, %v1677_v37 }
 0x5b0   : > { %v1680_v2 = vmul.f32 1.442695, %v1673_v20  ;;  %v1413_v11 = vmul.f32 1.442695, %v1400_v27 }
 0x5b1   : > { %v1684_v6 = vmul.f32 1.442695, %v1675_v52 }
 0x5b2   : > { %3762 = vpow2.f32 %v1680_v2 }
 0x5b3   : > { %3764 = vpow2.f32 %v1411_v10 }
 0x5b4   : > { %3766 = vpow2.f32 %v1413_v11 }
 0x5b5   : > { %3768 = vpow2.f32 %v1684_v6  ;;  %v1663_v40 = vpop.xlane.xlu0 %1662 }
 0x5b6   : > { %3770 = vpow2.f32 %v1688_v32  ;;  %v1669_v38 = vpop.xlane.xlu1 %1668  ;;  %v1676_v43 = vsub.f32 %v4611_v36, %v1663_v40 }
 0x5b7   : > { %v1678_v13 = vsub.f32 %v4620_v46, %v1669_v38 }
 0x5b8   : > { %v4671_v3 = vpop.eup %3762  ;;  %v1686_v63 = vmul.f32 1.442695, %v1676_v43 }
 0x5b9   : > { %v1694_v28 = vsel %vm1371_vm14, %v4671_v3, 0.0  ;;  %v4691_v5 = vpop.eup %3764  ;;  %v1690_v2 = vmul.f32 1.442695, %v1678_v13 }
 0x5ba   : > { %v4675_v4 = vpop.f32.mrf.mxu0  ;;  %1695 = vadd.xlane.f32.xlu2 %v1694_v28  ;;  %v1430_v58 = vsel %vm1371_vm14, %v4691_v5, 0.0  ;;  %v4695_v22 = vpop.eup %3766 }
 0x5bb   : > { %v1670_v62 = vsel %vm1390_vm15, %v4675_v4, -inf  ;;  %v1433_v0 = vsel %vm1390_vm15, %v4695_v22, 0.0  ;;  %v4704_v8 = vpop.eup %3768 }
 0x5bc   : > { %1671 = vmax.xlane.f32.xlu0 %v1670_v62  ;;  %v1700_v30 = vsel %vm1371_vm14, %v4704_v8, 0.0  ;;  %v4719_v23 = vpop.eup %3770 }
 0x5bd   : > { %v1706_v33 = vsel %vm1371_vm14, %v4719_v23, 0.0 }
 0x5c2   : > { %v1650_v59 = vpop.f32.mrf.mxu0 }
 0x5d0   : > { %1791 = vrot.lane.b32.xlu0 %v4488_v45, %s3952_s5 }
 0x5d2   : > { %1789 = vrot.lane.b32.xlu2 %v4458_v7, %s3952_s5 }
 0x5d4   : > { %v4687_v18 = vpop.f32.mrf.mxu0 }
 0x5d5   : > { %v2162_v47 = vsel %vm1371_vm14, %v4687_v18, -inf }
 0x5d6   : > { %2163 = vmax.xlane.f32.xlu1 %v2162_v47 }
 0x5dc   : > { %v4697_v16 = vpop.f32.mrf.mxu0 }
 0x5dd   : > { %v2165_v49 = vsel %vm1371_vm14, %v4697_v16, -inf }
 0x5de   : > { %1431 = vadd.xlane.f32.xlu1 %v1430_v58 }
 0x5e4   : > { %v4702_v19 = vpop.f32.mrf.mxu0 }
 0x5e5   : > { %v2168_v50 = vsel %vm1371_vm14, %v4702_v19, -inf }
 0x5e6   : > { %1434 = vadd.xlane.f32.xlu1 %v1433_v0 }
 0x5ec   : > { %v4706_v26 = vpop.f32.mrf.mxu0 }
 0x5fa   : > { %2166 = vmax.xlane.f32.xlu0 %v2165_v49 }
 0x5fb   : > { %1701 = vadd.xlane.f32.xlu2 %v1700_v30 }
 0x5ff   : > { %1787 = vrot.lane.b32.xlu1 %v4464_v12, %s3952_s5 }
 0x600   : > { %v4715_v1 = vpop.f32.mrf.mxu0 }
 0x601   : > { %v2174_v41 = vsel %vm1371_vm14, %v4715_v1, -inf }
 0x603   : > { %2169 = vmax.xlane.f32.xlu2 %v2168_v50 }
 0x608   : > { %v4721_v24 = vpop.f32.mrf.mxu0 }
 0x609   : > { %v2177_v48 = vsel %vm1371_vm14, %v4721_v24, -inf }
 0x60b   : > { %1707 = vadd.xlane.f32.xlu2 %v1706_v33 }
 0x60d   : > { %v1699_v34 = vpop.xlane.xlu1 %1698 }
 0x60e   : > { %3772 = vrcp.f32 %v1699_v34  ;;  %1785 = vrot.lane.b32.xlu0 %v4470_v17, %s3952_s5 }
 0x60f   : > { %3774 = vpow2.f32 %v1686_v63 }
 0x610   : > { %v4727_v42 = vpop.f32.mrf.mxu0 }
 0x613   : > { %2175 = vmax.xlane.f32.xlu2 %v2174_v41 }
 0x614   : > { %v3773_v35 = vpop.eup %3772 }
 0x615   : > { %v1723_v15 = vmul.f32 %v3773_v35, %v1699_v34  ;;  %v4737_v39 = vpop.eup %3774 }
 0x616   : > { %2046 = vrot.lane.b32.xlu0 %v4488_v45, %s3953_s18  ;;  %v1703_v20 = vsel %vm1371_vm14, %v4737_v39, 0.0 }
 0x617   : > { %v1730_v54 = vsub.f32 2.0, %v1723_v15 }
 0x618   : > { %v2160_v56 = vpop.f32.mrf.mxu0 }
 0x619   : > { %v1737_v60 = vmul.f32 %v3773_v35, %v1730_v54 }
 0x61b   : > { %v1744_v61 = vmul.f32 %v4666_v29, %v1737_v60  ;;  %v2171_v29 = vsel %vm1371_vm14, %v4706_v26, -inf  ;;  %v1502_v60 = vunpack.c.l.b16 %v4654_v55 }
 0x61d   : > { %v1751_v53 = vpack.c.bf16 %v1744_v61, %v1744_v61 }
 0x61f   : > { %3489 = vst.msk [vmem:[%s4154_s11 + $0x20] sm:$0xf] %vm1478_vm0, %v1751_v53  ;;  %v1775_v52 = vunpack.c.l.b16 %v1751_v53 }
 0x629   : > { %1704 = vadd.xlane.f32.xlu1 %v1703_v20  ;;  %v1488_v20 = vld [vmem:[%s4154_s11 + $0x18] sm:$0x1] }
 0x62d   : > { %v1696_v36 = vpop.xlane.xlu2 %1695 }
 0x62e   : > { %3776 = vrcp.f32 %v1696_v36 }
 0x62f   : > { %3778 = vpow2.f32 %v1690_v2  ;;  %v1672_v28 = vpop.xlane.xlu0 %1671 }
 0x630   : > { %v1679_v62 = vsub.f32 %v4675_v4, %v1672_v28 }
 0x631   : > { %2172 = vmax.xlane.f32.xlu1 %v2171_v29 }
 0x632   : > { %v1692_v59 = vmul.f32 1.442695, %v1679_v62 }
 0x634   : > { %v3777_v9 = vpop.eup %3776  ;;  %3780 = vpow2.f32 %v1692_v59 }
 0x635   : > { %v4745_v46 = vpop.eup %3778  ;;  %v1722_v10 = vmul.f32 %v3777_v9, %v1696_v36 }
 0x636   : > { %v1709_v47 = vsel %vm1371_vm14, %v4745_v46, 0.0 }
 0x637   : > { %v1729_v27 = vsub.f32 2.0, %v1722_v10 }
 0x639   : > { %v1736_v11 = vmul.f32 %v3777_v9, %v1729_v27  ;;  %1710 = vadd.xlane.f32.xlu1 %v1709_v47 }
 0x63a   : > { %v4749_v58 = vpop.eup %3780 }
 0x63b   : > { %v1743_v4 = vmul.f32 %v4671_v3, %v1736_v11  ;;  %v1712_v0 = vsel %vm1390_vm15, %v4749_v58, 0.0  ;;  %v1790_v3 = vpop.permute.xlu2 %1789 }
 0x63c   : > { %1713 = vadd.xlane.f32.xlu2 %v1712_v0 }
 0x63d   : > { %v1750_v51 = vpack.c.bf16 %v1743_v4, %v1743_v4 }
 0x63f   : > { %3488 = vst.msk [vmem:[%s4154_s11 + $0x1c] sm:$0xf] %vm1478_vm0, %v1750_v51  ;;  %v1774_v6 = vunpack.c.l.b16 %v1750_v51 }
 0x641   : > { %v4758_v37 = vpack.c.b16 %v1775_v52, %v1774_v6  ;;  %2178 = vmax.xlane.f32.xlu1 %v2177_v48 }
 0x642   : > { %v1792_v49 = vpop.permute.xlu0 %1791 }
 0x643   : > { %v1809_v30 = vand.u32 %v1792_v49, %v4517_v14 }
 0x645   : > { %1815 = vmatpush.bf16.msra.mxu1 %v1809_v30 }
 0x649   : > { %1816 = vmatpush.bf16.msra.mxu1 %v1790_v3  ;;  %v2164_v32 = vpop.xlane.xlu1 %2163 }
 0x64a   : > { %v2183_v9 = vsub.f32 %v4687_v18, %v2164_v32 }
 0x64c   : > { %v2190_v47 = vmul.f32 1.442695, %v2183_v9 }
 0x651   : > { %v1432_v50 = vpop.xlane.xlu1 %1431 }
 0x652   : > { %3782 = vrcp.f32 %v1432_v50 }
 0x658   : > { %v3783_v38 = vpop.eup %3782 }
 0x659   : > { %v1448_v33 = vmul.f32 %v3783_v38, %v1432_v50  ;;  %v1435_v34 = vpop.xlane.xlu1 %1434 }
 0x65a   : > { %3784 = vrcp.f32 %v1435_v34  ;;  %2044 = vrot.lane.b32.xlu1 %v4458_v7, %s3953_s18 }
 0x65b   : > { %v1455_v41 = vsub.f32 2.0, %v1448_v33 }
 0x65d   : > { %v1462_v35 = vmul.f32 %v3783_v38, %v1455_v41 }
 0x65f   : > { %v1469_v40 = vmul.f32 %v4691_v5, %v1462_v35  ;;  %v3601_v5 = vld [vmem:[%s5432_s20] sm:$0xff] }
 0x660   : > { %v3785_v15 = vpop.eup %3784 }
 0x661   : > { %v1476_v43 = vpack.c.bf16 %v1469_v40, %v1469_v40  ;;  %v1449_v54 = vmul.f32 %v3785_v15, %v1435_v34 }
 0x663   : > { %1484 = vst.msk [vmem:[%s4154_s11 + $0x14] sm:$0xf] %vm1478_vm0, %v1476_v43  ;;  %v1456_v56 = vsub.f32 2.0, %v1449_v54  ;;  %v1503_v63 = vunpack.c.l.b16 %v1476_v43 }
 0x665   : > { %v1463_v61 = vmul.f32 %v3785_v15, %v1456_v56  ;;  %v1507_v53 = vpack.c.b16 %v1503_v63, %v1502_v60 }
 0x667   : > { %v1470_v13 = vmul.f32 %v4695_v22, %v1463_v61  ;;  %3482 = vmatmul.msk.bf16.gmra.mxu3 %vm1371_vm14, %v1507_v53 }
 0x669   : > { %v1477_v2 = vpack.c.bf16 %v1470_v13, %v1470_v13 }
 0x66b   : > { %v1489_v36 = vsel %vm4770_vm4, %v1477_v2, %v1488_v20  ;;  %v1504_v59 = vunpack.c.l.b16 %v1477_v2 }
 0x66c   : > { %1490 = vst [vmem:[%s4154_s11 + $0x18] sm:$0x1] %v1489_v36 }
 0x66d   : > { %v2167_v55 = vpop.xlane.xlu0 %2166  ;;  %v1508_v27 = vpack.c.b16 %v1504_v59, %v1504_v59 }
 0x66e   : > { %v2184_v28 = vsub.f32 %v4697_v16, %v2167_v55  ;;  %v1702_v62 = vpop.xlane.xlu2 %1701 }
 0x66f   : > { %3786 = vrcp.f32 %v1702_v62 }
 0x670   : > { %v2192_v29 = vmul.f32 1.442695, %v2184_v28 }
 0x671   : > { %v1788_v22 = vpop.permute.xlu1 %1787 }
 0x672   : > { %3788 = vpow2.f32 %v2192_v29  ;;  %1817 = vmatpush.bf16.msra.mxu1 %v1788_v22 }
 0x673   : > { %3790 = vpow2.f32 %v2190_v47 }
 0x675   : > { %v3787_v10 = vpop.eup %3786 }
 0x676   : > { %v1724_v11 = vmul.f32 %v3787_v10, %v1702_v62  ;;  %v4780_v4 = vpop.xlane.xlu2 %2169 }
 0x677   : > { %3483 = vmatmul.msk.bf16.gmra.mxu3 %vm1371_vm14, %v1508_v27  ;;  %v3494_v27 = vld [vmem:[%s4154_s11 + $0x34] sm:$0x1] }
 0x678   : > { %v4783_v0 = vpop.eup %3788  ;;  %v1731_v16 = vsub.f32 2.0, %v1724_v11 }
 0x679   : > { %v2207_v51 = vsel %vm1371_vm14, %v4783_v0, 0.0  ;;  %v4788_v49 = vpop.eup %3790 }
 0x67a   : > { %v1738_v52 = vmul.f32 %v3787_v10, %v1731_v16  ;;  %2208 = vadd.xlane.f32.xlu2 %v2207_v51  ;;  %v2204_v3 = vsel %vm1371_vm14, %v4788_v49, 0.0 }
 0x67c   : > { %v1745_v18 = vmul.f32 %v4704_v8, %v1738_v52 }
 0x67e   : > { %v1752_v6 = vpack.c.bf16 %v1745_v18, %v1745_v18  ;;  %v1708_v48 = vpop.xlane.xlu2 %1707 }
 0x67f   : > { %3792 = vrcp.f32 %v1708_v48 }
 0x680   : > { %3490 = vst.msk [vmem:[%s4154_s11 + $0x24] sm:$0xf] %vm1478_vm0, %v1752_v6  ;;  %v1786_v30 = vpop.permute.xlu0 %1785 }
 0x681   : > { %1818 = vmatpush.bf16.msra.mxu1 %v1786_v30 }
 0x684   : > { %2205 = vadd.xlane.f32.xlu1 %v2204_v3  ;;  %3496 = vmatmul.msk.bf16.vlgmr.msra.gmra.mxu1 %vm1371_vm14, %v4758_v37 }
 0x685   : > { %v3793_v32 = vpop.eup %3792 }
 0x686   : > { %v1726_v50 = vmul.f32 %v3793_v32, %v1708_v48  ;;  %v4806_v54 = vpop.xlane.xlu2 %2175 }
 0x687   : > { %3500 = vmatmul.msk.bf16.vlgmr.msrb.gmra.mxu3 %vm1318_vm12, %v4648_v21 }
 0x688   : > { %v1733_v8 = vsub.f32 2.0, %v1726_v50  ;;  %v2047_v38 = vpop.permute.xlu0 %2046 }
 0x689   : > { %v2064_v33 = vand.u32 %v2047_v38, %v4517_v14 }
 0x68a   : > { %v1740_v34 = vmul.f32 %v3793_v32, %v1733_v8 }
 0x68b   : > { %2070 = vmatpush.bf16.msrb.mxu2 %v2064_v33 }
 0x68c   : > { %v1747_v41 = vmul.f32 %v4719_v23, %v1740_v34 }
 0x68e   : > { %v1754_v35 = vpack.c.bf16 %v1747_v41, %v1747_v41 }
 0x690   : > { %3492 = vst.msk [vmem:[%s4154_s11 + $0x2c] sm:$0xf] %vm1478_vm0, %v1754_v35  ;;  %v1778_v9 = vunpack.c.l.b16 %v1754_v35 }
 0x697   : > { %3501 = vmatmul.msk.bf16.gmra.mxu3 %vm1318_vm12, %v4650_v44  ;;  %v1776_v44 = vunpack.c.l.b16 %v1752_v6 }
 0x69c   : > { %v1705_v37 = vpop.xlane.xlu1 %1704 }
 0x69d   : > { %3794 = vrcp.f32 %v1705_v37 }
 0x6a3   : > { %v3795_v40 = vpop.eup %3794 }
 0x6a4   : > { %v1725_v15 = vmul.f32 %v3795_v40, %v1705_v37  ;;  %v4804_v21 = vpop.xlane.xlu1 %2172 }
 0x6a6   : > { %v1732_v43 = vsub.f32 2.0, %v1725_v15 }
 0x6a7   : > { %3502 = vmatmul.msk.bf16.gmra.mxu3 %vm1318_vm12, %v4662_v57 }
 0x6a8   : > { %v1739_v23 = vmul.f32 %v3795_v40, %v1732_v43 }
 0x6aa   : > { %v1746_v56 = vmul.f32 %v4737_v39, %v1739_v23 }
 0x6ac   : > { %v1753_v60 = vpack.c.bf16 %v1746_v56, %v1746_v56  ;;  %v1711_v63 = vpop.xlane.xlu1 %1710 }
 0x6ad   : > { %3796 = vrcp.f32 %v1711_v63 }
 0x6ae   : > { %3491 = vst.msk [vmem:[%s4154_s11 + $0x28] sm:$0xf] %vm1478_vm0, %v1753_v60  ;;  %v1777_v61 = vunpack.c.l.b16 %v1753_v60 }
 0x6af   : > { %v1714_v53 = vpop.xlane.xlu2 %1713 }
 0x6b0   : > { %3798 = vrcp.f32 %v1714_v53  ;;  %v1782_v13 = vpack.c.b16 %v1777_v61, %v1776_v44 }
 0x6b2   : > { %3497 = vmatmul.msk.bf16.gmra.mxu1 %vm1371_vm14, %v1782_v13 }
 0x6b3   : > { %v3797_v20 = vpop.eup %3796 }
 0x6b4   : > { %v1727_v2 = vmul.f32 %v3797_v20, %v1711_v63 }
 0x6b6   : > { %v3799_v57 = vpop.eup %3798  ;;  %v1734_v36 = vsub.f32 2.0, %v1727_v2 }
 0x6b7   : > { %v1728_v55 = vmul.f32 %v3799_v57, %v1714_v53  ;;  %3503 = vmatmul.msk.bf16.gmra.mxu3 %vm1318_vm12, %v4660_v25  ;;  %v4825_v25 = vpop.f32.mrf.mxu3 }
 0x6b8   : > { %v1741_v39 = vmul.f32 %v3797_v20, %v1734_v36 }
 0x6b9   : > { %v1735_v28 = vsub.f32 2.0, %v1728_v55 }
 0x6ba   : > { %v1748_v62 = vmul.f32 %v4745_v46, %v1741_v39  ;;  %v4827_v46 = vpop.xlane.xlu1 %2178 }
 0x6bb   : > { %v1742_v29 = vmul.f32 %v3799_v57, %v1735_v28 }
 0x6bc   : > { %v1755_v22 = vpack.c.bf16 %v1748_v62, %v1748_v62 }
 0x6bd   : > { %v1749_v59 = vmul.f32 %v4749_v58, %v1742_v29 }
 0x6be   : > { %3493 = vst.msk [vmem:[%s4154_s11 + $0x30] sm:$0xf] %vm1478_vm0, %v1755_v22  ;;  %v1779_v10 = vunpack.c.l.b16 %v1755_v22 }
 0x6bf   : > { %v1756_v47 = vpack.c.bf16 %v1749_v59, %v1749_v59  ;;  %v4829_v58 = vpop.f32.mrf.mxu3 }
 0x6c0   : > { %v1783_v11 = vpack.c.b16 %v1779_v10, %v1778_v9 }
 0x6c1   : > { %v1765_v16 = vsel %vm4770_vm4, %v1756_v47, %v3494_v27  ;;  %v1780_v52 = vunpack.c.l.b16 %v1756_v47 }
 0x6c2   : > { %3498 = vmatmul.msk.bf16.gmra.mxu1 %vm1371_vm14, %v1783_v11  ;;  %3495 = vst [vmem:[%s4154_s11 + $0x34] sm:$0x1] %v1765_v16 }
 0x6c3   : > { %v1784_v18 = vpack.c.b16 %v1780_v52, %v1780_v52 }
 0x6c7   : > { %v4832_v6 = vpop.f32.mrf.mxu3 }
 0x6cc   : > { %v2045_v51 = vpop.permute.xlu1 %2044 }
 0x6cd   : > { %2071 = vmatpush.bf16.msrb.mxu2 %v2045_v51 }
 0x6cf   : > { %v4834_v48 = vpop.f32.mrf.mxu3 }
 0x6d2   : > { %3499 = vmatmul.msk.bf16.gmra.mxu1 %vm1371_vm14, %v1784_v18 }
 0x6ea   : > { %v4836_v30 = vpop.f32.mrf.mxu3 }
 0x6ed   : > { %v2209_v3 = vpop.xlane.xlu2 %2208 }
 0x6ee   : > { %3800 = vrcp.f32 %v2209_v3 }
 0x6f2   : > { %v4838_v32 = vpop.f32.mrf.mxu3 }
 0x6f4   : > { %v3801_v50 = vpop.eup %3800 }
 0x6f5   : > { %v2233_v8 = vmul.f32 %v3801_v50, %v2209_v3 }
 0x6f7   : > { %v2240_v38 = vsub.f32 2.0, %v2233_v8  ;;  %v2206_v33 = vpop.xlane.xlu1 %2205 }
 0x6f8   : > { %3802 = vrcp.f32 %v2206_v33 }
 0x6f9   : > { %v2247_v34 = vmul.f32 %v3801_v50, %v2240_v38 }
 0x6fa   : > { %v4840_v41 = vpop.f32.mrf.mxu3 }
 0x6fb   : > { %v2254_v35 = vmul.f32 %v4783_v0, %v2247_v34 }
 0x6fd   : > { %v2261_v37 = vpack.c.bf16 %v2254_v35, %v2254_v35 }
 0x6fe   : > { %v3803_v40 = vpop.eup %3802 }
 0x6ff   : > { %3521 = vst.msk [vmem:[%s4154_s11 + $0x58] sm:$0xf] %vm1478_vm0, %v2261_v37  ;;  %v2232_v15 = vmul.f32 %v3803_v40, %v2206_v33  ;;  %v2285_v61 = vunpack.c.l.b16 %v2261_v37 }
 0x701   : > { %v2239_v43 = vsub.f32 2.0, %v2232_v15  ;;  %v4845_v23 = vpop.f32.mrf.mxu1 }
 0x702   : > { %v1582_v56 = vpop.f32.mrf.mxu3 }
 0x703   : > { %v2246_v60 = vmul.f32 %v3803_v40, %v2239_v43 }
 0x705   : > { %v2253_v63 = vmul.f32 %v4788_v49, %v2246_v60 }
 0x707   : > { %v2260_v44 = vpack.c.bf16 %v2253_v63, %v2253_v63 }
 0x709   : > { %3520 = vst.msk [vmem:[%s4154_s11 + $0x54] sm:$0xf] %vm1478_vm0, %v2260_v44  ;;  %v2284_v53 = vunpack.c.l.b16 %v2260_v44  ;;  %v4850_v13 = vpop.f32.mrf.mxu1 }
 0x70a   : > { %v3672_v0 = vpack.i.bf16 %v4850_v13, %v4845_v23  ;;  %v1888_v20 = vpop.f32.mrf.mxu3 }
 0x70b   : > { %v4854_v2 = vpack.c.b16 %v2285_v61, %v2284_v53  ;;  %v1907_v57 = vsel %vm1371_vm14, %v1888_v20, -inf  ;;  %v2186_v53 = vsub.f32 %v4706_v26, %v4804_v21 }
 0x70c   : > { %1908 = vmax.xlane.f32.xlu2 %v1907_v57 }
 0x712   : > { %v1890_v36 = vpop.f32.mrf.mxu3 }
 0x713   : > { %v1910_v55 = vsel %vm1371_vm14, %v1890_v36, -inf }
 0x714   : > { %1911 = vmax.xlane.f32.xlu1 %v1910_v55  ;;  %v2196_v55 = vmul.f32 1.442695, %v2186_v53 }
 0x71a   : > { %v1893_v49 = vpop.f32.mrf.mxu3 }
 0x71b   : > { %v1913_v39 = vsel %vm1371_vm14, %v1893_v49, -inf }
 0x71c   : > { %1914 = vmax.xlane.f32.xlu2 %v1913_v39 }
 0x722   : > { %v1895_v28 = vpop.f32.mrf.mxu3 }
 0x723   : > { %v1916_v62 = vsel %vm1371_vm14, %v1895_v28, -inf }
 0x724   : > { %1917 = vmax.xlane.f32.xlu0 %v1916_v62 }
 0x72a   : > { %v4860_v29 = vpop.f32.mrf.mxu3 }
 0x72b   : > { %v1919_v22 = vsel %vm1371_vm14, %v4860_v29, -inf }
 0x72c   : > { %1920 = vmax.xlane.f32.xlu2 %v1919_v22  ;;  %v2187_v22 = vsub.f32 %v4715_v1, %v4806_v54 }
 0x72d   : > { %2299 = vrot.lane.b32.xlu1 %v4458_v7, %s3954_s22 }
 0x72f   : > { %v4866_v59 = vpop.f32.mrf.mxu1 }
 0x732   : > { %v4868_v9 = vpop.f32.mrf.mxu3 }
 0x733   : > { %v1922_v18 = vsel %vm1371_vm14, %v4868_v9, -inf }
 0x737   : > { %v4870_v10 = vpop.f32.mrf.mxu1 }
 0x738   : > { %v3687_v27 = vpack.i.bf16 %v4870_v10, %v4866_v59  ;;  %2042 = vrot.lane.b32.xlu0 %v4464_v12, %s3953_s18 }
 0x73a   : > { %v4876_v47 = vpop.f32.mrf.mxu3 }
 0x73f   : > { %v4878_v11 = vpop.f32.mrf.mxu1 }
 0x740   : > { %2297 = vrot.lane.b32.xlu0 %v4464_v12, %s3954_s22 }
 0x742   : > { %v1905_v7 = vpop.f32.mrf.mxu3 }
 0x744   : > { %2301 = vrot.lane.b32.xlu2 %v4488_v45, %s3954_s22  ;;  %v2185_v45 = vsub.f32 %v4702_v19, %v4780_v4 }
 0x746   : > { %v2194_v40 = vmul.f32 1.442695, %v2185_v45 }
 0x747   : > { %v4884_v16 = vpop.f32.mrf.mxu1 }
 0x748   : > { %v3702_v51 = vpack.i.bf16 %v4884_v16, %v4878_v11 }
 0x74f   : > { %v4888_v52 = vpop.f32.mrf.mxu1 }
 0x757   : > { %1923 = vmax.xlane.f32.xlu1 %v1922_v18  ;;  %v1837_v3 = vpop.f32.mrf.mxu1 }
 0x77f   : > { %v1909_v50 = vpop.xlane.xlu2 %1908 }
 0x780   : > { %v1928_v8 = vsub.f32 %v1888_v20, %v1909_v50  ;;  %v2198_v50 = vmul.f32 1.442695, %v2187_v22 }
 0x782   : > { %v1935_v38 = vmul.f32 1.442695, %v1928_v8 }
 0x784   : > { %3804 = vpow2.f32 %v1935_v38 }
 0x787   : > { %v1912_v12 = vpop.xlane.xlu1 %1911 }
 0x788   : > { %v1929_v33 = vsub.f32 %v1890_v36, %v1912_v12 }
 0x78a   : > { %v4892_v34 = vpop.eup %3804  ;;  %v1937_v35 = vmul.f32 1.442695, %v1929_v33 }
 0x78b   : > { %v1949_v37 = vsel %vm1371_vm14, %v4892_v34, 0.0 }
 0x78c   : > { %3806 = vpow2.f32 %v1937_v35  ;;  %1950 = vadd.xlane.f32.xlu1 %v1949_v37  ;;  %v1925_v37 = vsel %vm1390_vm15, %v4876_v47, -inf }
 0x78d   : > { %3808 = vpow2.f32 %v2194_v40 }
 0x78f   : > { %v1915_v15 = vpop.xlane.xlu2 %1914 }
 0x790   : > { %v1930_v43 = vsub.f32 %v1893_v49, %v1915_v15 }
 0x792   : > { %v4898_v56 = vpop.eup %3806  ;;  %v1939_v60 = vmul.f32 1.442695, %v1930_v43 }
 0x793   : > { %v1952_v63 = vsel %vm1371_vm14, %v4898_v56, 0.0  ;;  %v4902_v19 = vpop.eup %3808 }
 0x794   : > { %3810 = vpow2.f32 %v1939_v60  ;;  %1953 = vadd.xlane.f32.xlu2 %v1952_v63  ;;  %v2210_v36 = vsel %vm1371_vm14, %v4902_v19, 0.0 }
 0x797   : > { %v1918_v44 = vpop.xlane.xlu0 %1917 }
 0x798   : > { %v1931_v4 = vsub.f32 %v1895_v28, %v1918_v44 }
 0x79a   : > { %v4904_v61 = vpop.eup %3810  ;;  %v1941_v20 = vmul.f32 1.442695, %v1931_v4 }
 0x79b   : > { %v1955_v57 = vsel %vm1371_vm14, %v4904_v61, 0.0 }
 0x79c   : > { %3812 = vpow2.f32 %v1941_v20  ;;  %1956 = vadd.xlane.f32.xlu0 %v1955_v57  ;;  %2211 = vadd.xlane.f32.xlu2 %v2210_v36 }
 0x79d   : > { %3814 = vpow2.f32 %v2196_v55 }
 0x79e   : > { %3816 = vpow2.f32 %v2198_v50 }
 0x79f   : > { %v1921_v49 = vpop.xlane.xlu2 %1920  ;;  %v2300_v3 = vpop.permute.xlu1 %2299 }
 0x7a0   : > { %v1932_v38 = vsub.f32 %v4860_v29, %v1921_v49 }
 0x7a2   : > { %v4912_v39 = vpop.eup %3812  ;;  %v1943_v12 = vmul.f32 1.442695, %v1932_v38 }
 0x7a3   : > { %v1958_v28 = vsel %vm1371_vm14, %v4912_v39, 0.0  ;;  %v4918_v21 = vpop.eup %3814 }
 0x7a4   : > { %1959 = vadd.xlane.f32.xlu2 %v1958_v28  ;;  %v2213_v18 = vsel %vm1371_vm14, %v4918_v21, 0.0  ;;  %v4929_v1 = vpop.eup %3816  ;;  %3818 = vpow2.f32 %v1943_v12 }
 0x7a5   : > { %2040 = vrot.lane.b32.xlu1 %v4470_v17, %s3953_s18  ;;  %v2216_v54 = vsel %vm1371_vm14, %v4929_v1, 0.0  ;;  %s5436_s18 = scalar_lea.vmem %s5372_s12, %s4082_s29  ;;  %s5437_s29 = sld [smem:[#allocation4_spill]] }
 0x7a7   : > { %v2302_v26 = vpop.permute.xlu2 %2301 }
 0x7a8   : > { %v2319_v62 = vand.u32 %v2302_v26, %v4517_v14  ;;  %v2180_v14 = vsel %vm1390_vm15, %v4727_v42, -inf }
 0x7aa   : > { %v2043_v7 = vpop.permute.xlu0 %2042  ;;  %2325 = vmatpush.bf16.msrb.mxu1 %v2319_v62  ;;  %v4939_v15 = vpop.eup %3818 }
 0x7ab   : > { %2072 = vmatpush.bf16.msrb.mxu2 %v2043_v7  ;;  %v1961_v29 = vsel %vm1371_vm14, %v4939_v15, 0.0  ;;  %p3590_p8 = scmp.ne.s32.totalorder %s5437_s29, 1 }
 0x7ac   : > { %2214 = vadd.xlane.f32.xlu2 %v2213_v18 }
 0x7ae   : > { %2326 = vmatpush.bf16.msrb.mxu1 %v2300_v3 }
 0x7b0   : > { %2295 = vrot.lane.b32.xlu0 %v4470_v17, %s3954_s22  ;;  %v2188_v17 = vsub.f32 %v4721_v24, %v4827_v46 }
 0x7b2   : > { %v2298_v8 = vpop.permute.xlu0 %2297  ;;  %v2200_v40 = vmul.f32 1.442695, %v2188_v17 }
 0x7b3   : > { %2327 = vmatpush.bf16.msrb.mxu1 %v2298_v8 }
 0x7b4   : > { %2181 = vmax.xlane.f32.xlu2 %v2180_v14 }
 0x7bc   : > { %2217 = vadd.xlane.f32.xlu2 %v2216_v54 }
 0x7ca   : > { %v1924_v33 = vpop.xlane.xlu1 %1923 }
 0x7cb   : > { %v1933_v45 = vsub.f32 %v4868_v9, %v1924_v33 }
 0x7cd   : > { %v1945_v35 = vmul.f32 1.442695, %v1933_v45 }
 0x7cf   : > { %1926 = vmax.xlane.f32.xlu1 %v1925_v37  ;;  %3820 = vpow2.f32 %v1945_v35 }
 0x7d0   : > { %3822 = vpow2.f32 %v2200_v40 }
 0x7d5   : > { %v4941_v43 = vpop.eup %3820 }
 0x7d6   : > { %v1964_v24 = vsel %vm1371_vm14, %v4941_v43, 0.0  ;;  %v4947_v46 = vpop.eup %3822 }
 0x7d7   : > { %1962 = vadd.xlane.f32.xlu1 %v1961_v29  ;;  %v2219_v9 = vsel %vm1371_vm14, %v4947_v46, 0.0 }
 0x7da   : > { %1965 = vadd.xlane.f32.xlu0 %v1964_v24 }
 0x7df   : > { %2220 = vadd.xlane.f32.xlu1 %v2219_v9 }
 0x7ff   : > { %v1951_v60 = vpop.xlane.xlu1 %1950 }
 0x800   : > { %3824 = vrcp.f32 %v1951_v60 }
 0x806   : > { %v3825_v63 = vpop.eup %3824 }
 0x807   : > { %v1977_v44 = vmul.f32 %v3825_v63, %v1951_v60  ;;  %v1954_v4 = vpop.xlane.xlu2 %1953 }
 0x808   : > { %3826 = vrcp.f32 %v1954_v4 }
 0x809   : > { %v1984_v53 = vsub.f32 2.0, %v1977_v44 }
 0x80b   : > { %v1991_v20 = vmul.f32 %v3825_v63, %v1984_v53 }
 0x80d   : > { %v1998_v57 = vmul.f32 %v4892_v34, %v1991_v20 }
 0x80e   : > { %v3827_v36 = vpop.eup %3826 }
 0x80f   : > { %v2005_v55 = vpack.c.bf16 %v1998_v57, %v1998_v57  ;;  %v1978_v49 = vmul.f32 %v3827_v36, %v1954_v4  ;;  %v1957_v28 = vpop.xlane.xlu0 %1956  ;;  %v2212_v26 = vpop.xlane.xlu2 %2211 }
 0x810   : > { %3828 = vrcp.f32 %v1957_v28 }
 0x811   : > { %3504 = vst.msk [vmem:[%s4154_s11 + $0x38] sm:$0xf] %vm1478_vm0, %v2005_v55  ;;  %v1985_v62 = vsub.f32 2.0, %v1978_v49  ;;  %3830 = vrcp.f32 %v2212_v26  ;;  %v2029_v38 = vunpack.c.l.b16 %v2005_v55 }
 0x813   : > { %v1992_v22 = vmul.f32 %v3827_v36, %v1985_v62 }
 0x815   : > { %v1999_v7 = vmul.f32 %v4898_v56, %v1992_v22 }
 0x816   : > { %v3829_v18 = vpop.eup %3828 }
 0x817   : > { %v3831_v3 = vpop.eup %3830  ;;  %v2006_v50 = vpack.c.bf16 %v1999_v7, %v1999_v7  ;;  %v1979_v8 = vmul.f32 %v3829_v18, %v1957_v28  ;;  %v1960_v14 = vpop.xlane.xlu2 %1959 }
 0x818   : > { %v2041_v34 = vpop.permute.xlu1 %2040  ;;  %v2234_v54 = vmul.f32 %v3831_v3, %v2212_v26  ;;  %3832 = vrcp.f32 %v1960_v14 }
 0x819   : > { %2073 = vmatpush.bf16.msrb.mxu2 %v2041_v34  ;;  %3505 = vst.msk [vmem:[%s4154_s11 + $0x3c] sm:$0xf] %vm1478_vm0, %v2006_v50  ;;  %v2030_v12 = vunpack.c.l.b16 %v2006_v50  ;;  %v1986_v33 = vsub.f32 2.0, %v1979_v8 }
 0x81a   : > { %v2241_v45 = vsub.f32 2.0, %v2234_v54 }
 0x81b   : > { %v1993_v17 = vmul.f32 %v3829_v18, %v1986_v33  ;;  %v2036_v35 = vpack.c.b16 %v2030_v12, %v2029_v38 }
 0x81c   : > { %v2248_v56 = vmul.f32 %v3831_v3, %v2241_v45 }
 0x81d   : > { %v2000_v37 = vmul.f32 %v4904_v61, %v1993_v17  ;;  %3512 = vmatmul.msk.bf16.vlgmr.msrb.gmra.mxu2 %vm1371_vm14, %v2036_v35 }
 0x81e   : > { %v3833_v40 = vpop.eup %3832  ;;  %v2255_v29 = vmul.f32 %v4902_v19, %v2248_v56 }
 0x81f   : > { %v2007_v24 = vpack.c.bf16 %v2000_v37, %v2000_v37  ;;  %v1980_v9 = vmul.f32 %v3833_v40, %v1960_v14  ;;  %v2215_v60 = vpop.xlane.xlu2 %2214 }
 0x820   : > { %v2262_v63 = vpack.c.bf16 %v2255_v29, %v2255_v29  ;;  %3834 = vrcp.f32 %v2215_v60 }
 0x821   : > { %3506 = vst.msk [vmem:[%s4154_s11 + $0x40] sm:$0xf] %vm1478_vm0, %v2007_v24  ;;  %v1987_v44 = vsub.f32 2.0, %v1980_v9  ;;  %v2031_v28 = vunpack.c.l.b16 %v2007_v24 }
 0x822   : > { %3522 = vst.msk [vmem:[%s4154_s11 + $0x5c] sm:$0xf] %vm1478_vm0, %v2262_v63  ;;  %v2296_v4 = vpop.permute.xlu0 %2295 }
 0x823   : > { %v1994_v53 = vmul.f32 %v3833_v40, %v1987_v44  ;;  %2328 = vmatpush.bf16.msrb.mxu1 %v2296_v4 }
 0x825   : > { %v2001_v61 = vmul.f32 %v4912_v39, %v1994_v53 }
 0x826   : > { %v3835_v20 = vpop.eup %3834  ;;  %3528 = vmatmul.msk.bf16.vlgmr.msrb.gmra.mxu1 %vm1371_vm14, %v4854_v2 }
 0x827   : > { %v2008_v19 = vpack.c.bf16 %v2001_v61, %v2001_v61  ;;  %v2235_v57 = vmul.f32 %v3835_v20, %v2215_v60  ;;  %v2182_v36 = vpop.xlane.xlu2 %2181 }
 0x828   : > { %v2189_v55 = vsub.f32 %v4727_v42, %v2182_v36  ;;  %v2286_v42 = vunpack.c.l.b16 %v2262_v63 }
 0x829   : > { %3507 = vst.msk [vmem:[%s4154_s11 + $0x44] sm:$0xf] %vm1478_vm0, %v2008_v19  ;;  %v2242_v49 = vsub.f32 2.0, %v2235_v57  ;;  %v2032_v26 = vunpack.c.l.b16 %v2008_v19 }
 0x82a   : > { %v2202_v62 = vmul.f32 1.442695, %v2189_v55 }
 0x82b   : > { %v2249_v22 = vmul.f32 %v3835_v20, %v2242_v49  ;;  %v2037_v7 = vpack.c.b16 %v2032_v26, %v2031_v28 }
 0x82c   : > { %3836 = vpow2.f32 %v2202_v62 }
 0x82d   : > { %v2256_v39 = vmul.f32 %v4918_v21, %v2249_v22  ;;  %3513 = vmatmul.msk.bf16.gmra.mxu2 %vm1371_vm14, %v2037_v7 }
 0x82f   : > { %v2263_v2 = vpack.c.bf16 %v2256_v39, %v2256_v39  ;;  %v2218_v18 = vpop.xlane.xlu2 %2217 }
 0x830   : > { %3838 = vrcp.f32 %v2218_v18 }
 0x831   : > { %3523 = vst.msk [vmem:[%s4154_s11 + $0x60] sm:$0xf] %vm1478_vm0, %v2263_v2  ;;  %v2287_v3 = vunpack.c.l.b16 %v2263_v2 }
 0x832   : > { %v4974_v50 = vpop.eup %3836 }
 0x833   : > { %v2222_v8 = vsel %vm1390_vm15, %v4974_v50, 0.0  ;;  %v2292_v14 = vpack.c.b16 %v2287_v3, %v2286_v42 }
 0x834   : > { %2223 = vadd.xlane.f32.xlu1 %v2222_v8 }
 0x836   : > { %v3839_v34 = vpop.eup %3838  ;;  %3529 = vmatmul.msk.bf16.gmra.mxu1 %vm1371_vm14, %v2292_v14 }
 0x837   : > { %v2236_v21 = vmul.f32 %v3839_v34, %v2218_v18 }
 0x839   : > { %v2243_v54 = vsub.f32 2.0, %v2236_v21 }
 0x83b   : > { %v2250_v38 = vmul.f32 %v3839_v34, %v2243_v54  ;;  %v3526_v54 = vld [vmem:[%s4154_s11 + $0x6c] sm:$0x1] }
 0x83d   : > { %v2257_v12 = vmul.f32 %v4929_v1, %v2250_v38 }
 0x83f   : > { %v2264_v33 = vpack.c.bf16 %v2257_v12, %v2257_v12 }
 0x841   : > { %3524 = vst.msk [vmem:[%s4154_s11 + $0x64] sm:$0xf] %vm1478_vm0, %v2264_v33  ;;  %v2288_v39 = vunpack.c.l.b16 %v2264_v33 }
 0x842   : > { %v1927_v45 = vpop.xlane.xlu1 %1926 }
 0x843   : > { %v1934_v17 = vsub.f32 %v4876_v47, %v1927_v45 }
 0x845   : > { %v1947_v35 = vmul.f32 1.442695, %v1934_v17 }
 0x847   : > { %3840 = vpow2.f32 %v1947_v35 }
 0x84a   : > { %v1963_v56 = vpop.xlane.xlu1 %1962 }
 0x84b   : > { %3842 = vrcp.f32 %v1963_v56 }
 0x84d   : > { %v4983_v37 = vpop.eup %3840  ;;  %v1966_v40 = vpop.xlane.xlu0 %1965 }
 0x84e   : > { %3844 = vrcp.f32 %v1966_v40  ;;  %v1967_v29 = vsel %vm1390_vm15, %v4983_v37, 0.0 }
 0x84f   : > { %1968 = vadd.xlane.f32.xlu2 %v1967_v29 }
 0x851   : > { %v3843_v1 = vpop.eup %3842 }
 0x852   : > { %v1981_v24 = vmul.f32 %v3843_v1, %v1963_v56  ;;  %v2221_v9 = vpop.xlane.xlu1 %2220 }
 0x853   : > { %3846 = vrcp.f32 %v2221_v9 }
 0x854   : > { %v3845_v60 = vpop.eup %3844  ;;  %v1988_v47 = vsub.f32 2.0, %v1981_v24 }
 0x855   : > { %v1982_v63 = vmul.f32 %v3845_v60, %v1966_v40 }
 0x856   : > { %v1995_v44 = vmul.f32 %v3843_v1, %v1988_v47  ;;  %v3510_v47 = vld [vmem:[%s4154_s11 + $0x50] sm:$0x1] }
 0x857   : > { %v1989_v4 = vsub.f32 2.0, %v1982_v63 }
 0x858   : > { %v2002_v53 = vmul.f32 %v4939_v15, %v1995_v44 }
 0x859   : > { %v3847_v61 = vpop.eup %3846  ;;  %v1996_v20 = vmul.f32 %v3845_v60, %v1989_v4 }
 0x85a   : > { %v2009_v19 = vpack.c.bf16 %v2002_v53, %v2002_v53  ;;  %v2237_v57 = vmul.f32 %v3847_v61, %v2221_v9 }
 0x85b   : > { %v2003_v36 = vmul.f32 %v4941_v43, %v1996_v20 }
 0x85c   : > { %3508 = vst.msk [vmem:[%s4154_s11 + $0x48] sm:$0xf] %vm1478_vm0, %v2009_v19  ;;  %v2244_v55 = vsub.f32 2.0, %v2237_v57  ;;  %v2033_v26 = vunpack.c.l.b16 %v2009_v19 }
 0x85d   : > { %v2010_v49 = vpack.c.bf16 %v2003_v36, %v2003_v36 }
 0x85e   : > { %v2251_v28 = vmul.f32 %v3847_v61, %v2244_v55 }
 0x85f   : > { %3509 = vst.msk [vmem:[%s4154_s11 + $0x4c] sm:$0xf] %vm1478_vm0, %v2010_v49  ;;  %v2034_v62 = vunpack.c.l.b16 %v2010_v49 }
 0x860   : > { %v2258_v22 = vmul.f32 %v4947_v46, %v2251_v28 }
 0x861   : > { %v2038_v7 = vpack.c.b16 %v2034_v62, %v2033_v26 }
 0x862   : > { %v2265_v15 = vpack.c.bf16 %v2258_v22, %v2258_v22 }
 0x863   : > { %3514 = vmatmul.msk.bf16.gmra.mxu2 %vm1371_vm14, %v2038_v7 }
 0x864   : > { %3525 = vst.msk [vmem:[%s4154_s11 + $0x68] sm:$0xf] %vm1478_vm0, %v2265_v15  ;;  %v2289_v2 = vunpack.c.l.b16 %v2265_v15 }
 0x866   : > { %v2293_v43 = vpack.c.b16 %v2289_v2, %v2288_v39 }
 0x867   : > { %3673 = vrot.lane.b32.xlu2 %v3672_v0, %s3955_s16 }
 0x868   : > { %3530 = vmatmul.msk.bf16.gmra.mxu1 %vm1371_vm14, %v2293_v43 }
 0x86f   : > { %3688 = vrot.lane.b32.xlu2 %v3687_v27, %s3955_s16 }
 0x8a0   : > { %v2075_v46 = vpop.f32.mrf.mxu2 }
 0x8a3   : > { %v2330_v18 = vpop.f32.mrf.mxu1 }
 0x8a7   : > { %v2224_v42 = vpop.xlane.xlu1 %2223 }
 0x8a8   : > { %3848 = vrcp.f32 %v2224_v42  ;;  %v2077_v3 = vpop.f32.mrf.mxu2 }
 0x8a9   : > { %v3677_v8 = vpack.i.bf16 %v2077_v3, %v2075_v46 }
 0x8ab   : > { %v2332_v14 = vpop.f32.mrf.mxu1  ;;  %3678 = vrot.lane.b32.xlu1 %v3677_v8, %s3956_s17 }
 0x8ac   : > { %v3682_v23 = vpack.i.bf16 %v2332_v14, %v2330_v18 }
 0x8ae   : > { %v3849_v13 = vpop.eup %3848  ;;  %3683 = vrot.lane.b32.xlu0 %v3682_v23, %s3957_s27 }
 0x8af   : > { %v2238_v0 = vmul.f32 %v3849_v13, %v2224_v42 }
 0x8b0   : > { %v2080_v59 = vpop.f32.mrf.mxu2 }
 0x8b1   : > { %v2245_v10 = vsub.f32 2.0, %v2238_v0 }
 0x8b3   : > { %v2252_v27 = vmul.f32 %v3849_v13, %v2245_v10  ;;  %v2335_v34 = vpop.f32.mrf.mxu1 }
 0x8b5   : > { %v2259_v21 = vmul.f32 %v4974_v50, %v2252_v27 }
 0x8b7   : > { %v2266_v38 = vpack.c.bf16 %v2259_v21, %v2259_v21 }
 0x8b8   : > { %v2082_v12 = vpop.f32.mrf.mxu2 }
 0x8b9   : > { %v2275_v33 = vsel %vm4770_vm4, %v2266_v38, %v3526_v54  ;;  %v3692_v45 = vpack.i.bf16 %v2082_v12, %v2080_v59  ;;  %v2290_v17 = vunpack.c.l.b16 %v2266_v38 }
 0x8ba   : > { %3527 = vst [vmem:[%s4154_s11 + $0x6c] sm:$0x1] %v2275_v33 }
 0x8bb   : > { %v2337_v35 = vpop.f32.mrf.mxu1  ;;  %3693 = vrot.lane.b32.xlu1 %v3692_v45, %s3956_s17  ;;  %v2294_v56 = vpack.c.b16 %v2290_v17, %v2290_v17 }
 0x8bc   : > { %v3697_v40 = vpack.i.bf16 %v2337_v35, %v2335_v34 }
 0x8bd   : > { %3531 = vmatmul.msk.bf16.gmra.mxu1 %vm1371_vm14, %v2294_v56 }
 0x8be   : > { %3698 = vrot.lane.b32.xlu2 %v3697_v40, %s3957_s27 }
 0x8c2   : > { %v1969_v50 = vpop.xlane.xlu2 %1968 }
 0x8c3   : > { %3850 = vrcp.f32 %v1969_v50  ;;  %3703 = vrot.lane.b32.xlu1 %v3702_v51, %s3955_s16 }
 0x8c9   : > { %v3851_v29 = vpop.eup %3850 }
 0x8ca   : > { %v1983_v1 = vmul.f32 %v3851_v29, %v1969_v50  ;;  %v3674_v19 = vpop.permute.xlu2 %3673 }
 0x8cb   : > { %2368 = vrot.lane.b32.xlu1 %v4888_v52, %s3955_s16  ;;  %v3676_v57 = vunpack.i.h.bf16 %v3674_v19  ;;  %v3675_v36 = vunpack.i.l.bf16 %v3674_v19  ;;  %v3895_v19 = vld [vmem:[%s4166_s23 + $0x8] sm:$0xff] }
 0x8cc   : > { %v1990_v24 = vsub.f32 2.0, %v1983_v1 }
 0x8cd   : > { %v2434_v62 = vsel %vm1318_vm12, %v4829_v58, %v3676_v57  ;;  %v2433_v22 = vsel %vm1318_vm12, %v4825_v25, %v3675_v36 }
 0x8ce   : > { %v1997_v9 = vmul.f32 %v3851_v29, %v1990_v24 }
 0x8d0   : > { %v2004_v60 = vmul.f32 %v4983_v37, %v1997_v9  ;;  %v3602_v37 = vld [vmem:[%s5432_s20 + $0x8] sm:$0xff] }
 0x8d1   : > { %2498 = vmatpush.bf16.msra.mxu3 %v3602_v37 }
 0x8d2   : > { %v2011_v63 = vpack.c.bf16 %v2004_v60, %v2004_v60  ;;  %v3689_v18 = vpop.permute.xlu2 %3688 }
 0x8d3   : > { %v3691_v3 = vunpack.i.h.bf16 %v3689_v18  ;;  %v3690_v8 = vunpack.i.l.bf16 %v3689_v18 }
 0x8d4   : > { %v2020_v44 = vsel %vm4770_vm4, %v2011_v63, %v3510_v47  ;;  %v2035_v4 = vunpack.c.l.b16 %v2011_v63 }
 0x8d5   : > { %3511 = vst [vmem:[%s4154_s11 + $0x50] sm:$0x1] %v2020_v44  ;;  %2499 = vmatpush.bf16.msra.mxu3 %v3601_v5  ;;  %v2436_v13 = vsel %vm1318_vm12, %v4834_v48, %v3691_v3  ;;  %v2435_v0 = vsel %vm1318_vm12, %v4832_v6, %v3690_v8  ;;  %v3897_v3 = vld [vmem:[%s4166_s23 + $0x18] sm:$0xff] }
 0x8d6   : > { %v2039_v11 = vpack.c.b16 %v2035_v4, %v2035_v4 }
 0x8d8   : > { %3515 = vmatmul.msk.bf16.gmra.mxu2 %vm1371_vm14, %v2039_v11 }
 0x8e5   : > { %v2340_v16 = vpop.f32.mrf.mxu1 }
 0x8e6   : > { %v2085_v51 = vpop.f32.mrf.mxu2 }
 0x8ed   : > { %v2342_v53 = vpop.f32.mrf.mxu1 }
 0x8ee   : > { %v3712_v52 = vpack.i.bf16 %v2342_v53, %v2340_v16  ;;  %v2087_v61 = vpop.f32.mrf.mxu2 }
 0x8ef   : > { %v3707_v20 = vpack.i.bf16 %v2087_v61, %v2085_v51  ;;  %v3894_v51 = vld [vmem:[%s4166_s23] sm:$0xff] }
 0x8f0   : > { %3713 = vrot.lane.b32.xlu0 %v3712_v52, %s3957_s27 }
 0x8f1   : > { %3708 = vrot.lane.b32.xlu2 %v3707_v20, %s3956_s17 }
 0x918   : > { %v3699_v58 = vpop.permute.xlu2 %3698 }
 0x919   : > { %v3701_v59 = vunpack.i.h.bf16 %v3699_v58  ;;  %v3700_v10 = vunpack.i.l.bf16 %v3699_v58 }
 0x91d   : > { %v3679_v55 = vpop.permute.xlu1 %3678 }
 0x91e   : > { %v3681_v49 = vunpack.i.h.bf16 %v3679_v55  ;;  %v3680_v28 = vunpack.i.l.bf16 %v3679_v55 }
 0x920   : > { %v3684_v26 = vpop.permute.xlu0 %3683  ;;  %v2442_v39 = vsel %vm2440_vm5, %v2434_v62, %v3681_v49  ;;  %v2441_v2 = vsel %vm2440_vm5, %v2433_v22, %v3680_v28 }
 0x921   : > { %v3686_v7 = vunpack.i.h.bf16 %v3684_v26  ;;  %v3685_v15 = vunpack.i.l.bf16 %v3684_v26 }
 0x923   : > { %v2449_v43 = vsel %vm2448_vm6, %v2441_v2, %v3685_v15  ;;  %v2450_v46 = vsel %vm2448_vm6, %v2442_v39, %v3686_v7 }
 0x924   : > { %v2456_v42 = vpack.c.bf16 %v2450_v46, %v2449_v43 }
 0x926   : > { %3540 = vmatmul.msk.bf16.vlgmr.msra.gmra.mxu3 %vm814_vm3, %v2456_v42 }
 0x92d   : > { %v3694_v14 = vpop.permute.xlu1 %3693 }
 0x92e   : > { %v3696_v23 = vunpack.i.h.bf16 %v3694_v14  ;;  %v3695_v25 = vunpack.i.l.bf16 %v3694_v14 }
 0x930   : > { %v2444_v27 = vsel %vm2440_vm5, %v2436_v13, %v3696_v23  ;;  %v2443_v34 = vsel %vm2440_vm5, %v2435_v0, %v3695_v25  ;;  %v3898_v13 = vld [vmem:[%s4166_s23 + $0x20] sm:$0xff] }
 0x931   : > { %v2451_v21 = vsel %vm2448_vm6, %v2443_v34, %v3700_v10  ;;  %v2452_v54 = vsel %vm2448_vm6, %v2444_v27, %v3701_v59 }
 0x932   : > { %v2457_v38 = vpack.c.bf16 %v2452_v54, %v2451_v21  ;;  %v3899_v21 = vld [vmem:[%s4166_s23 + $0x28] sm:$0xff] }
 0x935   : > { %v3704_v45 = vpop.permute.xlu1 %3703 }
 0x936   : > { %3541 = vmatmul.msk.bf16.gmra.mxu3 %vm814_vm3, %v2457_v38  ;;  %v3706_v17 = vunpack.i.h.bf16 %v3704_v45  ;;  %v3705_v35 = vunpack.i.l.bf16 %v3704_v45 }
 0x938   : > { %v2438_v29 = vsel %vm1318_vm12, %v4838_v32, %v3706_v17  ;;  %v2437_v1 = vsel %vm1318_vm12, %v4836_v30, %v3705_v35  ;;  %v5066_v30 = vld [vmem:[%s5433_s24] ss:$0 sm:$0xff] }
 0x93a   : > { %v2345_v12 = vpop.f32.mrf.mxu1 }
 0x93b   : > { %2424 = vrot.lane.b32.xlu0 %v2345_v12, %s3957_s27 }
 0x93d   : > { %v2369_v5 = vpop.permute.xlu1 %2368 }
 0x93e   : > { %v2439_v36 = vsel %vm1318_vm12, %v4840_v41, %v2369_v5  ;;  %v3896_v41 = vld [vmem:[%s4166_s23 + $0x10] sm:$0xff] }
 0x942   : > { %v2347_v48 = vpop.f32.mrf.mxu1 }
 0x94b   : > { %v3709_v6 = vpop.permute.xlu2 %3708 }
 0x94c   : > { %v3711_v56 = vunpack.i.h.bf16 %v3709_v6  ;;  %v3710_v40 = vunpack.i.l.bf16 %v3709_v6 }
 0x94e   : > { %v2445_v47 = vsel %vm2440_vm5, %v2437_v1, %v3710_v40  ;;  %v2446_v63 = vsel %vm2440_vm5, %v2438_v29, %v3711_v56 }
 0x95b   : > { %v2090_v33 = vpop.f32.mrf.mxu2 }
 0x95c   : > { %2396 = vrot.lane.b32.xlu2 %v2090_v33, %s3956_s17 }
 0x962   : > { %v3714_v50 = vpop.permute.xlu0 %3713 }
 0x963   : > { %v3716_v24 = vunpack.i.h.bf16 %v3714_v50  ;;  %v3715_v9 = vunpack.i.l.bf16 %v3714_v50  ;;  %v2092_v60 = vpop.f32.mrf.mxu2 }
 0x965   : > { %v2453_v44 = vsel %vm2448_vm6, %v2445_v47, %v3715_v9  ;;  %v2454_v4 = vsel %vm2448_vm6, %v2446_v63, %v3716_v24 }
 0x966   : > { %v2458_v11 = vpack.c.bf16 %v2454_v4, %v2453_v44 }
 0x968   : > { %3542 = vmatmul.msk.bf16.gmra.mxu3 %vm814_vm3, %v2458_v11 }
 0x9a9   : > { %v2501_v32 = vpop.f32.mrf.mxu3 }
 0x9aa   : > { %v2502_v16 = vadd.f32 %v5066_v30, %v2501_v32 }
 0x9ac   : > { %v2520_v53 = vadd.f32 %v3894_v51, %v2502_v16  ;;  %v3900_v16 = vld [vmem:[%s4166_s23 + $0x30] sm:$0x1] }
 0x9ad   : > { %v2425_v28 = vpop.permute.xlu0 %2424 }
 0x9ae   : > { %v5070_v52 = vclamps-f32 %v2520_v53, 65504.0 }
 0x9b0   : > { %v2543_v61 = vsel %vm814_vm3, %v5070_v52, 0.0 }
 0x9b1   : > { %v2503_v20 = vpop.f32.mrf.mxu3  ;;  %2544 = vadd.xlane.f32.xlu1 %v2543_v61 }
 0x9b2   : > { %v2504_v37 = vadd.f32 %v5066_v30, %v2503_v20 }
 0x9b4   : > { %v2521_v57 = vadd.f32 %v3895_v19, %v2504_v37 }
 0x9b6   : > { %v5078_v55 = vclamps-f32 %v2521_v57, 65504.0  ;;  %v2397_v49 = vpop.permute.xlu2 %2396 }
 0x9b7   : > { %v2447_v26 = vsel %vm2440_vm5, %v2439_v36, %v2397_v49 }
 0x9b8   : > { %v2455_v62 = vsel %vm2448_vm6, %v2447_v26, %v2425_v28  ;;  %v2546_v22 = vsel %vm814_vm3, %v5078_v55, 0.0 }
 0x9b9   : > { %v2506_v7 = vpop.f32.mrf.mxu3  ;;  %2547 = vadd.xlane.f32.xlu2 %v2546_v22  ;;  %v2459_v15 = vpack.c.bf16 %v2455_v62, %v2455_v62 }
 0x9ba   : > { %v2507_v39 = vadd.f32 %v5066_v30, %v2506_v7 }
 0x9bb   : > { %3543 = vmatmul.msk.bf16.gmra.mxu3 %vm814_vm3, %v2459_v15  ;;  %v3604_v15 = vld [vmem:[%s4130_s6 + $0x8] sm:$0xff] }
 0x9bc   : > { %v2522_v2 = vadd.f32 %v3896_v41, %v2507_v39  ;;  %2759 = vmatpush.bf16.msra.mxu2 %v3604_v15 }
 0x9be   : > { %v5087_v43 = vclamps-f32 %v2522_v2, 65504.0 }
 0x9c0   : > { %v2549_v46 = vsel %vm814_vm3, %v5087_v43, 0.0 }
 0x9c1   : > { %v2508_v18 = vpop.f32.mrf.mxu3  ;;  %2550 = vadd.xlane.f32.xlu0 %v2549_v46  ;;  %v3603_v46 = vld [vmem:[%s4130_s6] sm:$0xff] }
 0x9c2   : > { %v2509_v42 = vadd.f32 %v5066_v30, %v2508_v18  ;;  %2760 = vmatpush.bf16.msra.mxu2 %v3603_v46 }
 0x9c4   : > { %v2523_v8 = vadd.f32 %v3897_v3, %v2509_v42 }
 0x9c6   : > { %v5093_v58 = vclamps-f32 %v2523_v8, 65504.0 }
 0x9c8   : > { %v2552_v14 = vsel %vm814_vm3, %v5093_v58, 0.0 }
 0x9c9   : > { %2553 = vadd.xlane.f32.xlu1 %v2552_v14 }
 0x9eb   : > { %v2511_v23 = vpop.f32.mrf.mxu3 }
 0x9ec   : > { %v2512_v25 = vadd.f32 %v5066_v30, %v2511_v23 }
 0x9ee   : > { %v2524_v0 = vadd.f32 %v3898_v13, %v2512_v25 }
 0x9f0   : > { %v5099_v59 = vclamps-f32 %v2524_v0, 65504.0 }
 0x9f2   : > { %v2555_v10 = vsel %vm814_vm3, %v5099_v59, 0.0 }
 0x9f3   : > { %v2513_v27 = vpop.f32.mrf.mxu3  ;;  %2556 = vadd.xlane.f32.xlu2 %v2555_v10 }
 0x9f4   : > { %v2514_v34 = vadd.f32 %v5066_v30, %v2513_v27 }
 0x9f6   : > { %v2525_v54 = vadd.f32 %v3899_v21, %v2514_v34 }
 0x9f8   : > { %v5105_v38 = vclamps-f32 %v2525_v54, 65504.0 }
 0x9fa   : > { %v2558_v12 = vsel %vm814_vm3, %v5105_v38, 0.0 }
 0x9fb   : > { %2559 = vadd.xlane.f32.xlu0 %v2558_v12 }
 0xa24   : > { %v2545_v48 = vpop.xlane.xlu1 %2544 }
 0xa25   : > { %v2564_v33 = vmul.f32 %v2545_v48, %v4180_v31 }
 0xa27   : > { %v5111_v45 = vsub.f32 %v5070_v52, %v2564_v33 }
 0xa29   : > { %v2578_v6 = vmul.f32 %v5111_v45, %v5111_v45 }
 0xa2b   : > { %v2585_v17 = vsel %vm814_vm3, %v2578_v6, 0.0 }
 0xa2c   : > { %v2548_v35 = vpop.xlane.xlu2 %2547  ;;  %2586 = vadd.xlane.f32.xlu1 %v2585_v17 }
 0xa2d   : > { %v2565_v56 = vmul.f32 %v2548_v35, %v4180_v31 }
 0xa2f   : > { %v5118_v40 = vsub.f32 %v5078_v55, %v2565_v56 }
 0xa31   : > { %v2579_v50 = vmul.f32 %v5118_v40, %v5118_v40 }
 0xa33   : > { %v2588_v29 = vsel %vm814_vm3, %v2579_v50, 0.0 }
 0xa34   : > { %v2551_v1 = vpop.xlane.xlu0 %2550  ;;  %2589 = vadd.xlane.f32.xlu2 %v2588_v29  ;;  %v5168_v29 = vld [vmem:[%s5434_s7] ss:$0 sm:$0xff] }
 0xa35   : > { %v2566_v24 = vmul.f32 %v2551_v1, %v4180_v31 }
 0xa37   : > { %v5125_v9 = vsub.f32 %v5087_v43, %v2566_v24 }
 0xa39   : > { %v2580_v60 = vmul.f32 %v5125_v9, %v5125_v9 }
 0xa3b   : > { %v2591_v47 = vsel %vm814_vm3, %v2580_v60, 0.0 }
 0xa3c   : > { %2592 = vadd.xlane.f32.xlu1 %v2591_v47  ;;  %v2554_v63 = vpop.xlane.xlu1 %2553 }
 0xa3d   : > { %v2567_v44 = vmul.f32 %v2554_v63, %v4180_v31 }
 0xa3e   : > { %v2516_v4 = vpop.f32.mrf.mxu3 }
 0xa3f   : > { %v5132_v11 = vsub.f32 %v5093_v58, %v2567_v44  ;;  %v2517_v32 = vadd.f32 %v5066_v30, %v2516_v4 }
 0xa41   : > { %v2526_v51 = vadd.f32 %v3900_v16, %v2517_v32  ;;  %v2581_v53 = vmul.f32 %v5132_v11, %v5132_v11  ;;  %v5180_v16 = vld [vmem:[%s5435_s3] ss:$0 sm:$0xff] }
 0xa43   : > { %v5138_v61 = vclamps-f32 %v2526_v51, 65504.0  ;;  %v2594_v20 = vsel %vm814_vm3, %v2581_v53, 0.0 }
 0xa44   : > { %2595 = vadd.xlane.f32.xlu2 %v2594_v20 }
 0xa45   : > { %v2561_v37 = vsel %vm833_vm2, %v5138_v61, 0.0 }
 0xa46   : > { %v2518_v5 = vpop.f32.mrf.mxu3  ;;  %2562 = vadd.xlane.f32.xlu0 %v2561_v37 }
 0xa66   : > { %v2557_v19 = vpop.xlane.xlu2 %2556 }
 0xa67   : > { %v2568_v57 = vmul.f32 %v2557_v19, %v4180_v31 }
 0xa69   : > { %v5145_v30 = vsub.f32 %v5099_v59, %v2568_v57 }
 0xa6b   : > { %v2582_v36 = vmul.f32 %v5145_v30, %v5145_v30 }
 0xa6d   : > { %v2597_v49 = vsel %vm814_vm3, %v2582_v36, 0.0 }
 0xa6e   : > { %v2560_v28 = vpop.xlane.xlu0 %2559  ;;  %2598 = vadd.xlane.f32.xlu0 %v2597_v49 }
 0xa6f   : > { %v2569_v26 = vmul.f32 %v2560_v28, %v4180_v31 }
 0xa71   : > { %v5152_v62 = vsub.f32 %v5105_v38, %v2569_v26 }
 0xa73   : > { %v2583_v22 = vmul.f32 %v5152_v62, %v5152_v62 }
 0xa75   : > { %v2600_v7 = vsel %vm814_vm3, %v2583_v22, 0.0 }
 0xa76   : > { %2601 = vadd.xlane.f32.xlu1 %v2600_v7 }
 0xa9f   : > { %v2587_v39 = vpop.xlane.xlu1 %2586 }
 0xaa0   : > { %v2606_v41 = vmul.f32 %v2587_v39, %v4180_v31 }
 0xaa2   : > { %v2613_v2 = vadd.f32 1e-05, %v2606_v41 }
 0xaa4   : > { %3852 = vrsqrt.f32 %v2613_v2  ;;  %vm2626_vm8 = vweird.f32 %v2613_v2 }
 0xaa7   : > { %v2590_v18 = vpop.xlane.xlu2 %2589 }
 0xaa8   : > { %v2607_v42 = vmul.f32 %v2590_v18, %v4180_v31 }
 0xaaa   : > { %v3853_v3 = vpop.eup %3852  ;;  %v2614_v8 = vadd.f32 1e-05, %v2607_v42 }
 0xaab   : > { %v2621_v14 = vmul.f32 %v3853_v3, %v2613_v2  ;;  %vm2627_vm7 = vweird.f32 %v3853_v3 }
 0xaac   : > { %3854 = vrsqrt.f32 %v2614_v8  ;;  %vm2628_vm9 = vmor %vm2626_vm8, %vm2627_vm7  ;;  %vm2636_vm11 = vweird.f32 %v2614_v8 }
 0xaad   : > { %v2622_v23 = vmul.f32 %v3853_v3, %v2621_v14 }
 0xaaf   : > { %v2623_v25 = vmul.f32 0.5, %v2622_v23  ;;  %v2593_v13 = vpop.xlane.xlu1 %2592 }
 0xab0   : > { %v2608_v0 = vmul.f32 %v2593_v13, %v4180_v31 }
 0xab1   : > { %v2624_v10 = vsub.f32 1.5, %v2623_v25 }
 0xab2   : > { %v3855_v27 = vpop.eup %3854  ;;  %v2615_v34 = vadd.f32 1e-05, %v2608_v0 }
 0xab3   : > { %v2625_v21 = vmul.f32 %v3853_v3, %v2624_v10  ;;  %v2631_v54 = vmul.f32 %v3855_v27, %v2614_v8  ;;  %vm2637_vm10 = vweird.f32 %v3855_v27 }
 0xab4   : > { %3856 = vrsqrt.f32 %v2615_v34  ;;  %vm2638_vm12 = vmor %vm2636_vm11, %vm2637_vm10  ;;  %vm2646_vm14 = vweird.f32 %v2615_v34 }
 0xab5   : > { %v2632_v12 = vmul.f32 %v3855_v27, %v2631_v54  ;;  %v2629_v48 = vsel %vm2628_vm9, %v3853_v3, %v2625_v21 }
 0xab6   : > { %v2690_v1 = vmul.f32 %v2629_v48, %v5111_v45 }
 0xab7   : > { %v2633_v33 = vmul.f32 0.5, %v2632_v12  ;;  %v2596_v6 = vpop.xlane.xlu2 %2595 }
 0xab8   : > { %v2609_v17 = vmul.f32 %v2596_v6, %v4180_v31  ;;  %v2700_v45 = vmul.f32 %v5168_v29, %v2690_v1 }
 0xab9   : > { %v2634_v35 = vsub.f32 1.5, %v2633_v33  ;;  %v2563_v56 = vpop.xlane.xlu0 %2562 }
 0xaba   : > { %v3857_v50 = vpop.eup %3856  ;;  %v2616_v24 = vadd.f32 1e-05, %v2609_v17  ;;  %v2570_v60 = vmul.f32 %v2563_v56, %v4180_v31  ;;  %v2710_v36 = vadd.f32 %v5180_v16, %v2700_v45 }
 0xabb   : > { %v2635_v47 = vmul.f32 %v3855_v27, %v2634_v35  ;;  %v2641_v63 = vmul.f32 %v3857_v50, %v2615_v34  ;;  %vm2647_vm13 = vweird.f32 %v3857_v50 }
 0xabc   : > { %3858 = vrsqrt.f32 %v2616_v24  ;;  %v5173_v44 = vsub.f32 %v5138_v61, %v2570_v60  ;;  %vm2648_vm15 = vmor %vm2646_vm14, %vm2647_vm13  ;;  %vm2656_vm1 = vweird.f32 %v2616_v24 }
 0xabd   : > { %v2639_v4 = vsel %vm2638_vm12, %v3855_v27, %v2635_v47  ;;  %v2642_v32 = vmul.f32 %v3857_v50, %v2641_v63 }
 0xabe   : > { %v2691_v51 = vmul.f32 %v2639_v4, %v5118_v40  ;;  %v2584_v53 = vmul.f32 %v5173_v44, %v5173_v44 }
 0xabf   : > { %v2643_v20 = vmul.f32 0.5, %v2642_v32 }
 0xac0   : > { %v2701_v37 = vmul.f32 %v5168_v29, %v2691_v51  ;;  %v2603_v5 = vsel %vm833_vm2, %v2584_v53, 0.0 }
 0xac1   : > { %v2644_v19 = vsub.f32 1.5, %v2643_v20  ;;  %2604 = vadd.xlane.f32.xlu2 %v2603_v5 }
 0xac2   : > { %v3859_v57 = vpop.eup %3858  ;;  %v2711_v49 = vadd.f32 %v5180_v16, %v2701_v37 }
 0xac3   : > { %v2645_v28 = vmul.f32 %v3857_v50, %v2644_v19  ;;  %v2651_v26 = vmul.f32 %v3859_v57, %v2616_v24  ;;  %vm2657_vm0 = vweird.f32 %v3859_v57 }
 0xac4   : > { %v2717_v22 = vpack.c.bf16 %v2711_v49, %v2710_v36  ;;  %vm2658_vm4 = vmor %vm2656_vm1, %vm2657_vm0  ;;  %v5213_v36 = vld [vmem:[%s5436_s18] ss:$0 sm:$0xff] }
 0xac5   : > { %v2652_v40 = vmul.f32 %v3859_v57, %v2651_v26  ;;  %v2649_v7 = vsel %vm2648_vm15, %v3857_v50, %v2645_v28 }
 0xac6   : > { %3559 = vmatmul.msk.bf16.vlgmr.msra.gmra.mxu2 %vm814_vm3, %v2717_v22  ;;  %v2692_v41 = vmul.f32 %v2649_v7, %v5125_v9 }
 0xac7   : > { %v2653_v15 = vmul.f32 0.5, %v2652_v40 }
 0xac8   : > { %v2702_v42 = vmul.f32 %v5168_v29, %v2692_v41 }
 0xac9   : > { %v2654_v39 = vsub.f32 1.5, %v2653_v15 }
 0xaca   : > { %v2712_v8 = vadd.f32 %v5180_v16, %v2702_v42 }
 0xacb   : > { %v2655_v2 = vmul.f32 %v3859_v57, %v2654_v39 }
 0xacd   : > { %v2659_v46 = vsel %vm2658_vm4, %v3859_v57, %v2655_v2 }
 0xace   : > { %v2693_v18 = vmul.f32 %v2659_v46, %v5132_v11 }
 0xad0   : > { %v2703_v3 = vmul.f32 %v5168_v29, %v2693_v18 }
 0xad2   : > { %v2713_v14 = vadd.f32 %v5180_v16, %v2703_v3 }
 0xad4   : > { %v2718_v23 = vpack.c.bf16 %v2713_v14, %v2712_v8 }
 0xad6   : > { %3560 = vmatmul.msk.bf16.gmra.mxu2 %vm814_vm3, %v2718_v23 }
 0xae1   : > { %v2599_v25 = vpop.xlane.xlu0 %2598 }
 0xae2   : > { %v2610_v9 = vmul.f32 %v2599_v25, %v4180_v31 }
 0xae4   : > { %v2617_v13 = vadd.f32 1e-05, %v2610_v9 }
 0xae6   : > { %3860 = vrsqrt.f32 %v2617_v13  ;;  %vm2666_vm6 = vweird.f32 %v2617_v13 }
 0xae9   : > { %v2602_v0 = vpop.xlane.xlu1 %2601 }
 0xaea   : > { %v2611_v10 = vmul.f32 %v2602_v0, %v4180_v31  ;;  %v3608_v0 = vld [vmem:[%s4139_s26 + $0x18] sm:$0xff] }
 0xaeb   : > { %3118 = vmatpush.bf16.msrb.mxu0 %v3608_v0 }
 0xaec   : > { %v3861_v11 = vpop.eup %3860  ;;  %v2618_v27 = vadd.f32 1e-05, %v2611_v10 }
 0xaed   : > { %v2661_v34 = vmul.f32 %v3861_v11, %v2617_v13  ;;  %vm2667_vm5 = vweird.f32 %v3861_v11 }
 0xaee   : > { %3862 = vrsqrt.f32 %v2618_v27  ;;  %vm2668_vm7 = vmor %vm2666_vm6, %vm2667_vm5  ;;  %vm2676_vm9 = vweird.f32 %v2618_v27 }
 0xaef   : > { %v2662_v21 = vmul.f32 %v3861_v11, %v2661_v34 }
 0xaf1   : > { %v2663_v54 = vmul.f32 0.5, %v2662_v21 }
 0xaf3   : > { %v2664_v12 = vsub.f32 1.5, %v2663_v54 }
 0xaf4   : > { %v3863_v48 = vpop.eup %3862 }
 0xaf5   : > { %v2665_v33 = vmul.f32 %v3861_v11, %v2664_v12  ;;  %v2671_v6 = vmul.f32 %v3863_v48, %v2618_v27  ;;  %vm2677_vm8 = vweird.f32 %v3863_v48 }
 0xaf6   : > { %vm2678_vm10 = vmor %vm2676_vm9, %vm2677_vm8 }
 0xaf7   : > { %v2672_v17 = vmul.f32 %v3863_v48, %v2671_v6  ;;  %v2669_v35 = vsel %vm2668_vm7, %v3861_v11, %v2665_v33 }
 0xaf8   : > { %v2694_v1 = vmul.f32 %v2669_v35, %v5145_v30 }
 0xaf9   : > { %v2673_v56 = vmul.f32 0.5, %v2672_v17 }
 0xafa   : > { %v2704_v63 = vmul.f32 %v5168_v29, %v2694_v1 }
 0xafb   : > { %v2674_v50 = vsub.f32 1.5, %v2673_v56 }
 0xafc   : > { %v2714_v32 = vadd.f32 %v5180_v16, %v2704_v63 }
 0xafd   : > { %v2675_v24 = vmul.f32 %v3863_v48, %v2674_v50 }
 0xaff   : > { %v2679_v60 = vsel %vm2678_vm10, %v3863_v48, %v2675_v24  ;;  %v3607_v48 = vld [vmem:[%s4139_s26 + $0x10] sm:$0xff] }
 0xb00   : > { %v2695_v47 = vmul.f32 %v2679_v60, %v5152_v62  ;;  %3119 = vmatpush.bf16.msrb.mxu0 %v3607_v48 }
 0xb02   : > { %v2705_v4 = vmul.f32 %v5168_v29, %v2695_v47  ;;  %v3606_v47 = vld [vmem:[%s4139_s26 + $0x8] sm:$0xff] }
 0xb04   : > { %v2715_v45 = vadd.f32 %v5180_v16, %v2705_v4  ;;  %3120 = vmatpush.bf16.msrb.mxu0 %v3606_v47 }
 0xb06   : > { %v2719_v51 = vpack.c.bf16 %v2715_v45, %v2714_v32 }
 0xb08   : > { %3561 = vmatmul.msk.bf16.gmra.mxu2 %vm814_vm3, %v2719_v51 }
 0xb34   : > { %v2605_v53 = vpop.xlane.xlu2 %2604 }
 0xb35   : > { %v2612_v30 = vmul.f32 %v2605_v53, %v4180_v31 }
 0xb37   : > { %v2619_v20 = vadd.f32 1e-05, %v2612_v30 }
 0xb39   : > { %3864 = vrsqrt.f32 %v2619_v20  ;;  %vm2686_vm12 = vweird.f32 %v2619_v20 }
 0xb3f   : > { %v3865_v37 = vpop.eup %3864 }
 0xb40   : > { %v2681_v5 = vmul.f32 %v3865_v37, %v2619_v20  ;;  %vm2687_vm11 = vweird.f32 %v3865_v37 }
 0xb41   : > { %vm2688_vm13 = vmor %vm2686_vm12, %vm2687_vm11 }
 0xb42   : > { %v2682_v62 = vmul.f32 %v3865_v37, %v2681_v5  ;;  %v3605_v5 = vld [vmem:[%s4139_s26] sm:$0xff] }
 0xb43   : > { %3121 = vmatpush.bf16.msrb.mxu0 %v3605_v5 }
 0xb44   : > { %v2683_v19 = vmul.f32 0.5, %v2682_v62 }
 0xb46   : > { %v2684_v57 = vsub.f32 1.5, %v2683_v19 }
 0xb48   : > { %v2685_v49 = vmul.f32 %v3865_v37, %v2684_v57 }
 0xb49   : > { %v2762_v28 = vpop.f32.mrf.mxu2 }
 0xb4a   : > { %v2689_v26 = vsel %vm2688_vm13, %v3865_v37, %v2685_v49  ;;  %v5216_v31 = vadd.f32 %v5213_v36, %v2762_v28 }
 0xb4b   : > { %v2696_v22 = vmul.f32 %v2689_v26, %v5173_v44 }
 0xb4c   : > { %v5220_v40 = vmul.f32 0.70710677, %v5216_v31 }
 0xb4d   : > { %v2706_v7 = vmul.f32 %v5168_v29, %v2696_v22 }
 0xb4e   : > { %v2809_v15 = vand.u32 2147483647, %v5220_v40 }
 0xb4f   : > { %v2716_v39 = vadd.f32 %v5180_v16, %v2706_v7 }
 0xb50   : > { %v2816_v41 = vmul.f32 0.3275911, %v2809_v15  ;;  %v2998_v60 = vsub.f32 0.0, %v2809_v15 }
 0xb51   : > { %v2764_v2 = vpop.f32.mrf.mxu2  ;;  %v2720_v46 = vpack.c.bf16 %v2716_v39, %v2716_v39 }
 0xb52   : > { %v2823_v18 = vadd.f32 1.0, %v2816_v41  ;;  %v5226_v42 = vadd.f32 %v5213_v36, %v2764_v2  ;;  %v3005_v37 = vmul.f32 %v2998_v60, %v2809_v15 }
 0xb53   : > { %3562 = vmatmul.msk.bf16.gmra.mxu2 %vm814_vm3, %v2720_v46 }
 0xb54   : > { %3866 = vrcp.f32 %v2823_v18  ;;  %v5230_v44 = vmul.f32 0.70710677, %v5226_v42  ;;  %v2841_v10 = vand.u32 2147483648, %v2823_v18  ;;  %v2839_v34 = vand.u32 2147483647, %v2823_v18 }
 0xb55   : > { %vm2835_vm15 = vweird.f32 %v2823_v18  ;;  %v3012_v2 = vmul.f32 1.442695, %v3005_v37 }
 0xb56   : > { %v5233_v29 = vand.u32 2147483647, %v5230_v44  ;;  %v2842_v33 = vor.u32 1.1754944e-38, %v2841_v10  ;;  %vm2840_vm1 = vcmp.eq.f32.partialorder %v2839_v34, 8.507059e+37 }
 0xb58   : > { %v2817_v3 = vmul.f32 0.3275911, %v5233_v29  ;;  %v2999_v7 = vsub.f32 0.0, %v5233_v29 }
 0xb59   : > { %v2767_v16 = vpop.f32.mrf.mxu2 }
 0xb5a   : > { %v3867_v8 = vpop.eup %3866  ;;  %v5237_v14 = vadd.f32 %v5213_v36, %v2767_v16  ;;  %v2824_v25 = vadd.f32 1.0, %v2817_v3 }
 0xb5b   : > { %v2831_v23 = vmul.f32 %v3867_v8, %v2823_v18  ;;  %vm2836_vm14 = vweird.f32 %v3867_v8 }
 0xb5c   : > { %v5240_v9 = vmul.f32 0.70710677, %v5237_v14  ;;  %3868 = vrcp.f32 %v2824_v25  ;;  %vm2837_vm0 = vmor %vm2835_vm15, %vm2836_vm14  ;;  %v2856_v45 = vand.u32 2147483648, %v2824_v25  ;;  %v2854_v53 = vand.u32 2147483647, %v2824_v25 }
 0xb5d   : > { %v2832_v13 = vsub.f32 1.0, %v2831_v23  ;;  %vm2850_vm5 = vweird.f32 %v2824_v25  ;;  %vm2795_vm14 = vcmp.ge.f32.partialorder %v5220_v40, 0.0 }
 0xb5e   : > { %v5244_v11 = vand.u32 2147483647, %v5240_v9  ;;  %v2857_v28 = vor.u32 1.1754944e-38, %v2856_v45  ;;  %vm2855_vm7 = vcmp.eq.f32.partialorder %v2854_v53, 8.507059e+37 }
 0xb5f   : > { %v2833_v27 = vmul.f32 %v3867_v8, %v2832_v13  ;;  %v3006_v13 = vmul.f32 %v2999_v7, %v5233_v29 }
 0xb60   : > { %v2818_v21 = vmul.f32 0.3275911, %v5244_v11  ;;  %v3000_v29 = vsub.f32 0.0, %v5244_v11 }
 0xb61   : > { %v2834_v54 = vadd.f32 %v3867_v8, %v2833_v27  ;;  %v2769_v12 = vpop.f32.mrf.mxu2 }
 0xb62   : > { %v2825_v6 = vadd.f32 1.0, %v2818_v21  ;;  %v5249_v17 = vadd.f32 %v5213_v36, %v2769_v12  ;;  %v3869_v35 = vpop.eup %3868 }
 0xb63   : > { %v2838_v56 = vsel %vm2837_vm0, %v3867_v8, %v2834_v54  ;;  %v2846_v1 = vmul.f32 %v3869_v35, %v2824_v25  ;;  %vm2851_vm4 = vweird.f32 %v3869_v35 }
 0xb64   : > { %v2843_v50 = vsel %vm2840_vm1, %v2842_v33, %v2838_v56  ;;  %3870 = vrcp.f32 %v2825_v6  ;;  %v5253_v4 = vmul.f32 0.70710677, %v5249_v17  ;;  %vm2852_vm6 = vmor %vm2850_vm5, %vm2851_vm4  ;;  %v2871_v3 = vand.u32 2147483648, %v2825_v6 }
 0xb65   : > { %v2935_v24 = vmul.f32 1.0614054, %v2843_v50  ;;  %v2847_v63 = vsub.f32 1.0, %v2846_v1  ;;  %v2869_v23 = vand.u32 2147483647, %v2825_v6  ;;  %vm2865_vm9 = vweird.f32 %v2825_v6 }
 0xb66   : > { %v5256_v30 = vand.u32 2147483647, %v5253_v4  ;;  %v2872_v34 = vor.u32 1.1754944e-38, %v2871_v3  ;;  %v3014_v33 = vmul.f32 1.442695, %v3006_v13  ;;  %v3958_v3 = vmov -1.0  }
 0xb67   : > { %v2942_v32 = vadd.f32 -1.4531521, %v2935_v24  ;;  %v2848_v51 = vmul.f32 %v3869_v35, %v2847_v63  ;;  %vm2870_vm11 = vcmp.eq.f32.partialorder %v2869_v23, 8.507059e+37  ;;  %vm2796_vm1 = vcmp.ge.f32.partialorder %v5230_v44, 0.0 }
 0xb68   : > { %v2819_v57 = vmul.f32 0.3275911, %v5256_v30  ;;  %vm3101_vm4 = vcmask 523264   ;;  %vm2797_vm5 = vcmp.ge.f32.partialorder %v5240_v9, 0.0 }
 0xb69   : > { %v2949_v20 = vmul.f32 %v2942_v32, %v2843_v50  ;;  %v2849_v19 = vadd.f32 %v3869_v35, %v2848_v51 }
 0xb6a   : > { %v3871_v62 = vpop.eup %3870  ;;  %v2826_v39 = vadd.f32 1.0, %v2819_v57 }
 0xb6b   : > { %v2956_v49 = vadd.f32 1.4214138, %v2949_v20  ;;  %v2861_v26 = vmul.f32 %v3871_v62, %v2825_v6  ;;  %v2853_v22 = vsel %vm2852_vm6, %v3869_v35, %v2849_v19  ;;  %vm2866_vm8 = vweird.f32 %v3871_v62 }
 0xb6c   : > { %v2858_v46 = vsel %vm2855_vm7, %v2857_v28, %v2853_v22  ;;  %3872 = vrcp.f32 %v2826_v39  ;;  %vm2867_vm10 = vmor %vm2865_vm9, %vm2866_vm8  ;;  %v2886_v51 = vand.u32 2147483648, %v2826_v39  ;;  %v2884_v37 = vand.u32 2147483647, %v2826_v39 }
 0xb6d   : > { %v2963_v41 = vmul.f32 %v2956_v49, %v2843_v50  ;;  %v2862_v15 = vsub.f32 1.0, %v2861_v26  ;;  %v2936_v18 = vmul.f32 1.0614054, %v2858_v46  ;;  %3874 = vpow2.f32 %v3012_v2 }
 0xb6e   : > { %3876 = vpow2.f32 %v3014_v33  ;;  %vm2880_vm13 = vweird.f32 %v2826_v39  ;;  %v2887_v28 = vor.u32 1.1754944e-38, %v2886_v51  ;;  %vm2885_vm0 = vcmp.eq.f32.partialorder %v2884_v37, 8.507059e+37 }
 0xb6f   : > { %v2970_v16 = vadd.f32 -0.28449672, %v2963_v41  ;;  %v2863_v8 = vmul.f32 %v3871_v62, %v2862_v15  ;;  %v2943_v25 = vadd.f32 -1.4531521, %v2936_v18  ;;  %v3001_v18 = vsub.f32 0.0, %v5256_v30 }
 0xb70   : > { %v2782_v33 = vmul.f32 0.5, %v5226_v42  ;;  %vm2798_vm6 = vcmp.ge.f32.partialorder %v5253_v4, 0.0 }
 0xb71   : > { %v2977_v0 = vmul.f32 %v2970_v16, %v2843_v50  ;;  %v2864_v10 = vadd.f32 %v3871_v62, %v2863_v8  ;;  %v2950_v27 = vmul.f32 %v2943_v25, %v2858_v46  ;;  %v2805_v9 = vsel %vm2798_vm6, 1.0, %v3958_v3 }
 0xb72   : > { %v3873_v12 = vpop.eup %3872 }
 0xb73   : > { %v2984_v21 = vadd.f32 0.2548296, %v2977_v0  ;;  %v2868_v54 = vsel %vm2867_vm10, %v3871_v62, %v2864_v10  ;;  %v2957_v48 = vadd.f32 1.4214138, %v2950_v27  ;;  %v2876_v24 = vmul.f32 %v3873_v12, %v2826_v39  ;;  %v3875_v47 = vpop.eup %3874 }
 0xb74   : > { %v2873_v35 = vsel %vm2870_vm11, %v2872_v34, %v2868_v54  ;;  %vm2881_vm12 = vweird.f32 %v3873_v12  ;;  %v3007_v62 = vmul.f32 %v3000_v29, %v5244_v11  ;;  %v3877_v7 = vpop.eup %3876  ;;  %v2802_v11 = vsel %vm2795_vm14, 1.0, %v3958_v3 }
 0xb75   : > { %v2991_v56 = vmul.f32 %v2984_v21, %v2843_v50  ;;  %v2937_v1 = vmul.f32 1.0614054, %v2873_v35  ;;  %v2964_v60 = vmul.f32 %v2957_v48, %v2858_v46  ;;  %v2877_v32 = vsub.f32 1.0, %v2876_v24  ;;  %vm2882_vm15 = vmor %vm2880_vm13, %vm2881_vm12 }
 0xb76   : > { %v3016_v2 = vmul.f32 1.442695, %v3007_v62  ;;  %v3008_v0 = vmul.f32 %v3001_v18, %v5256_v30  ;;  %v2781_v48 = vmul.f32 0.5, %v5216_v31 }
 0xb77   : > { %v2944_v63 = vadd.f32 -1.4531521, %v2937_v1  ;;  %v3026_v6 = vmul.f32 %v3875_v47, %v2991_v56  ;;  %v2971_v45 = vadd.f32 -0.28449672, %v2964_v60  ;;  %v2878_v20 = vmul.f32 %v3873_v12, %v2877_v32 }
 0xb78   : > { %3878 = vpow2.f32 %v3016_v2  ;;  %v3018_v56 = vmul.f32 1.442695, %v3008_v0 }
 0xb79   : > { %v2951_v53 = vmul.f32 %v2944_v63, %v2873_v35  ;;  %v2978_v5 = vmul.f32 %v2971_v45, %v2858_v46  ;;  %v2879_v19 = vadd.f32 %v3873_v12, %v2878_v20  ;;  %v3033_v57 = vsub.f32 1.0, %v3026_v6 }
 0xb7a   : > { %3880 = vpow2.f32 %v3018_v56  ;;  %v2804_v20 = vsel %vm2797_vm5, 1.0, %v3958_v3 }
 0xb7b   : > { %v2958_v50 = vadd.f32 1.4214138, %v2951_v53  ;;  %v2985_v49 = vadd.f32 0.2548296, %v2978_v5  ;;  %v2883_v22 = vsel %vm2882_vm15, %v3873_v12, %v2879_v19  ;;  %v3040_v8 = vmul.f32 %v3033_v57, %v2802_v11 }
 0xb7c   : > { %v2888_v15 = vsel %vm2885_vm0, %v2887_v28, %v2883_v22 }
 0xb7d   : > { %v2965_v26 = vmul.f32 %v2958_v50, %v2873_v35  ;;  %v2992_v41 = vmul.f32 %v2985_v49, %v2858_v46  ;;  %v2938_v39 = vmul.f32 1.0614054, %v2888_v15  ;;  %v2803_v46 = vsel %vm2796_vm1, 1.0, %v3958_v3 }
 0xb7e   : > { %v3047_v34 = vadd.f32 1.0, %v3040_v8  ;;  %v3879_v24 = vpop.eup %3878 }
 0xb7f   : > { %v2972_v16 = vadd.f32 -0.28449672, %v2965_v26  ;;  %v3027_v40 = vmul.f32 %v3877_v7, %v2992_v41  ;;  %v2945_v25 = vadd.f32 -1.4531521, %v2938_v39  ;;  %v2783_v7 = vmul.f32 0.5, %v5237_v14 }
 0xb80   : > { %v3054_v60 = vmul.f32 %v3047_v34, %v2781_v48  ;;  %v3881_v53 = vpop.eup %3880  ;;  %v2784_v41 = vmul.f32 0.5, %v5249_v17 }
 0xb81   : > { %v2979_v23 = vmul.f32 %v2972_v16, %v2873_v35  ;;  %v3034_v13 = vsub.f32 1.0, %v3027_v40  ;;  %v2952_v27 = vmul.f32 %v2945_v25, %v2888_v15 }
 0xb83   : > { %v2986_v10 = vadd.f32 0.2548296, %v2979_v23  ;;  %v3041_v21 = vmul.f32 %v3034_v13, %v2803_v46  ;;  %v2959_v12 = vadd.f32 1.4214138, %v2952_v27 }
 0xb85   : > { %v2993_v54 = vmul.f32 %v2986_v10, %v2873_v35  ;;  %v3048_v44 = vadd.f32 1.0, %v3041_v21  ;;  %v2966_v1 = vmul.f32 %v2959_v12, %v2888_v15 }
 0xb87   : > { %v3055_v29 = vmul.f32 %v3048_v44, %v2782_v33  ;;  %v3028_v47 = vmul.f32 %v3879_v24, %v2993_v54  ;;  %v2973_v30 = vadd.f32 -0.28449672, %v2966_v1 }
 0xb89   : > { %v3061_v63 = vpack.c.bf16 %v3055_v29, %v3054_v60  ;;  %v2980_v32 = vmul.f32 %v2973_v30, %v2888_v15  ;;  %v3035_v31 = vsub.f32 1.0, %v3028_v47 }
 0xb8b   : > { %v2772_v6 = vpop.f32.mrf.mxu2  ;;  %3579 = vmatmul.msk.bf16.vlgmr.msrb.gmra.mxu0 %vm3101_vm4, %v3061_v63  ;;  %v2987_v42 = vadd.f32 0.2548296, %v2980_v32  ;;  %v3042_v5 = vmul.f32 %v3035_v31, %v2804_v20 }
 0xb8c   : > { %v5273_v35 = vadd.f32 %v5213_v36, %v2772_v6 }
 0xb8d   : > { %v2994_v51 = vmul.f32 %v2987_v42, %v2888_v15  ;;  %v3049_v26 = vadd.f32 1.0, %v3042_v5 }
 0xb8e   : > { %v5278_v45 = vmul.f32 0.70710677, %v5273_v35 }
 0xb8f   : > { %v3029_v62 = vmul.f32 %v3881_v53, %v2994_v51  ;;  %v3056_v15 = vmul.f32 %v3049_v26, %v2783_v7 }
 0xb90   : > { %v2813_v37 = vand.u32 2147483647, %v5278_v45  ;;  %vm2799_vm15 = vcmp.ge.f32.partialorder %v5278_v45, 0.0 }
 0xb91   : > { %v3036_v19 = vsub.f32 1.0, %v3029_v62 }
 0xb92   : > { %v2820_v50 = vmul.f32 0.3275911, %v2813_v37  ;;  %v3002_v12 = vsub.f32 0.0, %v2813_v37 }
 0xb93   : > { %v2774_v57 = vpop.f32.mrf.mxu2  ;;  %v3043_v22 = vmul.f32 %v3036_v19, %v2805_v9 }
 0xb94   : > { %v2827_v49 = vadd.f32 1.0, %v2820_v50  ;;  %v5285_v28 = vadd.f32 %v5213_v36, %v2774_v57  ;;  %v3009_v60 = vmul.f32 %v3002_v12, %v2813_v37 }
 0xb95   : > { %v3050_v2 = vadd.f32 1.0, %v3043_v22 }
 0xb96   : > { %3882 = vrcp.f32 %v2827_v49  ;;  %v5290_v4 = vmul.f32 0.70710677, %v5285_v28  ;;  %v2901_v14 = vand.u32 2147483648, %v2827_v49  ;;  %v2899_v17 = vand.u32 2147483647, %v2827_v49 }
 0xb97   : > { %v3057_v18 = vmul.f32 %v3050_v2, %v2784_v41  ;;  %vm2895_vm8 = vweird.f32 %v2827_v49  ;;  %v3020_v6 = vmul.f32 1.442695, %v3009_v60 }
 0xb98   : > { %v2814_v11 = vand.u32 2147483647, %v5290_v4  ;;  %v2902_v46 = vor.u32 1.1754944e-38, %v2901_v14  ;;  %vm2900_vm10 = vcmp.eq.f32.partialorder %v2899_v17, 8.507059e+37  ;;  %vm2800_vm0 = vcmp.ge.f32.partialorder %v5290_v4, 0.0 }
 0xb99   : > { %v3062_v39 = vpack.c.bf16 %v3057_v18, %v3056_v15  ;;  %v2786_v17 = vmul.f32 0.5, %v5285_v28 }
 0xb9a   : > { %v2821_v16 = vmul.f32 0.3275911, %v2814_v11  ;;  %v3003_v42 = vsub.f32 0.0, %v2814_v11 }
 0xb9b   : > { %3580 = vmatmul.msk.bf16.gmra.mxu0 %vm3101_vm4, %v3062_v39  ;;  %v2806_v39 = vsel %vm2799_vm15, 1.0, %v3958_v3 }
 0xb9c   : > { %v3883_v8 = vpop.eup %3882  ;;  %v2828_v23 = vadd.f32 1.0, %v2821_v16  ;;  %v3010_v62 = vmul.f32 %v3003_v42, %v2814_v11 }
 0xb9d   : > { %v2891_v40 = vmul.f32 %v3883_v8, %v2827_v49  ;;  %vm2896_vm7 = vweird.f32 %v3883_v8 }
 0xb9e   : > { %3884 = vrcp.f32 %v2828_v23  ;;  %vm2897_vm9 = vmor %vm2895_vm8, %vm2896_vm7  ;;  %v2916_v44 = vand.u32 2147483648, %v2828_v23  ;;  %v2914_v1 = vand.u32 2147483647, %v2828_v23  ;;  %vm2910_vm12 = vweird.f32 %v2828_v23 }
 0xb9f   : > { %v2892_v25 = vsub.f32 1.0, %v2891_v40  ;;  %3886 = vpow2.f32 %v3020_v6  ;;  %v3022_v9 = vmul.f32 1.442695, %v3010_v62 }
 0xba0   : > { %v2917_v30 = vor.u32 1.1754944e-38, %v2916_v44  ;;  %vm2915_vm14 = vcmp.eq.f32.partialorder %v2914_v1, 8.507059e+37 }
 0xba1   : > { %v2893_v13 = vmul.f32 %v3883_v8, %v2892_v25  ;;  %3888 = vpow2.f32 %v3022_v9 }
 0xba3   : > { %v2894_v0 = vadd.f32 %v3883_v8, %v2893_v13  ;;  %v2785_v13 = vmul.f32 0.5, %v5273_v35 }
 0xba4   : > { %v3885_v10 = vpop.eup %3884 }
 0xba5   : > { %v2898_v27 = vsel %vm2897_vm9, %v3883_v8, %v2894_v0  ;;  %v2906_v21 = vmul.f32 %v3885_v10, %v2828_v23  ;;  %vm2911_vm11 = vweird.f32 %v3885_v10  ;;  %v3887_v26 = vpop.eup %3886  ;;  %v2807_v23 = vsel %vm2800_vm0, 1.0, %v3958_v3 }
 0xba6   : > { %v2903_v34 = vsel %vm2900_vm10, %v2902_v46, %v2898_v27  ;;  %vm2912_vm13 = vmor %vm2910_vm12, %vm2911_vm11 }
 0xba7   : > { %v2939_v54 = vmul.f32 1.0614054, %v2903_v34  ;;  %v2907_v48 = vsub.f32 1.0, %v2906_v21  ;;  %v3889_v16 = vpop.eup %3888 }
 0xba9   : > { %v2946_v33 = vadd.f32 -1.4531521, %v2939_v54  ;;  %v2908_v56 = vmul.f32 %v3885_v10, %v2907_v48 }
 0xbab   : > { %v2953_v24 = vmul.f32 %v2946_v33, %v2903_v34  ;;  %v2909_v29 = vadd.f32 %v3885_v10, %v2908_v56 }
 0xbad   : > { %v2960_v47 = vadd.f32 1.4214138, %v2953_v24  ;;  %v2913_v63 = vsel %vm2912_vm13, %v3885_v10, %v2909_v29 }
 0xbae   : > { %v2918_v31 = vsel %vm2915_vm14, %v2917_v30, %v2913_v63 }
 0xbaf   : > { %v2967_v32 = vmul.f32 %v2960_v47, %v2903_v34  ;;  %v2940_v51 = vmul.f32 1.0614054, %v2918_v31 }
 0xbb1   : > { %v2974_v53 = vadd.f32 -0.28449672, %v2967_v32  ;;  %v2947_v20 = vadd.f32 -1.4531521, %v2940_v51 }
 0xbb3   : > { %v2981_v5 = vmul.f32 %v2974_v53, %v2903_v34  ;;  %v2954_v50 = vmul.f32 %v2947_v20, %v2918_v31 }
 0xbb5   : > { %v2988_v19 = vadd.f32 0.2548296, %v2981_v5  ;;  %v2961_v37 = vadd.f32 1.4214138, %v2954_v50 }
 0xbb7   : > { %v2995_v57 = vmul.f32 %v2988_v19, %v2903_v34  ;;  %v2968_v49 = vmul.f32 %v2961_v37, %v2918_v31 }
 0xbb9   : > { %v3030_v22 = vmul.f32 %v3887_v26, %v2995_v57  ;;  %v2975_v7 = vadd.f32 -0.28449672, %v2968_v49  ;;  %v3723_v57 = vld [vmem:[%s737_s21] ss:$0 sm:$0xff] }
 0xbbb   : > { %v2982_v41 = vmul.f32 %v2975_v7, %v2918_v31  ;;  %v3037_v2 = vsub.f32 1.0, %v3030_v22 }
 0xbbd   : > { %v2989_v15 = vadd.f32 0.2548296, %v2982_v41  ;;  %v3044_v11 = vmul.f32 %v3037_v2, %v2806_v39 }
 0xbbf   : > { %v2996_v18 = vmul.f32 %v2989_v15, %v2918_v31  ;;  %v3051_v25 = vadd.f32 1.0, %v3044_v11 }
 0xbc1   : > { %v3031_v8 = vmul.f32 %v3889_v16, %v2996_v18  ;;  %v3058_v0 = vmul.f32 %v3051_v25, %v2785_v13 }
 0xbc3   : > { %v3038_v40 = vsub.f32 1.0, %v3031_v8 }
 0xbc5   : > { %v3045_v14 = vmul.f32 %v3038_v40, %v2807_v23 }
 0xbc7   : > { %v3052_v45 = vadd.f32 1.0, %v3045_v14 }
 0xbc9   : > { %v3059_v46 = vmul.f32 %v3052_v45, %v2786_v17 }
 0xbcb   : > { %v3063_v10 = vpack.c.bf16 %v3059_v46, %v3058_v0 }
 0xbcd   : > { %3581 = vmatmul.msk.bf16.gmra.mxu0 %vm3101_vm4, %v3063_v10 }
 0xbd6   : > { %v2777_v27 = vpop.f32.mrf.mxu2 }
 0xbd7   : > { %v2778_v34 = vadd.f32 %v5213_v36, %v2777_v27 }
 0xbd9   : > { %v2794_v4 = vmul.f32 0.70710677, %v2778_v34  ;;  %v2787_v22 = vmul.f32 0.5, %v2778_v34 }
 0xbdb   : > { %v2815_v21 = vand.u32 2147483647, %v2794_v4  ;;  %vm2801_vm8 = vcmp.ge.f32.partialorder %v2794_v4, 0.0 }
 0xbdc   : > { %v2808_v9 = vsel %vm2801_vm8, 1.0, %v3958_v3 }
 0xbdd   : > { %v2822_v54 = vmul.f32 0.3275911, %v2815_v21  ;;  %v3004_v47 = vsub.f32 0.0, %v2815_v21 }
 0xbde   : > { %v2779_v12 = vpop.f32.mrf.mxu2 }
 0xbdf   : > { %v2829_v48 = vadd.f32 1.0, %v2822_v54  ;;  %v3011_v32 = vmul.f32 %v3004_v47, %v2815_v21 }
 0xbe1   : > { %3890 = vrcp.f32 %v2829_v48  ;;  %v2931_v56 = vand.u32 2147483648, %v2829_v48  ;;  %v2929_v1 = vand.u32 2147483647, %v2829_v48  ;;  %vm2925_vm5 = vweird.f32 %v2829_v48 }
 0xbe2   : > { %v3024_v42 = vmul.f32 1.442695, %v3011_v32 }
 0xbe3   : > { %v2932_v60 = vor.u32 1.1754944e-38, %v2931_v56  ;;  %vm2930_vm7 = vcmp.eq.f32.partialorder %v2929_v1, 8.507059e+37 }
 0xbe4   : > { %3892 = vpow2.f32 %v3024_v42 }
 0xbe7   : > { %v3891_v33 = vpop.eup %3890 }
 0xbe8   : > { %v2921_v44 = vmul.f32 %v3891_v33, %v2829_v48  ;;  %vm2926_vm1 = vweird.f32 %v3891_v33 }
 0xbe9   : > { %vm2927_vm6 = vmor %vm2925_vm5, %vm2926_vm1 }
 0xbea   : > { %v2922_v35 = vsub.f32 1.0, %v2921_v44  ;;  %v3893_v50 = vpop.eup %3892 }
 0xbec   : > { %v2923_v28 = vmul.f32 %v3891_v33, %v2922_v35 }
 0xbee   : > { %v2924_v24 = vadd.f32 %v3891_v33, %v2923_v28 }
 0xbf0   : > { %v2928_v29 = vsel %vm2927_vm6, %v3891_v33, %v2924_v24 }
 0xbf1   : > { %v2933_v36 = vsel %vm2930_vm7, %v2932_v60, %v2928_v29 }
 0xbf2   : > { %v2941_v30 = vmul.f32 1.0614054, %v2933_v36 }
 0xbf4   : > { %v2948_v63 = vadd.f32 -1.4531521, %v2941_v30 }
 0xbf6   : > { %v2955_v6 = vmul.f32 %v2948_v63, %v2933_v36 }
 0xbf8   : > { %v2962_v31 = vadd.f32 1.4214138, %v2955_v6 }
 0xbfa   : > { %v2969_v51 = vmul.f32 %v2962_v31, %v2933_v36 }
 0xbfc   : > { %v2976_v53 = vadd.f32 -0.28449672, %v2969_v51 }
 0xbfe   : > { %v2983_v20 = vmul.f32 %v2976_v53, %v2933_v36 }
 0xc00   : > { %v2990_v5 = vadd.f32 0.2548296, %v2983_v20 }
 0xc02   : > { %v2997_v62 = vmul.f32 %v2990_v5, %v2933_v36 }
 0xc04   : > { %v3032_v19 = vmul.f32 %v3893_v50, %v2997_v62 }
 0xc06   : > { %v3039_v37 = vsub.f32 1.0, %v3032_v19 }
 0xc08   : > { %v3046_v49 = vmul.f32 %v3039_v37, %v2808_v9  ;;  %v3123_v26 = vpop.f32.mrf.mxu0 }
 0xc09   : > { %v3124_v41 = vadd.f32 %v3723_v57, %v3123_v26 }
 0xc0a   : > { %v3053_v7 = vadd.f32 1.0, %v3046_v49 }
 0xc0b   : > { %v3142_v15 = vadd.f32 %v5070_v52, %v3124_v41 }
 0xc0c   : > { %v3060_v2 = vmul.f32 %v3053_v7, %v2787_v22 }
 0xc0d   : > { %v3583_v16 = vclamps-f32 %v3142_v15, 65504.0 }
 0xc0e   : > { %v3064_v18 = vpack.c.bf16 %v3060_v2, %v3060_v2 }
 0xc0f   : > { %3163 = vst.msk [vmem:[%s4166_s23] sm:$0xff] %vm814_vm3, %v3583_v16 }
 0xc10   : > { %3582 = vmatmul.msk.bf16.gmra.mxu0 %vm3101_vm4, %v3064_v18  ;;  %v3125_v39 = vpop.f32.mrf.mxu0 }
 0xc11   : > { %v3126_v11 = vadd.f32 %v3723_v57, %v3125_v39 }
 0xc13   : > { %v3143_v3 = vadd.f32 %v5078_v55, %v3126_v11 }
 0xc15   : > { %v3584_v8 = vclamps-f32 %v3143_v3, 65504.0 }
 0xc17   : > { %3164 = vst.msk [vmem:[%s4166_s23 + $0x8] sm:$0xff] %vm814_vm3, %v3584_v8 }
 0xc18   : > { %v3128_v40 = vpop.f32.mrf.mxu0 }
 0xc19   : > { %v3129_v23 = vadd.f32 %v3723_v57, %v3128_v40 }
 0xc1b   : > { %v3144_v25 = vadd.f32 %v5087_v43, %v3129_v23 }
 0xc1d   : > { %v3585_v52 = vclamps-f32 %v3144_v25, 65504.0 }
 0xc1f   : > { %3165 = vst.msk [vmem:[%s4166_s23 + $0x10] sm:$0xff] %vm814_vm3, %v3585_v52 }
 0xc20   : > { %v3130_v14 = vpop.f32.mrf.mxu0 }
 0xc21   : > { %v3131_v13 = vadd.f32 %v3723_v57, %v3130_v14 }
 0xc23   : > { %v3145_v17 = vadd.f32 %v5093_v58, %v3131_v13 }
 0xc25   : > { %v3586_v45 = vclamps-f32 %v3145_v17, 65504.0 }
 0xc27   : > { %3166 = vst.msk [vmem:[%s4166_s23 + $0x18] sm:$0xff] %vm814_vm3, %v3586_v45 }
 0xc4a   : > { %v3133_v55 = vpop.f32.mrf.mxu0 }
 0xc4b   : > { %v3134_v0 = vadd.f32 %v3723_v57, %v3133_v55 }
 0xc4d   : > { %v3146_v46 = vadd.f32 %v5099_v59, %v3134_v0 }
 0xc4f   : > { %v3587_v10 = vclamps-f32 %v3146_v46, 65504.0 }
 0xc51   : > { %3167 = vst.msk [vmem:[%s4166_s23 + $0x20] sm:$0xff] %vm814_vm3, %v3587_v10 }
 0xc52   : > { %v3135_v43 = vpop.f32.mrf.mxu0 }
 0xc53   : > { %v3136_v27 = vadd.f32 %v3723_v57, %v3135_v43 }
 0xc55   : > { %v3147_v34 = vadd.f32 %v5105_v38, %v3136_v27 }
 0xc57   : > { %v3588_v4 = vclamps-f32 %v3147_v34, 65504.0 }
 0xc59   : > { %3168 = vst.msk [vmem:[%s4166_s23 + $0x28] sm:$0xff] %vm814_vm3, %v3588_v4 }
 0xc8d   : > { %v3138_v21 = vpop.f32.mrf.mxu0 }
 0xc8e   : > { %v3139_v58 = vadd.f32 %v3723_v57, %v3138_v21 }
 0xc90   : > { %v3148_v54 = vadd.f32 %v5138_v61, %v3139_v58 }
 0xc91   : > { %3173 = sbr.rel (%p3590_p8) target bundleno = 3229 (0xc9d), region = 88 }
 0xc92   : > { %v3589_v12 = vclamps-f32 %v3148_v54, 65504.0 }
 0xc94   : > { %3169 = vst.msk [vmem:[%s4166_s23 + $0x30] sm:$0x1] %vm833_vm2, %v3589_v12 }
 0xc95   : > { %v3140_v48 = vpop.f32.mrf.mxu0 }
 0xc96   : > { %3174 = vst.msk [vmem:[%s4148_s0] sm:$0xff] %vm814_vm3, %v3583_v16 }
 0xc97   : > { %3175 = vst.msk [vmem:[%s4148_s0 + $0x8] sm:$0xff] %vm814_vm3, %v3584_v8 }
 0xc98   : > { %3176 = vst.msk [vmem:[%s4148_s0 + $0x10] sm:$0xff] %vm814_vm3, %v3585_v52 }
 0xc99   : > { %3177 = vst.msk [vmem:[%s4148_s0 + $0x18] sm:$0xff] %vm814_vm3, %v3586_v45 }
 0xc9a   : > { %3178 = vst.msk [vmem:[%s4148_s0 + $0x20] sm:$0xff] %vm814_vm3, %v3587_v10 }
 0xc9b   : > { %3179 = vst.msk [vmem:[%s4148_s0 + $0x28] sm:$0xff] %vm814_vm3, %v3588_v4 }
 0xc9c   : > { %3180 = vst.msk [vmem:[%s4148_s0 + $0x30] sm:$0x1] %vm833_vm2, %v3589_v12 }
 0xc9d PF: > { %s5438_s21 = sld [smem:[#allocation7_spill]] }
 0xc9e   : > { %s5440_s22 = sld [smem:[#allocation6_spill]] }
 0xc9f   : > { %s5441_s23 = sld [smem:[#allocation8_spill]] }
 0xca0   : > { %s5442_s24 = sld [smem:[#allocation9_spill]] }
 0xca3   : > { %s27_s25 = sadd.s32 1, %s5438_s21   ;;  %s5439_s21 = sld [smem:[#allocation5_spill]] }
 0xca4   : > { %p24_p9 = scmp.ge.s32.totalorder %s27_s25, 6  }
 0xca6   :  { %26 = sbr.rel (!%p24_p9) target bundleno = 11 (0xb), region = 171 }

</bundles_post_ra>
